<compile_context>
chip_gen: v7x
topology: tpu7x:2x2x1
jax: 0.10.0
libtpu: 0.0.40
codegen_flags: <defaults>
</compile_context>

<pallas_src>
import functools

import jax
import jax.numpy as jnp
from jax import lax
from jax.experimental import pallas as pl
from jax.experimental.pallas import tpu as pltpu

DIAG_CHANNEL = 128  # fixed in FullyConnectGCLayer
BN_EPS = 1e-5


# ---------------------------------------------------------------------------
# Single fused kernel
# ---------------------------------------------------------------------------
def _intra_graph_kernel(em_num, batch,
                        x_ref, win_ref, bin_ref, mu0_ref, pi0_ref,
                        wda_ref, bda_ref, wg_ref,
                        wh_ref, bh_ref, gh_ref, beh_ref,
                        out1_ref, out2_ref, mu_mean_ref, pi_mean_ref,
                        x34_slab, xres_slab):
    i = pl.program_id(0)
    x = x_ref[0]                                   # (Cin, N)
    cin, n = x.shape
    c = win_ref.shape[0]
    off = pl.multiple_of(i * n, n)                 # lane offset into the (., B*N) slabs

    # residual pass-through for both heads (lane-aligned store, N multiple of 128)
    xres_slab[:, pl.ds(off, n)] = x

    # in_conv (1x1)  ->  x1 (C, N)
    x1 = jnp.dot(win_ref[...], x, preferred_element_type=jnp.float32) + bin_ref[...]
    x1t = x1.T                                     # (N, C), loop-invariant (hoisted)

    # ---- EM iterations, lane-dense: lik/post/prob are (K, N), mu is (K, C), pi (K, 1)
    mu_kc = mu0_ref[0].T                           # (K, C)
    pi_k = pi0_ref[...]                            # (K, 1)
    inv_n = jnp.float32(1.0 / n)
    post = None
    for _ in range(em_num):                        # static unroll (em_num is tiny)
        lik = jnp.dot(mu_kc, x1, preferred_element_type=jnp.float32)    # (K, N)
        lik = jnp.exp(lik - jnp.max(lik, axis=0, keepdims=True))
        post = lik * pi_k
        post = post / (1e-18 + jnp.sum(post, axis=0, keepdims=True))    # exact div (parity)
        prob = post / (1e-18 + jnp.sum(post, axis=1, keepdims=True))
        mu_kc = jnp.dot(prob, x1t, preferred_element_type=jnp.float32)  # (K, C)
        pi_k = jnp.sum(post, axis=1, keepdims=True) * inv_n             # (K, 1)

    x2 = mu_kc.T                                   # (C, K) == x1 @ prob_  (final mu)

    # batch-means of (mu, pi) for the EMA buffer update (resident accumulator outputs)
    inv_b = jnp.float32(1.0 / batch)

    @pl.when(i == 0)
    def _():
        mu_mean_ref[...] = jnp.zeros_like(mu_mean_ref)
        pi_mean_ref[...] = jnp.zeros_like(pi_mean_ref)

    mu_mean_ref[...] += x2 * inv_b
    pi_mean_ref[...] += pi_k * inv_b

    # ---- FullyConnectGCLayer on x2 (C, K) ----
    k = x2.shape[1]
    # diagonal_conv and adjacency_conv stacked -> one MXU pass producing (256, K)
    xda = jnp.dot(wda_ref[...], x2, preferred_element_type=jnp.float32) + bda_ref[...]
    xd = xda[:DIAG_CHANNEL]                        # (128, K) diagonal branch
    xa = xda[DIAG_CHANNEL:]                        # (128, K) adjacency branch
    s = jax.nn.sigmoid(jnp.mean(xd, axis=1, keepdims=True))             # (128, 1)
    # torch builds dmat = sigmoid(diag(avgpool(diag_conv))) -> off-diagonals = sigmoid(0)=0.5
    # so dmat @ xa == 0.5*colsum(xa) + (s-0.5)*xa  (no 128x128 materialization)
    tmp = 0.5 * jnp.sum(xa, axis=0, keepdims=True) + (s - 0.5) * xa
    adj = lax.dot_general(xa, tmp, (((0,), (0,)), ((), ())),
                          preferred_element_type=jnp.float32)           # (K, K) = xa^T dmat xa
    # _normalize: relu, +I, D^-1/2 A D^-1/2 (adj symmetric -> row/col degrees equal)
    adj = jnp.maximum(adj, 0.0)
    rows = lax.broadcasted_iota(jnp.int32, (k, k), 0)
    cols = lax.broadcasted_iota(jnp.int32, (k, k), 1)
    a_hat = adj + jnp.where(rows == cols, jnp.float32(1.0), jnp.float32(0.0))
    deg_r = lax.rsqrt(jnp.sum(a_hat, axis=1, keepdims=True))            # (K, 1)
    deg_c = lax.rsqrt(jnp.sum(a_hat, axis=0, keepdims=True))            # (1, K)
    a_norm = a_hat * deg_r * deg_c
    # graph conv: W @ (x2 @ A), relu, residual
    gout = jnp.dot(wg_ref[...],
                   jnp.dot(x2, a_norm, preferred_element_type=jnp.float32),
                   preferred_element_type=jnp.float32)                  # (C, K)
    gout = jnp.maximum(gout, 0.0) + x2

    # project back to spatial positions; post is already (K, N) -> no transpose needed
    x34_slab[pl.ds(0, c), pl.ds(off, n)] = jnp.dot(
        gout, post, preferred_element_type=jnp.float32)                 # x3 rows [0:C]
    x34_slab[pl.ds(c, c), pl.ds(off, n)] = jnp.dot(
        x2, post, preferred_element_type=jnp.float32)                   # x4 rows [C:2C]

    # ---- both output heads, once, on the full (., B*N) slab (cross-batch BN stats) ----
    @pl.when(i == batch - 1)
    def _():
        # block-diag [w1 0; 0 w2] @ [x3; x4]: one matmul, one BN pass for both heads
        y = jnp.dot(wh_ref[...], x34_slab[...],
                    preferred_element_type=jnp.float32) + bh_ref[...]   # (2*Cin, B*N)
        mean = jnp.mean(y, axis=1, keepdims=True)
        var = jnp.mean(jnp.square(y - mean), axis=1, keepdims=True)     # biased (BN train mode)
        y = (y - mean) * lax.rsqrt(var + BN_EPS)
        y = jnp.maximum(y * gh_ref[...] + beh_ref[...], 0.0)
        xres = xres_slab[...]                                           # (Cin, B*N)
        y1 = y[:cin] + xres                                             # out_conv/out_bn branch (x3)
        y2 = y[cin:] + xres                                             # out_conv2/out_bn2 branch (x4)
        for bi in range(batch):                                         # emit (B, Cin, N) directly
            out1_ref[bi] = y1[:, bi * n:(bi + 1) * n]
            out2_ref[bi] = y2[:, bi * n:(bi + 1) * n]


def fused_intra_graph_call(x_flat, win, bin_, mu0, pi0_col, wda, bda, wg,
                           whead, bhead, ghead, behead, *, em_num):
    b, cin, n = x_flat.shape
    c = win.shape[0]
    k = mu0.shape[2]
    out_shape = (
        jax.ShapeDtypeStruct((b, cin, n), jnp.float32),   # output  (x3 head)
        jax.ShapeDtypeStruct((b, cin, n), jnp.float32),   # output2 (x4 head)
        jax.ShapeDtypeStruct((c, k), jnp.float32),        # mu.mean(0)  for EMA update
        jax.ShapeDtypeStruct((k, 1), jnp.float32),        # pi.mean(0)  for EMA update
    )
    return pl.pallas_call(
        functools.partial(_intra_graph_kernel, em_num, b),
        out_shape=out_shape,
        grid_spec=pltpu.PrefetchScalarGridSpec(
            num_scalar_prefetch=0,
            grid=(b,),
            in_specs=[
                pl.BlockSpec((1, cin, n), lambda i: (i, 0, 0)),          # x (per-batch block)
                pl.BlockSpec((c, cin), lambda i: (0, 0)),                # in_conv_w
                pl.BlockSpec((c, 1), lambda i: (0, 0)),                  # in_conv_b
                pl.BlockSpec((1, c, k), lambda i: (0, 0, 0)),            # mu0
                pl.BlockSpec((k, 1), lambda i: (0, 0)),                  # pi0 (column)
                pl.BlockSpec((2 * DIAG_CHANNEL, c), lambda i: (0, 0)),   # [diag; adj] conv w
                pl.BlockSpec((2 * DIAG_CHANNEL, 1), lambda i: (0, 0)),   # [diag; adj] conv b
                pl.BlockSpec((c, c), lambda i: (0, 0)),                  # gc_weight
                pl.BlockSpec((2 * cin, 2 * c), lambda i: (0, 0)),        # head_w (block-diag)
                pl.BlockSpec((2 * cin, 1), lambda i: (0, 0)),            # head_b
                pl.BlockSpec((2 * cin, 1), lambda i: (0, 0)),            # head_gamma
                pl.BlockSpec((2 * cin, 1), lambda i: (0, 0)),            # head_beta
            ],
            out_specs=[
                pl.BlockSpec((b, cin, n), lambda i: (0, 0, 0)),          # resident, written last step
                pl.BlockSpec((b, cin, n), lambda i: (0, 0, 0)),          # resident, written last step
                pl.BlockSpec((c, k), lambda i: (0, 0)),                  # resident accumulator
                pl.BlockSpec((k, 1), lambda i: (0, 0)),                  # resident accumulator
            ],
            scratch_shapes=[
                pltpu.VMEM((2 * c, b * n), jnp.float32),   # rows [0:C]=x3, [C:2C]=x4 slab
                pltpu.VMEM((cin, b * n), jnp.float32),     # residual slab
            ],
        ),
        # Batch axis must be sequential: BN batch-stats and the mu/pi EMA means accumulate
        # across grid steps into resident VMEM state.
        # TODO(synk): a v7x core-parallel variant would need a cross-core reduction for BN.
        compiler_params=pltpu.CompilerParams(dimension_semantics=("arbitrary",)),
    )(x_flat, win, bin_, mu0, pi0_col, wda, bda, wg, whead, bhead, ghead, behead)


# ---------------------------------------------------------------------------
# Parameter init (deterministic, synthetic) and the full forward wrapper
# ---------------------------------------------------------------------------
def init_params(key, in_channel, inner_channel, nodes_num):
    ks = jax.random.split(key, 7)
    c, k, cin = inner_channel, nodes_num, in_channel
    p = {}
    p['multi_proto_s'] = 0.001 * jax.random.normal(ks[0], (1, c, k), jnp.float32)
    p['multi_proto_t'] = 0.001 * jax.random.normal(ks[1], (1, c, k), jnp.float32)
    p['pi_s'] = jnp.ones((1, k), jnp.float32) / k
    p['pi_t'] = jnp.ones((1, k), jnp.float32) / k
    # 1x1 convs (Conv2d weights ~ N(0, 0.001) as in the torch init loop; biases zero)
    p['in_conv_w'] = 0.001 * jax.random.normal(ks[2], (c, cin), jnp.float32)
    p['in_conv_b'] = jnp.zeros((c, 1), jnp.float32)
    # FullyConnectGCLayer: diagonal_conv rows [0:128] and adjacency_conv rows [128:256]
    # pre-stacked so the kernel does a single (256, C) @ (C, K) matmul.
    p['da_conv_w'] = 0.05 * jax.random.normal(ks[3], (2 * DIAG_CHANNEL, c), jnp.float32)
    p['da_conv_b'] = jnp.zeros((2 * DIAG_CHANNEL, 1), jnp.float32)
    p['gc_weight'] = 0.01 * jax.random.normal(ks[4], (c, c), jnp.float32)
    # Both output heads (out_conv/out_bn on x3, out_conv2/out_bn2 on x4) packed
    # block-diagonally: one matmul + one BN/relu pass over a (2*Cin, B*N) slab.
    w1 = 0.001 * jax.random.normal(ks[5], (cin, c), jnp.float32)
    w2 = 0.001 * jax.random.normal(ks[6], (cin, c), jnp.float32)
    zeros = jnp.zeros((cin, c), jnp.float32)
    p['head_w'] = jnp.concatenate(
        [jnp.concatenate([w1, zeros], axis=1),
         jnp.concatenate([zeros, w2], axis=1)], axis=0)                  # (2*Cin, 2*C)
    p['head_b'] = jnp.zeros((2 * cin, 1), jnp.float32)
    p['head_gamma'] = jnp.ones((2 * cin, 1), jnp.float32)
    p['head_beta'] = jnp.zeros((2 * cin, 1), jnp.float32)
    return p


def intra_graph_forward(params, x, d_flag, em_num=3, momentum=0.9):
    """Returns ((output, output2), new_state). d_flag is a static Python int (0 or 1)."""
    assert em_num >= 1
    b, c_in, w, h = x.shape
    n = w * h
    k = params['multi_proto_s'].shape[2]

    x_flat = x.reshape(b, c_in, n).astype(jnp.float32)
    if d_flag == 0:
        mu0, pi0 = params['multi_proto_s'], params['pi_s']
    else:
        mu0, pi0 = params['multi_proto_t'], params['pi_t']
    pi0_col = pi0.reshape(k, 1)     # free reshape to the kernel's (K, 1) layout

    out1, out2, mu_mean, pi_mean = fused_intra_graph_call(
        x_flat, params['in_conv_w'], params['in_conv_b'], mu0, pi0_col,
        params['da_conv_w'], params['da_conv_b'], params['gc_weight'],
        params['head_w'], params['head_b'], params['head_gamma'], params['head_beta'],
        em_num=em_num)

    # kernel emits (B, C, N) directly -> only trivial reshapes here (no transposes)
    output = out1.reshape(b, c_in, w, h)
    output2 = out2.reshape(b, c_in, w, h)

    # EMA buffer update (training-time side effect of the torch forward), returned as
    # functional state instead of in-place mutation.
    # TODO(synk): BatchNorm running_mean/running_var are not tracked (batch stats used).
    new_proto = momentum * mu0 + (1.0 - momentum) * mu_mean[None]
    new_pi = momentum * pi0 + (1.0 - momentum) * pi_mean.reshape(1, k)
    new_state = {'multi_proto': new_proto, 'pi': new_pi}
    return (output, output2), new_state


if __name__ == "__main__":
    in_channel, inner_channel, nodes_num, em_num, momentum = 4, 32, 64, 3, 0.9
    b, w, h = 2, 16, 16

    key = jax.random.PRNGKey(0)
    pkey, xkey = jax.random.split(key)
    params = init_params(pkey, in_channel, inner_channel, nodes_num)
    x = jax.random.normal(xkey, (b, in_channel, w, h), jnp.float32)

    fwd = jax.jit(
        functools.partial(intra_graph_forward, em_num=em_num, momentum=momentum),
        static_argnames=('d_flag',))
    (output, output2), new_state = fwd(params, x, d_flag=0)
    jax.block_until_ready((output, output2, new_state))

    assert output.shape == (b, in_channel, w, h)
    assert output2.shape == (b, in_channel, w, h)
    assert new_state['multi_proto'].shape == (1, inner_channel, nodes_num)
    assert new_state['pi'].shape == (1, nodes_num)
    assert bool(jnp.all(jnp.isfinite(output))) and bool(jnp.all(jnp.isfinite(output2)))
    print("KERNEL_OK")
</pallas_src>

<mosaic_0001>
module attributes {stable_mosaic.version = 11 : i64} {
  func.func @_intra_graph_kernel(%arg0: i32, %arg1: memref<1x4x256xf32, #tpu.memory_space<vmem>>, %arg2: memref<32x4xf32, #tpu.memory_space<vmem>>, %arg3: memref<32x1xf32, #tpu.memory_space<vmem>>, %arg4: memref<1x32x64xf32, #tpu.memory_space<vmem>>, %arg5: memref<64x1xf32, #tpu.memory_space<vmem>>, %arg6: memref<256x32xf32, #tpu.memory_space<vmem>>, %arg7: memref<256x1xf32, #tpu.memory_space<vmem>>, %arg8: memref<32x32xf32, #tpu.memory_space<vmem>>, %arg9: memref<8x64xf32, #tpu.memory_space<vmem>>, %arg10: memref<8x1xf32, #tpu.memory_space<vmem>>, %arg11: memref<8x1xf32, #tpu.memory_space<vmem>>, %arg12: memref<8x1xf32, #tpu.memory_space<vmem>>, %arg13: memref<2x4x256xf32, #tpu.memory_space<vmem>>, %arg14: memref<2x4x256xf32, #tpu.memory_space<vmem>>, %arg15: memref<32x64xf32, #tpu.memory_space<vmem>>, %arg16: memref<64x1xf32, #tpu.memory_space<vmem>>, %arg17: memref<64x512xf32, #tpu.memory_space<vmem>>, %arg18: memref<4x512xf32, #tpu.memory_space<vmem>>) attributes {dimension_semantics = [#tpu.dimension_semantics<arbitrary>], iteration_bounds = array<i64: 2>, scalar_prefetch = 0 : i64, scratch_operands = 2 : i64, tpu.core_type = #tpu.core_type<tc>, window_params = [{transform_indices = @transform_0, window_bounds = array<i64: 1, 4, 256>}, {pipeline_mode = #tpu.pipeline_mode<synchronous>, transform_indices = @transform_1, window_bounds = array<i64: 32, 4>}, {pipeline_mode = #tpu.pipeline_mode<synchronous>, transform_indices = @transform_2, window_bounds = array<i64: 32, 1>}, {pipeline_mode = #tpu.pipeline_mode<synchronous>, transform_indices = @transform_3, window_bounds = array<i64: 1, 32, 64>}, {pipeline_mode = #tpu.pipeline_mode<synchronous>, transform_indices = @transform_4, window_bounds = array<i64: 64, 1>}, {pipeline_mode = #tpu.pipeline_mode<synchronous>, transform_indices = @transform_5, window_bounds = array<i64: 256, 32>}, {pipeline_mode = #tpu.pipeline_mode<synchronous>, transform_indices = @transform_6, window_bounds = array<i64: 256, 1>}, {pipeline_mode = #tpu.pipeline_mode<synchronous>, transform_indices = @transform_7, window_bounds = array<i64: 32, 32>}, {pipeline_mode = #tpu.pipeline_mode<synchronous>, transform_indices = @transform_8, window_bounds = array<i64: 8, 64>}, {pipeline_mode = #tpu.pipeline_mode<synchronous>, transform_indices = @transform_9, window_bounds = array<i64: 8, 1>}, {pipeline_mode = #tpu.pipeline_mode<synchronous>, transform_indices = @transform_10, window_bounds = array<i64: 8, 1>}, {pipeline_mode = #tpu.pipeline_mode<synchronous>, transform_indices = @transform_11, window_bounds = array<i64: 8, 1>}, {pipeline_mode = #tpu.pipeline_mode<synchronous>, transform_indices = @transform_12, window_bounds = array<i64: 2, 4, 256>}, {pipeline_mode = #tpu.pipeline_mode<synchronous>, transform_indices = @transform_13, window_bounds = array<i64: 2, 4, 256>}, {pipeline_mode = #tpu.pipeline_mode<synchronous>, transform_indices = @transform_14, window_bounds = array<i64: 32, 64>}, {pipeline_mode = #tpu.pipeline_mode<synchronous>, transform_indices = @transform_15, window_bounds = array<i64: 64, 1>}]} {
    %c0 = arith.constant 0 : index
    %c0_0 = arith.constant 0 : index
    %c0_1 = arith.constant 0 : index
    %0 = vector.load %arg1[%c0, %c0_0, %c0_1] : memref<1x4x256xf32, #tpu.memory_space<vmem>>, vector<1x4x256xf32>
    %1 = vector.shape_cast %0 : vector<1x4x256xf32> to vector<4x256xf32>
    %c256_i32 = arith.constant 256 : i32
    %2 = arith.muli %arg0, %c256_i32 : i32
    %3 = tpu.assume_multiple %2, 256 : i32
    %c0_2 = arith.constant 0 : index
    %4 = arith.index_cast %3 : i32 to index
    %5 = vector.load %arg18[%c0_2, %4] : memref<4x512xf32, #tpu.memory_space<vmem>>, vector<4x256xf32>
    tpu.vector_store %arg18[%c0_2, %4], %1 {strides = array<i32>} : memref<4x512xf32, #tpu.memory_space<vmem>>, vector<4x256xf32>,
    %c0_3 = arith.constant 0 : index
    %c0_4 = arith.constant 0 : index
    %6 = vector.load %arg2[%c0_3, %c0_4] : memref<32x4xf32, #tpu.memory_space<vmem>>, vector<32x4xf32>
    %cst = arith.constant dense<0.000000e+00> : vector<32x256xf32>
    %7 = tpu.matmul %6, %1, %cst {dimension_numbers = #tpu.dot_dimension_numbers<[1], [0], [0], [1], [0, 0, 1, 1], [], []>} : vector<32x4xf32>, vector<4x256xf32>, vector<32x256xf32> -> vector<32x256xf32>
    %c0_5 = arith.constant 0 : index
    %c0_6 = arith.constant 0 : index
    %8 = vector.load %arg3[%c0_5, %c0_6] : memref<32x1xf32, #tpu.memory_space<vmem>>, vector<32x1xf32>
    %9 = vector.broadcast %8 : vector<32x1xf32> to vector<32x256xf32>
    %10 = arith.addf %7, %9 : vector<32x256xf32>
    %11 = tpu.transpose %10, [1, 0] : vector<32x256xf32> -> vector<256x32xf32>
    %c0_7 = arith.constant 0 : index
    %c0_8 = arith.constant 0 : index
    %c0_9 = arith.constant 0 : index
    %12 = vector.load %arg4[%c0_7, %c0_8, %c0_9] : memref<1x32x64xf32, #tpu.memory_space<vmem>>, vector<1x32x64xf32>
    %13 = vector.shape_cast %12 : vector<1x32x64xf32> to vector<32x64xf32>
    %14 = tpu.transpose %13, [1, 0] : vector<32x64xf32> -> vector<64x32xf32>
    %c0_10 = arith.constant 0 : index
    %c0_11 = arith.constant 0 : index
    %15 = vector.load %arg5[%c0_10, %c0_11] : memref<64x1xf32, #tpu.memory_space<vmem>>, vector<64x1xf32>
    %cst_12 = arith.constant dense<0.000000e+00> : vector<64x256xf32>
    %16 = tpu.matmul %14, %10, %cst_12 {dimension_numbers = #tpu.dot_dimension_numbers<[1], [0], [0], [1], [0, 0, 1, 1], [], []>} : vector<64x32xf32>, vector<32x256xf32>, vector<64x256xf32> -> vector<64x256xf32>
    %cst_13 = arith.constant dense<0xFF800000> : vector<256xf32>
    %17 = vector.multi_reduction <maximumf>, %16, %cst_13 [0] : vector<64x256xf32> to vector<256xf32>
    %18 = vector.shape_cast %17 : vector<256xf32> to vector<1x256xf32>
    %19 = vector.broadcast %18 : vector<1x256xf32> to vector<64x256xf32>
    %20 = arith.subf %16, %19 : vector<64x256xf32>
    %21 = math.exp %20 : vector<64x256xf32>
    %22 = vector.broadcast %15 : vector<64x1xf32> to vector<64x256xf32>
    %23 = arith.mulf %21, %22 : vector<64x256xf32>
    %cst_14 = arith.constant dense<0.000000e+00> : vector<256xf32>
    %24 = vector.multi_reduction <add>, %23, %cst_14 [0] : vector<64x256xf32> to vector<256xf32>
    %25 = vector.shape_cast %24 : vector<256xf32> to vector<1x256xf32>
    %cst_15 = arith.constant 1.000000e-18 : f32
    %26 = vector.broadcast %cst_15 : f32 to vector<1x256xf32>
    %27 = arith.addf %26, %25 : vector<1x256xf32>
    %28 = vector.broadcast %27 : vector<1x256xf32> to vector<64x256xf32>
    %29 = arith.divf %23, %28 : vector<64x256xf32>
    %cst_16 = arith.constant dense<0.000000e+00> : vector<64xf32>
    %30 = vector.multi_reduction <add>, %29, %cst_16 [1] : vector<64x256xf32> to vector<64xf32>
    %31 = vector.shape_cast %30 : vector<64xf32> to vector<64x1xf32>
    %cst_17 = arith.constant 1.000000e-18 : f32
    %32 = vector.broadcast %cst_17 : f32 to vector<64x1xf32>
    %33 = arith.addf %32, %31 : vector<64x1xf32>
    %34 = vector.broadcast %33 : vector<64x1xf32> to vector<64x256xf32>
    %35 = arith.divf %29, %34 : vector<64x256xf32>
    %cst_18 = arith.constant dense<0.000000e+00> : vector<64x32xf32>
    %36 = tpu.matmul %35, %11, %cst_18 {dimension_numbers = #tpu.dot_dimension_numbers<[1], [0], [0], [1], [0, 0, 1, 1], [], []>} : vector<64x256xf32>, vector<256x32xf32>, vector<64x32xf32> -> vector<64x32xf32>
    %cst_19 = arith.constant dense<0.000000e+00> : vector<64xf32>
    %37 = vector.multi_reduction <add>, %29, %cst_19 [1] : vector<64x256xf32> to vector<64xf32>
    %38 = vector.shape_cast %37 : vector<64xf32> to vector<64x1xf32>
    %cst_20 = arith.constant 3.906250e-03 : f32
    %39 = vector.broadcast %cst_20 : f32 to vector<64x1xf32>
    %40 = arith.mulf %38, %39 : vector<64x1xf32>
    %cst_21 = arith.constant dense<0.000000e+00> : vector<64x256xf32>
    %41 = tpu.matmul %36, %10, %cst_21 {dimension_numbers = #tpu.dot_dimension_numbers<[1], [0], [0], [1], [0, 0, 1, 1], [], []>} : vector<64x32xf32>, vector<32x256xf32>, vector<64x256xf32> -> vector<64x256xf32>
    %cst_22 = arith.constant dense<0xFF800000> : vector<256xf32>
    %42 = vector.multi_reduction <maximumf>, %41, %cst_22 [0] : vector<64x256xf32> to vector<256xf32>
    %43 = vector.shape_cast %42 : vector<256xf32> to vector<1x256xf32>
    %44 = vector.broadcast %43 : vector<1x256xf32> to vector<64x256xf32>
    %45 = arith.subf %41, %44 : vector<64x256xf32>
    %46 = math.exp %45 : vector<64x256xf32>
    %47 = vector.broadcast %40 : vector<64x1xf32> to vector<64x256xf32>
    %48 = arith.mulf %46, %47 : vector<64x256xf32>
    %cst_23 = arith.constant dense<0.000000e+00> : vector<256xf32>
    %49 = vector.multi_reduction <add>, %48, %cst_23 [0] : vector<64x256xf32> to vector<256xf32>
    %50 = vector.shape_cast %49 : vector<256xf32> to vector<1x256xf32>
    %cst_24 = arith.constant 1.000000e-18 : f32
    %51 = vector.broadcast %cst_24 : f32 to vector<1x256xf32>
    %52 = arith.addf %51, %50 : vector<1x256xf32>
    %53 = vector.broadcast %52 : vector<1x256xf32> to vector<64x256xf32>
    %54 = arith.divf %48, %53 : vector<64x256xf32>
    %cst_25 = arith.constant dense<0.000000e+00> : vector<64xf32>
    %55 = vector.multi_reduction <add>, %54, %cst_25 [1] : vector<64x256xf32> to vector<64xf32>
    %56 = vector.shape_cast %55 : vector<64xf32> to vector<64x1xf32>
    %cst_26 = arith.constant 1.000000e-18 : f32
    %57 = vector.broadcast %cst_26 : f32 to vector<64x1xf32>
    %58 = arith.addf %57, %56 : vector<64x1xf32>
    %59 = vector.broadcast %58 : vector<64x1xf32> to vector<64x256xf32>
    %60 = arith.divf %54, %59 : vector<64x256xf32>
    %cst_27 = arith.constant dense<0.000000e+00> : vector<64x32xf32>
    %61 = tpu.matmul %60, %11, %cst_27 {dimension_numbers = #tpu.dot_dimension_numbers<[1], [0], [0], [1], [0, 0, 1, 1], [], []>} : vector<64x256xf32>, vector<256x32xf32>, vector<64x32xf32> -> vector<64x32xf32>
    %cst_28 = arith.constant dense<0.000000e+00> : vector<64xf32>
    %62 = vector.multi_reduction <add>, %54, %cst_28 [1] : vector<64x256xf32> to vector<64xf32>
    %63 = vector.shape_cast %62 : vector<64xf32> to vector<64x1xf32>
    %cst_29 = arith.constant 3.906250e-03 : f32
    %64 = vector.broadcast %cst_29 : f32 to vector<64x1xf32>
    %65 = arith.mulf %63, %64 : vector<64x1xf32>
    %cst_30 = arith.constant dense<0.000000e+00> : vector<64x256xf32>
    %66 = tpu.matmul %61, %10, %cst_30 {dimension_numbers = #tpu.dot_dimension_numbers<[1], [0], [0], [1], [0, 0, 1, 1], [], []>} : vector<64x32xf32>, vector<32x256xf32>, vector<64x256xf32> -> vector<64x256xf32>
    %cst_31 = arith.constant dense<0xFF800000> : vector<256xf32>
    %67 = vector.multi_reduction <maximumf>, %66, %cst_31 [0] : vector<64x256xf32> to vector<256xf32>
    %68 = vector.shape_cast %67 : vector<256xf32> to vector<1x256xf32>
    %69 = vector.broadcast %68 : vector<1x256xf32> to vector<64x256xf32>
    %70 = arith.subf %66, %69 : vector<64x256xf32>
    %71 = math.exp %70 : vector<64x256xf32>
    %72 = vector.broadcast %65 : vector<64x1xf32> to vector<64x256xf32>
    %73 = arith.mulf %71, %72 : vector<64x256xf32>
    %cst_32 = arith.constant dense<0.000000e+00> : vector<256xf32>
    %74 = vector.multi_reduction <add>, %73, %cst_32 [0] : vector<64x256xf32> to vector<256xf32>
    %75 = vector.shape_cast %74 : vector<256xf32> to vector<1x256xf32>
    %cst_33 = arith.constant 1.000000e-18 : f32
    %76 = vector.broadcast %cst_33 : f32 to vector<1x256xf32>
    %77 = arith.addf %76, %75 : vector<1x256xf32>
    %78 = vector.broadcast %77 : vector<1x256xf32> to vector<64x256xf32>
    %79 = arith.divf %73, %78 : vector<64x256xf32>
    %cst_34 = arith.constant dense<0.000000e+00> : vector<64xf32>
    %80 = vector.multi_reduction <add>, %79, %cst_34 [1] : vector<64x256xf32> to vector<64xf32>
    %81 = vector.shape_cast %80 : vector<64xf32> to vector<64x1xf32>
    %cst_35 = arith.constant 1.000000e-18 : f32
    %82 = vector.broadcast %cst_35 : f32 to vector<64x1xf32>
    %83 = arith.addf %82, %81 : vector<64x1xf32>
    %84 = vector.broadcast %83 : vector<64x1xf32> to vector<64x256xf32>
    %85 = arith.divf %79, %84 : vector<64x256xf32>
    %cst_36 = arith.constant dense<0.000000e+00> : vector<64x32xf32>
    %86 = tpu.matmul %85, %11, %cst_36 {dimension_numbers = #tpu.dot_dimension_numbers<[1], [0], [0], [1], [0, 0, 1, 1], [], []>} : vector<64x256xf32>, vector<256x32xf32>, vector<64x32xf32> -> vector<64x32xf32>
    %cst_37 = arith.constant dense<0.000000e+00> : vector<64xf32>
    %87 = vector.multi_reduction <add>, %79, %cst_37 [1] : vector<64x256xf32> to vector<64xf32>
    %88 = vector.shape_cast %87 : vector<64xf32> to vector<64x1xf32>
    %cst_38 = arith.constant 3.906250e-03 : f32
    %89 = vector.broadcast %cst_38 : f32 to vector<64x1xf32>
    %90 = arith.mulf %88, %89 : vector<64x1xf32>
    %91 = tpu.transpose %86, [1, 0] : vector<64x32xf32> -> vector<32x64xf32>
    %c0_i32 = arith.constant 0 : i32
    %92 = arith.cmpi eq, %arg0, %c0_i32 : i32
    %93 = arith.extui %92 : i1 to i32
    %c0_i32_39 = arith.constant 0 : i32
    %94 = arith.cmpi ne, %93, %c0_i32_39 : i32
    scf.if %94 {
      %cst_76 = arith.constant 0.000000e+00 : f32
      %166 = vector.broadcast %cst_76 : f32 to vector<32x64xf32>
      %c0_77 = arith.constant 0 : index
      %c0_78 = arith.constant 0 : index
      %167 = vector.load %arg15[%c0_77, %c0_78] : memref<32x64xf32, #tpu.memory_space<vmem>>, vector<32x64xf32>
      tpu.vector_store %arg15[%c0_77, %c0_78], %166 {strides = array<i32>} : memref<32x64xf32, #tpu.memory_space<vmem>>, vector<32x64xf32>,
      %cst_79 = arith.constant 0.000000e+00 : f32
      %168 = vector.broadcast %cst_79 : f32 to vector<64x1xf32>
      %c0_80 = arith.constant 0 : index
      %c0_81 = arith.constant 0 : index
      %169 = vector.load %arg16[%c0_80, %c0_81] : memref<64x1xf32, #tpu.memory_space<vmem>>, vector<64x1xf32>
      tpu.vector_store %arg16[%c0_80, %c0_81], %168 {strides = array<i32>} : memref<64x1xf32, #tpu.memory_space<vmem>>, vector<64x1xf32>,
    } else {
    }
    %c0_40 = arith.constant 0 : index
    %c0_41 = arith.constant 0 : index
    %95 = vector.load %arg15[%c0_40, %c0_41] : memref<32x64xf32, #tpu.memory_space<vmem>>, vector<32x64xf32>
    %cst_42 = arith.constant 5.000000e-01 : f32
    %96 = vector.broadcast %cst_42 : f32 to vector<32x64xf32>
    %97 = arith.mulf %91, %96 : vector<32x64xf32>
    %98 = arith.addf %95, %97 : vector<32x64xf32>
    %c0_43 = arith.constant 0 : index
    %c0_44 = arith.constant 0 : index
    %99 = vector.load %arg15[%c0_43, %c0_44] : memref<32x64xf32, #tpu.memory_space<vmem>>, vector<32x64xf32>
    tpu.vector_store %arg15[%c0_43, %c0_44], %98 {strides = array<i32>} : memref<32x64xf32, #tpu.memory_space<vmem>>, vector<32x64xf32>,
    %c0_45 = arith.constant 0 : index
    %c0_46 = arith.constant 0 : index
    %100 = vector.load %arg16[%c0_45, %c0_46] : memref<64x1xf32, #tpu.memory_space<vmem>>, vector<64x1xf32>
    %cst_47 = arith.constant 5.000000e-01 : f32
    %101 = vector.broadcast %cst_47 : f32 to vector<64x1xf32>
    %102 = arith.mulf %90, %101 : vector<64x1xf32>
    %103 = arith.addf %100, %102 : vector<64x1xf32>
    %c0_48 = arith.constant 0 : index
    %c0_49 = arith.constant 0 : index
    %104 = vector.load %arg16[%c0_48, %c0_49] : memref<64x1xf32, #tpu.memory_space<vmem>>, vector<64x1xf32>
    tpu.vector_store %arg16[%c0_48, %c0_49], %103 {strides = array<i32>} : memref<64x1xf32, #tpu.memory_space<vmem>>, vector<64x1xf32>,
    %c0_50 = arith.constant 0 : index
    %c0_51 = arith.constant 0 : index
    %105 = vector.load %arg6[%c0_50, %c0_51] : memref<256x32xf32, #tpu.memory_space<vmem>>, vector<256x32xf32>
    %cst_52 = arith.constant dense<0.000000e+00> : vector<256x64xf32>
    %106 = tpu.matmul %105, %91, %cst_52 {dimension_numbers = #tpu.dot_dimension_numbers<[1], [0], [0], [1], [0, 0, 1, 1], [], []>} : vector<256x32xf32>, vector<32x64xf32>, vector<256x64xf32> -> vector<256x64xf32>
    %c0_53 = arith.constant 0 : index
    %c0_54 = arith.constant 0 : index
    %107 = vector.load %arg7[%c0_53, %c0_54] : memref<256x1xf32, #tpu.memory_space<vmem>>, vector<256x1xf32>
    %108 = vector.broadcast %107 : vector<256x1xf32> to vector<256x64xf32>
    %109 = arith.addf %106, %108 : vector<256x64xf32>
    %110 = vector.extract_strided_slice %109 {offsets = [0, 0], sizes = [128, 64], strides = [1, 1]} : vector<256x64xf32> to vector<128x64xf32>
    %111 = vector.extract_strided_slice %109 {offsets = [128, 0], sizes = [128, 64], strides = [1, 1]} : vector<256x64xf32> to vector<128x64xf32>
    %cst_55 = arith.constant dense<0.000000e+00> : vector<128xf32>
    %112 = vector.multi_reduction <add>, %110, %cst_55 [1] : vector<128x64xf32> to vector<128xf32>
    %113 = vector.shape_cast %112 : vector<128xf32> to vector<128x1xf32>
    %cst_56 = arith.constant 6.400000e+01 : f32
    %114 = vector.broadcast %cst_56 : f32 to vector<128x1xf32>
    %115 = arith.divf %113, %114 : vector<128x1xf32>
    %116 = arith.negf %115 : vector<128x1xf32>
    %117 = math.exp %116 : vector<128x1xf32>
    %cst_57 = arith.constant 1.000000e+00 : f32
    %118 = vector.broadcast %cst_57 : f32 to vector<128x1xf32>
    %119 = arith.addf %118, %117 : vector<128x1xf32>
    %120 = arith.divf %118, %119 : vector<128x1xf32>
    %cst_58 = arith.constant dense<0.000000e+00> : vector<64xf32>
    %121 = vector.multi_reduction <add>, %111, %cst_58 [0] : vector<128x64xf32> to vector<64xf32>
    %122 = vector.shape_cast %121 : vector<64xf32> to vector<1x64xf32>
    %cst_59 = arith.constant 5.000000e-01 : f32
    %123 = vector.broadcast %cst_59 : f32 to vector<1x64xf32>
    %124 = arith.mulf %123, %122 : vector<1x64xf32>
    %cst_60 = arith.constant 5.000000e-01 : f32
    %125 = vector.broadcast %cst_60 : f32 to vector<128x1xf32>
    %126 = arith.subf %120, %125 : vector<128x1xf32>
    %127 = vector.broadcast %126 : vector<128x1xf32> to vector<128x64xf32>
    %128 = arith.mulf %127, %111 : vector<128x64xf32>
    %129 = vector.broadcast %124 : vector<1x64xf32> to vector<128x64xf32>
    %130 = arith.addf %129, %128 : vector<128x64xf32>
    %cst_61 = arith.constant dense<0.000000e+00> : vector<64x64xf32>
    %131 = tpu.matmul %111, %130, %cst_61 {dimension_numbers = #tpu.dot_dimension_numbers<[0], [0], [1], [1], [0, 1, 1, 1], [], []>} : vector<128x64xf32>, vector<128x64xf32>, vector<64x64xf32> -> vector<64x64xf32>
    %cst_62 = arith.constant 0.000000e+00 : f32
    %132 = vector.broadcast %cst_62 : f32 to vector<64x64xf32>
    %133 = arith.maximumf %131, %132 : vector<64x64xf32>
    %134 = tpu.iota {dimensions = array<i32: 0>} : vector<64x64xi32>
    %135 = tpu.iota {dimensions = array<i32: 1>} : vector<64x64xi32>
    %136 = arith.cmpi eq, %134, %135 : vector<64x64xi32>
    %cst_63 = arith.constant 1.000000e+00 : f32
    %cst_64 = arith.constant 0.000000e+00 : f32
    %137 = vector.broadcast %cst_63 : f32 to vector<64x64xf32>
    %138 = vector.broadcast %cst_64 : f32 to vector<64x64xf32>
    %139 = arith.select %136, %137, %138 : vector<64x64xi1>, vector<64x64xf32>
    %140 = arith.addf %133, %139 : vector<64x64xf32>
    %cst_65 = arith.constant dense<0.000000e+00> : vector<64xf32>
    %141 = vector.multi_reduction <add>, %140, %cst_65 [1] : vector<64x64xf32> to vector<64xf32>
    %142 = vector.shape_cast %141 : vector<64xf32> to vector<64x1xf32>
    %143 = math.rsqrt %142 : vector<64x1xf32>
    %cst_66 = arith.constant dense<0.000000e+00> : vector<64xf32>
    %144 = vector.multi_reduction <add>, %140, %cst_66 [0] : vector<64x64xf32> to vector<64xf32>
    %145 = vector.shape_cast %144 : vector<64xf32> to vector<1x64xf32>
    %146 = math.rsqrt %145 : vector<1x64xf32>
    %147 = vector.broadcast %143 : vector<64x1xf32> to vector<64x64xf32>
    %148 = arith.mulf %140, %147 : vector<64x64xf32>
    %149 = vector.broadcast %146 : vector<1x64xf32> to vector<64x64xf32>
    %150 = arith.mulf %148, %149 : vector<64x64xf32>
    %c0_67 = arith.constant 0 : index
    %c0_68 = arith.constant 0 : index
    %151 = vector.load %arg8[%c0_67, %c0_68] : memref<32x32xf32, #tpu.memory_space<vmem>>, vector<32x32xf32>
    %cst_69 = arith.constant dense<0.000000e+00> : vector<32x64xf32>
    %152 = tpu.matmul %91, %150, %cst_69 {dimension_numbers = #tpu.dot_dimension_numbers<[1], [0], [0], [1], [0, 0, 1, 1], [], []>} : vector<32x64xf32>, vector<64x64xf32>, vector<32x64xf32> -> vector<32x64xf32>
    %cst_70 = arith.constant dense<0.000000e+00> : vector<32x64xf32>
    %153 = tpu.matmul %151, %152, %cst_70 {dimension_numbers = #tpu.dot_dimension_numbers<[1], [0], [0], [1], [0, 0, 1, 1], [], []>} : vector<32x32xf32>, vector<32x64xf32>, vector<32x64xf32> -> vector<32x64xf32>
    %cst_71 = arith.constant 0.000000e+00 : f32
    %154 = vector.broadcast %cst_71 : f32 to vector<32x64xf32>
    %155 = arith.maximumf %153, %154 : vector<32x64xf32>
    %156 = arith.addf %155, %91 : vector<32x64xf32>
    %cst_72 = arith.constant dense<0.000000e+00> : vector<32x256xf32>
    %157 = tpu.matmul %156, %79, %cst_72 {dimension_numbers = #tpu.dot_dimension_numbers<[1], [0], [0], [1], [0, 0, 1, 1], [], []>} : vector<32x64xf32>, vector<64x256xf32>, vector<32x256xf32> -> vector<32x256xf32>
    %c0_73 = arith.constant 0 : index
    %158 = arith.index_cast %3 : i32 to index
    %159 = vector.load %arg17[%c0_73, %158] : memref<64x512xf32, #tpu.memory_space<vmem>>, vector<32x256xf32>
    tpu.vector_store %arg17[%c0_73, %158], %157 {strides = array<i32>} : memref<64x512xf32, #tpu.memory_space<vmem>>, vector<32x256xf32>,
    %cst_74 = arith.constant dense<0.000000e+00> : vector<32x256xf32>
    %160 = tpu.matmul %91, %79, %cst_74 {dimension_numbers = #tpu.dot_dimension_numbers<[1], [0], [0], [1], [0, 0, 1, 1], [], []>} : vector<32x64xf32>, vector<64x256xf32>, vector<32x256xf32> -> vector<32x256xf32>
    %c32 = arith.constant 32 : index
    %161 = arith.index_cast %3 : i32 to index
    %162 = vector.load %arg17[%c32, %161] : memref<64x512xf32, #tpu.memory_space<vmem>>, vector<32x256xf32>
    tpu.vector_store %arg17[%c32, %161], %160 {strides = array<i32>} : memref<64x512xf32, #tpu.memory_space<vmem>>, vector<32x256xf32>,
    %c1_i32 = arith.constant 1 : i32
    %163 = arith.cmpi eq, %arg0, %c1_i32 : i32
    %164 = arith.extui %163 : i1 to i32
    %c0_i32_75 = arith.constant 0 : i32
    %165 = arith.cmpi ne, %164, %c0_i32_75 : i32
    scf.if %165 {
      %c0_76 = arith.constant 0 : index
      %c0_77 = arith.constant 0 : index
      %166 = vector.load %arg9[%c0_76, %c0_77] : memref<8x64xf32, #tpu.memory_space<vmem>>, vector<8x64xf32>
      %c0_78 = arith.constant 0 : index
      %c0_79 = arith.constant 0 : index
      %167 = vector.load %arg17[%c0_78, %c0_79] : memref<64x512xf32, #tpu.memory_space<vmem>>, vector<64x512xf32>
      %cst_80 = arith.constant dense<0.000000e+00> : vector<8x512xf32>
      %168 = tpu.matmul %166, %167, %cst_80 {dimension_numbers = #tpu.dot_dimension_numbers<[1], [0], [0], [1], [0, 0, 1, 1], [], []>} : vector<8x64xf32>, vector<64x512xf32>, vector<8x512xf32> -> vector<8x512xf32>
      %c0_81 = arith.constant 0 : index
      %c0_82 = arith.constant 0 : index
      %169 = vector.load %arg10[%c0_81, %c0_82] : memref<8x1xf32, #tpu.memory_space<vmem>>, vector<8x1xf32>
      %170 = vector.broadcast %169 : vector<8x1xf32> to vector<8x512xf32>
      %171 = arith.addf %168, %170 : vector<8x512xf32>
      %cst_83 = arith.constant dense<0.000000e+00> : vector<8xf32>
      %172 = vector.multi_reduction <add>, %171, %cst_83 [1] : vector<8x512xf32> to vector<8xf32>
      %173 = vector.shape_cast %172 : vector<8xf32> to vector<8x1xf32>
      %cst_84 = arith.constant 5.120000e+02 : f32
      %174 = vector.broadcast %cst_84 : f32 to vector<8x1xf32>
      %175 = arith.divf %173, %174 : vector<8x1xf32>
      %176 = vector.broadcast %175 : vector<8x1xf32> to vector<8x512xf32>
      %177 = arith.subf %171, %176 : vector<8x512xf32>
      %178 = arith.mulf %177, %177 : vector<8x512xf32>
      %cst_85 = arith.constant dense<0.000000e+00> : vector<8xf32>
      %179 = vector.multi_reduction <add>, %178, %cst_85 [1] : vector<8x512xf32> to vector<8xf32>
      %180 = vector.shape_cast %179 : vector<8xf32> to vector<8x1xf32>
      %cst_86 = arith.constant 5.120000e+02 : f32
      %181 = vector.broadcast %cst_86 : f32 to vector<8x1xf32>
      %182 = arith.divf %180, %181 : vector<8x1xf32>
      %183 = vector.broadcast %175 : vector<8x1xf32> to vector<8x512xf32>
      %184 = arith.subf %171, %183 : vector<8x512xf32>
      %cst_87 = arith.constant 9.99999974E-6 : f32
      %185 = vector.broadcast %cst_87 : f32 to vector<8x1xf32>
      %186 = arith.addf %182, %185 : vector<8x1xf32>
      %187 = math.rsqrt %186 : vector<8x1xf32>
      %188 = vector.broadcast %187 : vector<8x1xf32> to vector<8x512xf32>
      %189 = arith.mulf %184, %188 : vector<8x512xf32>
      %c0_88 = arith.constant 0 : index
      %c0_89 = arith.constant 0 : index
      %190 = vector.load %arg11[%c0_88, %c0_89] : memref<8x1xf32, #tpu.memory_space<vmem>>, vector<8x1xf32>
      %191 = vector.broadcast %190 : vector<8x1xf32> to vector<8x512xf32>
      %192 = arith.mulf %189, %191 : vector<8x512xf32>
      %c0_90 = arith.constant 0 : index
      %c0_91 = arith.constant 0 : index
      %193 = vector.load %arg12[%c0_90, %c0_91] : memref<8x1xf32, #tpu.memory_space<vmem>>, vector<8x1xf32>
      %194 = vector.broadcast %193 : vector<8x1xf32> to vector<8x512xf32>
      %195 = arith.addf %192, %194 : vector<8x512xf32>
      %cst_92 = arith.constant 0.000000e+00 : f32
      %196 = vector.broadcast %cst_92 : f32 to vector<8x512xf32>
      %197 = arith.maximumf %195, %196 : vector<8x512xf32>
      %c0_93 = arith.constant 0 : index
      %c0_94 = arith.constant 0 : index
      %198 = vector.load %arg18[%c0_93, %c0_94] : memref<4x512xf32, #tpu.memory_space<vmem>>, vector<4x512xf32>
      %199 = vector.extract_strided_slice %197 {offsets = [0, 0], sizes = [4, 512], strides = [1, 1]} : vector<8x512xf32> to vector<4x512xf32>
      %200 = arith.addf %199, %198 : vector<4x512xf32>
      %201 = vector.extract_strided_slice %197 {offsets = [4, 0], sizes = [4, 512], strides = [1, 1]} : vector<8x512xf32> to vector<4x512xf32>
      %202 = arith.addf %201, %198 : vector<4x512xf32>
      %203 = vector.extract_strided_slice %200 {offsets = [0, 0], sizes = [4, 256], strides = [1, 1]} : vector<4x512xf32> to vector<4x256xf32>
      %c0_95 = arith.constant 0 : index
      %c0_96 = arith.constant 0 : index
      %c0_97 = arith.constant 0 : index
      %204 = vector.load %arg13[%c0_95, %c0_96, %c0_97] : memref<2x4x256xf32, #tpu.memory_space<vmem>>, vector<1x4x256xf32>
      %205 = vector.shape_cast %204 : vector<1x4x256xf32> to vector<4x256xf32>
      %206 = vector.shape_cast %203 : vector<4x256xf32> to vector<1x4x256xf32>
      tpu.vector_store %arg13[%c0_95, %c0_96, %c0_97], %206 {strides = array<i32>} : memref<2x4x256xf32, #tpu.memory_space<vmem>>, vector<1x4x256xf32>,
      %207 = vector.extract_strided_slice %202 {offsets = [0, 0], sizes = [4, 256], strides = [1, 1]} : vector<4x512xf32> to vector<4x256xf32>
      %c0_98 = arith.constant 0 : index
      %c0_99 = arith.constant 0 : index
      %c0_100 = arith.constant 0 : index
      %208 = vector.load %arg14[%c0_98, %c0_99, %c0_100] : memref<2x4x256xf32, #tpu.memory_space<vmem>>, vector<1x4x256xf32>
      %209 = vector.shape_cast %208 : vector<1x4x256xf32> to vector<4x256xf32>
      %210 = vector.shape_cast %207 : vector<4x256xf32> to vector<1x4x256xf32>
      tpu.vector_store %arg14[%c0_98, %c0_99, %c0_100], %210 {strides = array<i32>} : memref<2x4x256xf32, #tpu.memory_space<vmem>>, vector<1x4x256xf32>,
      %211 = vector.extract_strided_slice %200 {offsets = [0, 256], sizes = [4, 256], strides = [1, 1]} : vector<4x512xf32> to vector<4x256xf32>
      %c1 = arith.constant 1 : index
      %c0_101 = arith.constant 0 : index
      %c0_102 = arith.constant 0 : index
      %212 = vector.load %arg13[%c1, %c0_101, %c0_102] : memref<2x4x256xf32, #tpu.memory_space<vmem>>, vector<1x4x256xf32>
      %213 = vector.shape_cast %212 : vector<1x4x256xf32> to vector<4x256xf32>
      %214 = vector.shape_cast %211 : vector<4x256xf32> to vector<1x4x256xf32>
      tpu.vector_store %arg13[%c1, %c0_101, %c0_102], %214 {strides = array<i32>} : memref<2x4x256xf32, #tpu.memory_space<vmem>>, vector<1x4x256xf32>,
      %215 = vector.extract_strided_slice %202 {offsets = [0, 256], sizes = [4, 256], strides = [1, 1]} : vector<4x512xf32> to vector<4x256xf32>
      %c1_103 = arith.constant 1 : index
      %c0_104 = arith.constant 0 : index
      %c0_105 = arith.constant 0 : index
      %216 = vector.load %arg14[%c1_103, %c0_104, %c0_105] : memref<2x4x256xf32, #tpu.memory_space<vmem>>, vector<1x4x256xf32>
      %217 = vector.shape_cast %216 : vector<1x4x256xf32> to vector<4x256xf32>
      %218 = vector.shape_cast %215 : vector<4x256xf32> to vector<1x4x256xf32>
      tpu.vector_store %arg14[%c1_103, %c0_104, %c0_105], %218 {strides = array<i32>} : memref<2x4x256xf32, #tpu.memory_space<vmem>>, vector<1x4x256xf32>,
    } else {
    }
    return
  }
  func.func @transform_0(%arg0: i32) -> (i32, i32, i32) {
    %c0_i32 = arith.constant 0 : i32
    %c0_i32_0 = arith.constant 0 : i32
    %c0_i32_1 = arith.constant 0 : i32
    return %arg0, %c0_i32, %c0_i32_0 : i32, i32, i32
  }
  func.func @transform_1(%arg0: i32) -> (i32, i32) {
    %c0_i32 = arith.constant 0 : i32
    %c0_i32_0 = arith.constant 0 : i32
    %c0_i32_1 = arith.constant 0 : i32
    return %c0_i32, %c0_i32_0 : i32, i32
  }
  func.func @transform_2(%arg0: i32) -> (i32, i32) {
    %c0_i32 = arith.constant 0 : i32
    %c0_i32_0 = arith.constant 0 : i32
    %c0_i32_1 = arith.constant 0 : i32
    return %c0_i32, %c0_i32_0 : i32, i32
  }
  func.func @transform_3(%arg0: i32) -> (i32, i32, i32) {
    %c0_i32 = arith.constant 0 : i32
    %c0_i32_0 = arith.constant 0 : i32
    %c0_i32_1 = arith.constant 0 : i32
    %c0_i32_2 = arith.constant 0 : i32
    return %c0_i32, %c0_i32_0, %c0_i32_1 : i32, i32, i32
  }
  func.func @transform_4(%arg0: i32) -> (i32, i32) {
    %c0_i32 = arith.constant 0 : i32
    %c0_i32_0 = arith.constant 0 : i32
    %c0_i32_1 = arith.constant 0 : i32
    return %c0_i32, %c0_i32_0 : i32, i32
  }
  func.func @transform_5(%arg0: i32) -> (i32, i32) {
    %c0_i32 = arith.constant 0 : i32
    %c0_i32_0 = arith.constant 0 : i32
    %c0_i32_1 = arith.constant 0 : i32
    return %c0_i32, %c0_i32_0 : i32, i32
  }
  func.func @transform_6(%arg0: i32) -> (i32, i32) {
    %c0_i32 = arith.constant 0 : i32
    %c0_i32_0 = arith.constant 0 : i32
    %c0_i32_1 = arith.constant 0 : i32
    return %c0_i32, %c0_i32_0 : i32, i32
  }
  func.func @transform_7(%arg0: i32) -> (i32, i32) {
    %c0_i32 = arith.constant 0 : i32
    %c0_i32_0 = arith.constant 0 : i32
    %c0_i32_1 = arith.constant 0 : i32
    return %c0_i32, %c0_i32_0 : i32, i32
  }
  func.func @transform_8(%arg0: i32) -> (i32, i32) {
    %c0_i32 = arith.constant 0 : i32
    %c0_i32_0 = arith.constant 0 : i32
    %c0_i32_1 = arith.constant 0 : i32
    return %c0_i32, %c0_i32_0 : i32, i32
  }
  func.func @transform_9(%arg0: i32) -> (i32, i32) {
    %c0_i32 = arith.constant 0 : i32
    %c0_i32_0 = arith.constant 0 : i32
    %c0_i32_1 = arith.constant 0 : i32
    return %c0_i32, %c0_i32_0 : i32, i32
  }
  func.func @transform_10(%arg0: i32) -> (i32, i32) {
    %c0_i32 = arith.constant 0 : i32
    %c0_i32_0 = arith.constant 0 : i32
    %c0_i32_1 = arith.constant 0 : i32
    return %c0_i32, %c0_i32_0 : i32, i32
  }
  func.func @transform_11(%arg0: i32) -> (i32, i32) {
    %c0_i32 = arith.constant 0 : i32
    %c0_i32_0 = arith.constant 0 : i32
    %c0_i32_1 = arith.constant 0 : i32
    return %c0_i32, %c0_i32_0 : i32, i32
  }
  func.func @transform_12(%arg0: i32) -> (i32, i32, i32) {
    %c0_i32 = arith.constant 0 : i32
    %c0_i32_0 = arith.constant 0 : i32
    %c0_i32_1 = arith.constant 0 : i32
    %c0_i32_2 = arith.constant 0 : i32
    return %c0_i32, %c0_i32_0, %c0_i32_1 : i32, i32, i32
  }
  func.func @transform_13(%arg0: i32) -> (i32, i32, i32) {
    %c0_i32 = arith.constant 0 : i32
    %c0_i32_0 = arith.constant 0 : i32
    %c0_i32_1 = arith.constant 0 : i32
    %c0_i32_2 = arith.constant 0 : i32
    return %c0_i32, %c0_i32_0, %c0_i32_1 : i32, i32, i32
  }
  func.func @transform_14(%arg0: i32) -> (i32, i32) {
    %c0_i32 = arith.constant 0 : i32
    %c0_i32_0 = arith.constant 0 : i32
    %c0_i32_1 = arith.constant 0 : i32
    return %c0_i32, %c0_i32_0 : i32, i32
  }
  func.func @transform_15(%arg0: i32) -> (i32, i32) {
    %c0_i32 = arith.constant 0 : i32
    %c0_i32_0 = arith.constant 0 : i32
    %c0_i32_1 = arith.constant 0 : i32
    return %c0_i32, %c0_i32_0 : i32, i32
  }
}

</mosaic_0001>

<bundles_post_ra>
// kernel: intra_graph_forward.1
= control target key start
LH: loop header
LB: loop body
LE: loop exit
PB: predicated region body
PF: predicated region fallthrough
CT: control target
= control target key end

     0   :  { %s4791_s18 = smov 0   ;;  %s6089_s0 = inlined_call_operand.vmem [shape: f32[2,4,256], index: 0, kind: input, shape index: {}]   ;;  %s6090_s1 = inlined_call_operand.vmem [shape: f32[32,4], index: 1, kind: input, shape index: {}]   ;;  %s6091_s2 = inlined_call_operand.vmem [shape: f32[32,1], index: 2, kind: input, shape index: {}]   ;;  %s6092_s3 = inlined_call_operand.vmem [shape: f32[1,32,64], index: 3, kind: input, shape index: {}]   ;;  %s6093_s4 = inlined_call_operand.vmem [shape: f32[64,1], index: 4, kind: input, shape index: {}]   ;;  %s6094_s5 = inlined_call_operand.vmem [shape: f32[256,32], index: 5, kind: input, shape index: {}]   ;;  %s6095_s6 = inlined_call_operand.vmem [shape: f32[256,1], index: 6, kind: input, shape index: {}]   ;;  %s6096_s7 = inlined_call_operand.vmem [shape: f32[32,32], index: 7, kind: input, shape index: {}]   ;;  %s6097_s8 = inlined_call_operand.vmem [shape: f32[8,64], index: 8, kind: input, shape index: {}]   ;;  %s6098_s9 = inlined_call_operand.vmem [shape: f32[8,1], index: 9, kind: input, shape index: {}]   ;;  %s6099_s10 = inlined_call_operand.vmem [shape: f32[8,1], index: 10, kind: input, shape index: {}]   ;;  %s6100_s11 = inlined_call_operand.vmem [shape: f32[8,1], index: 11, kind: input, shape index: {}]   ;;  %s6101_s12 = inlined_call_operand.vmem [shape: f32[2,4,256], index: 12, kind: output, shape index: {0}]   ;;  %s6102_s13 = inlined_call_operand.vmem [shape: f32[2,4,256], index: 13, kind: output, shape index: {1}]   ;;  %s6103_s14 = inlined_call_operand.vmem [shape: f32[32,64], index: 14, kind: output, shape index: {2}]   ;;  %s6104_s15 = inlined_call_operand.vmem [shape: f32[64,1], index: 15, kind: output, shape index: {3}]  }
   0x1 LB: > { %6109 = sst [smem:[#allocation4_spill]] %s4704_s18  ;;  %s4797_s19 = sadd.s32 4294967295, %s4704_s18   ;;  %s4704_s18 = sphi %s4791_s18, %s26_s18  }
   0x2   : > { %p3909_p0 = scmp.ge.s32.totalorder %s4704_s18, 1  ;;  %p424_p1 = scmp.lt.s32.totalorder %s4704_s18, 3 }
   0x4   : > { %p425_p2 = pnand %p3909_p0, %p424_p1 }
   0x6   : > { %428 = sbr.rel (%p425_p2) target bundleno = 4704 (0x1260), region = 68 }
   0xd   : > { %p467_p3 = scmp.lt.s32.totalorder %s4797_s19, 1  ;;  %s3912_s20 = sshll.u32 %s4797_s19, 8  ;;  %v6106_v0 = vmov 0.0   ;;  %v4707_v1 = vmov 0   ;;  %v485_v2 = vld [vmem:[%s6091_s2 + $0x10] sm:$0xff]  ;;  %v483_v3 = vld [vmem:[%s6091_s2] sm:$0xff] }
   0xe   : > { %s4803_s21 = sshra.s32 %s3912_s20, 7  ;;  %591 = vmatprep.mubr.f32.mxu0 %v6106_v0  ;;  %749 = vmatprep.mubr.f32.mxu1 %v6106_v0  ;;  %v486_v4 = vld [vmem:[%s6091_s2 + $0x18] sm:$0xff]  ;;  %v484_v5 = vld [vmem:[%s6091_s2 + $0x8] sm:$0xff]  ;;  %vm522_vm0 = vcmask 1043456   ;;  %v479_v8 = vld [vmem:[%s6090_s1] sm:$0xff]  ;;  %vm509_vm1 = vcmask 31744  }
   0xf   : > { %s468_s22 = scalar_select %p467_p3, %s4797_s19, 1  ;;  %4448 = vset.pattern.permute.xlu1 %v4707_v1  ;;  %4447 = vset.pattern.permute.xlu0 %v4707_v1  ;;  %v652_v9 = vld [vmem:[%s6093_s4] sm:$0xff]  ;;  %v480_v10 = vld [vmem:[%s6090_s1 + $0x8] sm:$0xff]  ;;  %v481_v12 = vld [vmem:[%s6090_s1 + $0x10] sm:$0xff]  ;;  %vm660_vm2 = vcmask 261120  }
  0x10   : > { %s3913_s25 = sshll.u32 %s4803_s21, 2  ;;  %499 = vperm.xlu1 %4448, %v485_v2   ;;  %489 = vperm.xlu0 %4447, %v483_v3   ;;  %v653_v11 = vld [vmem:[%s6093_s4 + $0x8] sm:$0xff]  ;;  %v654_v13 = vld [vmem:[%s6093_s4 + $0x10] sm:$0xff]  ;;  %v482_v14 = vld [vmem:[%s6090_s1 + $0x18] sm:$0xff]  ;;  %p3944_p4 = scmp.ne.s32.totalorder %s4797_s19, 0 }
  0x11   : > { %s4033_s28 = sshll.u32 %s468_s22, 3  ;;  %s477_s18 = scalar_lea.vmem [#allocation3], %s3913_s25  ;;  %v655_v15 = vld [vmem:[%s6093_s4 + $0x18] sm:$0xff]  ;;  %v656_v16 = vld [vmem:[%s6093_s4 + $0x20] sm:$0xff]  ;;  %v657_v17 = vld [vmem:[%s6093_s4 + $0x28] sm:$0xff]  ;;  %vm2063_vm3 = vcmask (!%p3944_p4), 523264  }
  0x12   : > { %s471_s20 = scalar_lea.vmem %s6089_s0, %s4033_s28  ;;  %v658_v18 = vld [vmem:[%s6093_s4 + $0x30] sm:$0xff]  ;;  %v616_v19 = vld [vmem:[%s6092_s3] sm:$0xff]  ;;  %v659_v20 = vld [vmem:[%s6093_s4 + $0x38] sm:$0xff]  ;;  %vm2068_vm4 = vcmask (!%p3944_p4), 7168  }
  0x13   : > { %v472_v6 = vld [vmem:[%s471_s20] sm:$0xff]  ;;  %v617_v21 = vld [vmem:[%s6092_s3 + $0x8] sm:$0xff]  ;;  %v618_v22 = vld [vmem:[%s6092_s3 + $0x10] sm:$0xff] }
  0x14   : > { %478 = vst [vmem:[%s477_s18] sm:$0xff] %v472_v6  ;;  %v508_v7 = vcombine.high %v472_v6, %v472_v6  ;;  %504 = vperm.xlu1 %4448, %v486_v4   ;;  %494 = vperm.xlu0 %4447, %v484_v5   ;;  %v619_v23 = vld [vmem:[%s6092_s3 + $0x18] sm:$0xff] }
  0x16   : > { %3914 = vmatprep.subr.msk.mxu0 %vm522_vm0, %v508_v7 }
  0x17   : > { %3915 = vmatpush1.msk.msra.mxu0 %vm522_vm0, %v472_v6 }
  0x18   : > { %3916 = vmatmul.mubr.msk.f32.vlgmr.msra.gmra.mrb[0].mxu0 %vm509_vm1, %v479_v8  ;;  %874 = vperm.xlu1 %4448, %v652_v9  }
  0x19   : > { %597 = vmatprep.mubr.f32.mxu0 %v6106_v0 }
  0x1c   : > { %3917 = vmatmul.mubr.msk.f32.gmra.mrb[2].mxu0 %vm509_vm1, %v480_v10  ;;  %879 = vperm.xlu1 %4448, %v653_v11  }
  0x1d   : > { %603 = vmatprep.mubr.f32.mxu0 %v6106_v0 }
  0x20   : > { %3918 = vmatmul.mubr.msk.f32.gmra.mrb[4].mxu0 %vm509_vm1, %v481_v12  ;;  %884 = vperm.xlu1 %4448, %v654_v13  }
  0x21   : > { %609 = vmatprep.mubr.f32.mxu0 %v6106_v0 }
  0x24   : > { %3919 = vmatmul.mubr.msk.f32.gmra.mrb[6].mxu0 %vm509_vm1, %v482_v14  ;;  %889 = vperm.xlu1 %4448, %v655_v15  }
  0x28   : > { %894 = vperm.xlu1 %4448, %v656_v16  }
  0x2c   : > { %899 = vperm.xlu1 %4448, %v657_v17  }
  0x30   : > { %904 = vperm.xlu1 %4448, %v658_v18  }
  0x32   : > { %620 = vxpose.xlu0.b32.start [1/4] (short) (narrow) %v616_v19, 64 }
  0x34   : > { %909 = vperm.xlu1 %4448, %v659_v20  }
  0x36   : > { %621 = vxpose.xlu0.b32.cont [2/4] (short) (narrow) %v617_v21, 64 }
  0x3a   : > { %622 = vxpose.xlu0.b32.cont [3/4] (short) (narrow) %v618_v22, 64 }
  0x3e   : > { %623 = vxpose.xlu0.b32.end [4/4] (short) (narrow) %v619_v23, 64 }
  0x8f   : > { %v490_v24 = vpop.permute.xlu0 %489  ;;  %v500_v33 = vpop.permute.xlu1 %499 }
  0x93   : > { %v495_v26 = vpop.permute.xlu0 %494  ;;  %v505_v41 = vpop.permute.xlu1 %504 }
  0xb2   : > { %v636_v32 = vpop.trf.xlu0 }
  0xb6   : > { %v637_v40 = vpop.trf.xlu0 }
  0xba   : > { %v638_v50 = vpop.trf.xlu0 }
  0xbe   : > { %v639_v51 = vpop.trf.xlu0 }
  0xc2   : > { %v640_v52 = vpop.trf.xlu0 }
  0xc6   : > { %v641_v53 = vpop.trf.xlu0 }
  0xca   : > { %v642_v54 = vpop.trf.xlu0 }
  0xce   : > { %v643_v55 = vpop.trf.xlu0 }
  0xeb   : > { %v593_v25 = vpop.f32.mrb[0].mxu0 }
  0xec   : > { %v595_v27 = vpop.f32.mrb[1].mxu0  ;;  %v594_v29 = vadd.f32 %v593_v25, %v490_v24 }
  0xed   : > { %v596_v34 = vadd.f32 %v595_v27, %v490_v24  ;;  %v4961_v24 = vpop.permute.xlu1 %874 }
  0xef   : > { %v599_v28 = vpop.f32.mrb[2].mxu0 }
  0xf0   : > { %v600_v30 = vadd.f32 %v599_v28, %v495_v26  ;;  %v601_v31 = vpop.f32.mrb[3].mxu0 }
  0xf1   : > { %v602_v35 = vadd.f32 %v601_v31, %v495_v26  ;;  %v4963_v31 = vpop.permute.xlu1 %879 }
  0xf2   : > { %v4881_v36 = vpack.c.bf16 %v600_v30, %v594_v29 }
  0xf3   : > { %v4883_v37 = vpack.c.bf16 %v602_v35, %v596_v34  ;;  %v605_v38 = vpop.f32.mrb[4].mxu0 }
  0xf4   : > { %v607_v39 = vpop.f32.mrb[5].mxu0  ;;  %v606_v43 = vadd.f32 %v605_v38, %v500_v33 }
  0xf5   : > { %4251 = vmatprep.subr.bf16.mxu1 %v4883_v37  ;;  %4259 = vmatprep.subr.bf16.mxu0 %v4883_v37  ;;  %v608_v46 = vadd.f32 %v607_v39, %v500_v33 }
  0xf6   : > { %4253 = vmatpush1.bf16.msra.mxu1 %v4881_v36  ;;  %4261 = vmatpush1.bf16.xpose.msra.mxu0 %v4881_v36 }
  0xf7   : > { %v611_v42 = vpop.f32.mrb[6].mxu0 }
  0xf8   : > { %v612_v44 = vadd.f32 %v611_v42, %v505_v41  ;;  %v613_v45 = vpop.f32.mrb[7].mxu0 }
  0xf9   : > { %v614_v47 = vadd.f32 %v613_v45, %v505_v41 }
  0xfa   : > { %v4889_v48 = vpack.c.bf16 %v612_v44, %v606_v43 }
  0xfb   : > { %v4891_v49 = vpack.c.bf16 %v614_v47, %v608_v46 }
  0xfd   : > { %4255 = vmatprep.subr.bf16.mxu1 %v4891_v49  ;;  %4263 = vmatprep.subr.bf16.mxu0 %v4891_v49 }
  0xfe   : > { %4257 = vmatpush1.bf16.msra.mxu1 %v4889_v48  ;;  %4265 = vmatpush1.bf16.xpose.msra.mxu0 %v4889_v48 }
  0xff   : > { %4267 = vmatprep.subr.bf16.mxu1 %v4883_v37  ;;  %4275 = vmatprep.subr.bf16.mxu0 %v4883_v37 }
 0x101   : > { %3920 = vmatmul.mubr.msk.f32.vlgmr.msra.gmra.mrb[0].mxu1 %vm660_vm2, %v636_v32 }
 0x102   : > { %4269 = vmatpush1.bf16.msra.mxu1 %v4881_v36  ;;  %755 = vmatprep.mubr.f32.mxu1 %v6106_v0 }
 0x103   : > { %4271 = vmatprep.subr.bf16.mxu1 %v4891_v49 }
 0x105   : > { %3921 = vmatmul.mubr.msk.f32.gmra.mrb[2].mxu1 %vm660_vm2, %v637_v40  ;;  %v4965_v40 = vpop.permute.xlu1 %884 }
 0x106   : > { %4273 = vmatpush1.bf16.msra.mxu1 %v4889_v48  ;;  %761 = vmatprep.mubr.f32.mxu1 %v6106_v0 }
 0x107   : > { %4283 = vmatprep.subr.bf16.mxu1 %v4883_v37 }
 0x109   : > { %3922 = vmatmul.mubr.msk.f32.gmra.mrb[4].mxu1 %vm660_vm2, %v638_v50 }
 0x10a   : > { %767 = vmatprep.mubr.f32.mxu1 %v6106_v0 }
 0x10d   : > { %3923 = vmatmul.mubr.msk.f32.gmra.mrb[6].mxu1 %vm660_vm2, %v639_v51 }
 0x10e   : > { %773 = vmatprep.mubr.f32.mxu1 %v6106_v0 }
 0x111   : > { %3924 = vmatmul.mubr.msk.f32.gmra.mrb[8].mxu1 %vm660_vm2, %v640_v52 }
 0x112   : > { %779 = vmatprep.mubr.f32.mxu1 %v6106_v0 }
 0x115   : > { %3925 = vmatmul.mubr.msk.f32.gmra.mrb[10].mxu1 %vm660_vm2, %v641_v53 }
 0x116   : > { %785 = vmatprep.mubr.f32.mxu1 %v6106_v0 }
 0x119   : > { %3926 = vmatmul.mubr.msk.f32.gmra.mrb[12].mxu1 %vm660_vm2, %v642_v54 }
 0x11a   : > { %791 = vmatprep.mubr.f32.mxu1 %v6106_v0 }
 0x11d   : > { %3927 = vmatmul.mubr.msk.f32.gmra.mrb[14].mxu1 %vm660_vm2, %v643_v55 }
 0x11e   : > { %1231 = vmatprep.mubr.f32.mxu1 %v6106_v0 }
 0x1d4   : > { %v4919_v56 = vpop.f32.mrb[0].mxu1 }
 0x1d5   : > { %v4921_v57 = vpop.f32.mrb[1].mxu1 }
 0x1d8   : > { %v4923_v58 = vpop.f32.mrb[2].mxu1 }
 0x1d9   : > { %v4925_v59 = vpop.f32.mrb[3].mxu1 }
 0x1dc   : > { %v4927_v60 = vpop.f32.mrb[4].mxu1 }
 0x1dd   : > { %v798_v61 = vmax.f32 %v4919_v56, %v4927_v60  ;;  %v4931_v62 = vpop.f32.mrb[5].mxu1 }
 0x1de   : > { %v811_v63 = vmax.f32 %v4921_v57, %v4931_v62 }
 0x1e0   : > { %v4935_v2 = vpop.f32.mrb[6].mxu1 }
 0x1e1   : > { %v799_v3 = vmax.f32 %v4923_v58, %v4935_v2  ;;  %v4939_v4 = vpop.f32.mrb[7].mxu1 }
 0x1e2   : > { %v812_v5 = vmax.f32 %v4925_v59, %v4939_v4 }
 0x1e4   : > { %v4943_v6 = vpop.f32.mrb[8].mxu1 }
 0x1e5   : > { %v800_v7 = vmax.f32 %v798_v61, %v4943_v6  ;;  %v4946_v8 = vpop.f32.mrb[9].mxu1 }
 0x1e6   : > { %v813_v9 = vmax.f32 %v811_v63, %v4946_v8 }
 0x1e8   : > { %v4949_v10 = vpop.f32.mrb[10].mxu1 }
 0x1e9   : > { %v801_v11 = vmax.f32 %v799_v3, %v4949_v10  ;;  %v4952_v12 = vpop.f32.mrb[11].mxu1  ;;  %v890_v3 = vpop.permute.xlu1 %889 }
 0x1ea   : > { %v814_v13 = vmax.f32 %v812_v5, %v4952_v12 }
 0x1ec   : > { %v4955_v14 = vpop.f32.mrb[12].mxu1 }
 0x1ed   : > { %v802_v15 = vmax.f32 %v800_v7, %v4955_v14  ;;  %v4958_v16 = vpop.f32.mrb[13].mxu1 }
 0x1ee   : > { %v815_v17 = vmax.f32 %v813_v9, %v4958_v16 }
 0x1f0   : > { %v793_v18 = vpop.f32.mrb[14].mxu1 }
 0x1f1   : > { %v803_v19 = vmax.f32 %v801_v11, %v793_v18  ;;  %v795_v20 = vpop.f32.mrb[15].mxu1 }
 0x1f2   : > { %v816_v21 = vmax.f32 %v814_v13, %v795_v20 }
 0x1f3   : > { %v804_v22 = vmax.f32 %v802_v15, %v803_v19 }
 0x1f4   : > { %v817_v23 = vmax.f32 %v815_v17, %v816_v21 }
 0x1f5   : > { %v805_v25 = vrot.slane %v804_v22, 4 }
 0x1f6   : > { %v818_v26 = vrot.slane %v817_v23, 4 }
 0x1f7   : > { %v806_v27 = vmax.f32 %v804_v22, %v805_v25 }
 0x1f8   : > { %v819_v28 = vmax.f32 %v817_v23, %v818_v26 }
 0x1f9   : > { %v807_v29 = vrot.slane %v806_v27, 2 }
 0x1fa   : > { %v820_v30 = vrot.slane %v819_v28, 2 }
 0x1fb   : > { %v808_v32 = vmax.f32 %v806_v27, %v807_v29 }
 0x1fc   : > { %v821_v33 = vmax.f32 %v819_v28, %v820_v30 }
 0x1fd   : > { %v809_v34 = vrot.slane %v808_v32, 1 }
 0x1fe   : > { %v822_v35 = vrot.slane %v821_v33, 1 }
 0x1ff   : > { %v810_v38 = vmax.f32 %v808_v32, %v809_v34 }
 0x200   : > { %v823_v39 = vmax.f32 %v821_v33, %v822_v35 }
 0x201   : > { %v838_v41 = vsub.f32 %v793_v18, %v810_v38  ;;  %v824_v42 = vsub.f32 %v4919_v56, %v810_v38  ;;  %v826_v43 = vsub.f32 %v4923_v58, %v810_v38  ;;  %v828_v44 = vsub.f32 %v4927_v60, %v810_v38 }
 0x202   : > { %v839_v45 = vsub.f32 %v795_v20, %v823_v39  ;;  %v825_v46 = vsub.f32 %v4921_v57, %v823_v39  ;;  %v827_v47 = vsub.f32 %v4925_v59, %v823_v39  ;;  %v829_v50 = vsub.f32 %v4931_v62, %v823_v39 }
 0x203   : > { %v868_v51 = vmul.f32 1.442695, %v838_v41  ;;  %v830_v52 = vsub.f32 %v4935_v2, %v810_v38  ;;  %v831_v53 = vsub.f32 %v4939_v4, %v823_v39  ;;  %v832_v54 = vsub.f32 %v4943_v6, %v810_v38 }
 0x204   : > { %v870_v55 = vmul.f32 1.442695, %v839_v45  ;;  %v833_v56 = vsub.f32 %v4946_v8, %v823_v39  ;;  %v834_v58 = vsub.f32 %v4949_v10, %v810_v38  ;;  %v835_v60 = vsub.f32 %v4952_v12, %v823_v39  ;;  %v895_v10 = vpop.permute.xlu1 %894 }
 0x205   : > { %4450 = vpow2.f32 %v868_v51  ;;  %v836_v57 = vsub.f32 %v4955_v14, %v810_v38  ;;  %v837_v59 = vsub.f32 %v4958_v16, %v823_v39  ;;  %v840_v61 = vmul.f32 1.442695, %v824_v42 }
 0x206   : > { %4452 = vpow2.f32 %v870_v55  ;;  %v842_v62 = vmul.f32 1.442695, %v825_v46  ;;  %v844_v63 = vmul.f32 1.442695, %v826_v43  ;;  %v846_v2 = vmul.f32 1.442695, %v827_v47 }
 0x207   : > { %4454 = vpow2.f32 %v840_v61  ;;  %v848_v4 = vmul.f32 1.442695, %v828_v44  ;;  %v850_v5 = vmul.f32 1.442695, %v829_v50  ;;  %v852_v6 = vmul.f32 1.442695, %v830_v52 }
 0x208   : > { %4456 = vpow2.f32 %v842_v62  ;;  %v854_v7 = vmul.f32 1.442695, %v831_v53  ;;  %v856_v8 = vmul.f32 1.442695, %v832_v54  ;;  %v858_v9 = vmul.f32 1.442695, %v833_v56  ;;  %v900_v21 = vpop.permute.xlu1 %899 }
 0x209   : > { %4458 = vpow2.f32 %v844_v63  ;;  %v860_v11 = vmul.f32 1.442695, %v834_v58  ;;  %v862_v12 = vmul.f32 1.442695, %v835_v60  ;;  %v864_v14 = vmul.f32 1.442695, %v836_v57 }
 0x20a   : > { %4460 = vpow2.f32 %v846_v2  ;;  %v866_v16 = vmul.f32 1.442695, %v837_v59 }
 0x20b   : > { %4462 = vpow2.f32 %v848_v4 }
 0x20c   : > { %4464 = vpow2.f32 %v850_v5  ;;  %v905_v41 = vpop.permute.xlu1 %904 }
 0x20d   : > { %4466 = vpow2.f32 %v852_v6 }
 0x20e   : > { %4468 = vpow2.f32 %v854_v7 }
 0x20f   : > { %v4451_v13 = vpop.eup %4450  ;;  %4470 = vpow2.f32 %v856_v8 }
 0x210   : > { %v4453_v15 = vpop.eup %4452  ;;  %4472 = vpow2.f32 %v858_v9  ;;  %v910_v57 = vpop.permute.xlu1 %909 }
 0x211   : > { %v4455_v17 = vpop.eup %4454  ;;  %4474 = vpow2.f32 %v860_v11  ;;  %v926_v62 = vmul.f32 %v4451_v13, %v910_v57  ;;  %v927_v2 = vmul.f32 %v4453_v15, %v910_v57 }
 0x212   : > { %v4457_v18 = vpop.eup %4456  ;;  %4476 = vpow2.f32 %v862_v12  ;;  %v4982_v19 = vmul.f32 %v4455_v17, %v4961_v24 }
 0x213   : > { %v4459_v20 = vpop.eup %4458  ;;  %4478 = vpow2.f32 %v864_v14  ;;  %v4985_v22 = vmul.f32 %v4457_v18, %v4961_v24 }
 0x214   : > { %v4461_v23 = vpop.eup %4460  ;;  %4480 = vpow2.f32 %v866_v16  ;;  %v914_v25 = vmul.f32 %v4459_v20, %v4963_v31 }
 0x215   : > { %v4463_v26 = vpop.eup %4462  ;;  %v915_v27 = vmul.f32 %v4461_v23, %v4963_v31 }
 0x216   : > { %v4465_v28 = vpop.eup %4464  ;;  %v916_v29 = vmul.f32 %v4463_v26, %v4965_v40  ;;  %v928_v30 = vadd.f32 %v914_v25, %v4982_v19 }
 0x217   : > { %v4467_v32 = vpop.eup %4466  ;;  %v917_v33 = vmul.f32 %v4465_v28, %v4965_v40  ;;  %v941_v34 = vadd.f32 %v915_v27, %v4985_v22 }
 0x218   : > { %v4469_v35 = vpop.eup %4468  ;;  %v918_v24 = vmul.f32 %v4467_v32, %v890_v3  ;;  %v929_v38 = vadd.f32 %v928_v30, %v916_v29 }
 0x219   : > { %v4471_v39 = vpop.eup %4470  ;;  %v919_v42 = vmul.f32 %v4469_v35, %v890_v3  ;;  %v942_v43 = vadd.f32 %v941_v34, %v917_v33 }
 0x21a   : > { %v4473_v44 = vpop.eup %4472  ;;  %v920_v45 = vmul.f32 %v4471_v39, %v895_v10  ;;  %v930_v31 = vadd.f32 %v929_v38, %v918_v24 }
 0x21b   : > { %v4475_v46 = vpop.eup %4474  ;;  %v921_v47 = vmul.f32 %v4473_v44, %v895_v10  ;;  %v943_v50 = vadd.f32 %v942_v43, %v919_v42 }
 0x21c   : > { %v4477_v51 = vpop.eup %4476  ;;  %v922_v52 = vmul.f32 %v4475_v46, %v900_v21  ;;  %v931_v53 = vadd.f32 %v930_v31, %v920_v45 }
 0x21d   : > { %v4479_v54 = vpop.eup %4478  ;;  %v923_v40 = vmul.f32 %v4477_v51, %v900_v21  ;;  %v944_v55 = vadd.f32 %v943_v50, %v921_v47 }
 0x21e   : > { %v4481_v56 = vpop.eup %4480  ;;  %v924_v58 = vmul.f32 %v4479_v54, %v905_v41  ;;  %v932_v60 = vadd.f32 %v931_v53, %v922_v52 }
 0x21f   : > { %v925_v59 = vmul.f32 %v4481_v56, %v905_v41  ;;  %v945_v61 = vadd.f32 %v944_v55, %v923_v40 }
 0x220   : > { %v933_v63 = vadd.f32 %v932_v60, %v924_v58 }
 0x221   : > { %v946_v3 = vadd.f32 %v945_v61, %v925_v59 }
 0x222   : > { %v934_v4 = vadd.f32 %v933_v63, %v926_v62 }
 0x223   : > { %v947_v5 = vadd.f32 %v946_v3, %v927_v2 }
 0x224   : > { %v935_v6 = vrot.slane %v934_v4, 4 }
 0x225   : > { %v948_v7 = vrot.slane %v947_v5, 4 }
 0x226   : > { %v936_v8 = vadd.f32 %v935_v6, %v934_v4 }
 0x227   : > { %v949_v9 = vadd.f32 %v948_v7, %v947_v5 }
 0x228   : > { %v937_v10 = vrot.slane %v936_v8, 2 }
 0x229   : > { %v950_v11 = vrot.slane %v949_v9, 2 }
 0x22a   : > { %v938_v12 = vadd.f32 %v937_v10, %v936_v8 }
 0x22b   : > { %v951_v14 = vadd.f32 %v950_v11, %v949_v9 }
 0x22c   : > { %v939_v16 = vrot.slane %v938_v12, 1 }
 0x22d   : > { %v952_v17 = vrot.slane %v951_v14, 1 }
 0x22e   : > { %v940_v18 = vadd.f32 %v939_v16, %v938_v12 }
 0x22f   : > { %v953_v20 = vadd.f32 %v952_v17, %v951_v14 }
 0x230   : > { %v954_v21 = vadd.f32 1e-18, %v940_v18 }
 0x231   : > { %v955_v23 = vadd.f32 1e-18, %v953_v20 }
 0x232   : > { %4482 = vrcp.f32 %v954_v21 }
 0x233   : > { %4484 = vrcp.f32 %v955_v23 }
 0x23c   : > { %v4483_v13 = vpop.eup %4482 }
 0x23d   : > { %v4485_v15 = vpop.eup %4484  ;;  %v960_v26 = vmul.f32 %v4483_v13, %v914_v25  ;;  %v957_v28 = vmul.f32 %v4483_v13, %v4982_v19  ;;  %v4994_v30 = vmul.f32 %v4483_v13, %v916_v29  ;;  %v4996_v32 = vmul.f32 %v4483_v13, %v918_v24 }
 0x23e   : > { %v961_v34 = vmul.f32 %v4485_v15, %v915_v27  ;;  %v959_v35 = vmul.f32 %v4485_v15, %v4985_v22  ;;  %v963_v38 = vmul.f32 %v4485_v15, %v917_v33  ;;  %v4999_v39 = vmul.f32 %v4485_v15, %v919_v42 }
 0x23f   : > { %v5001_v41 = vmul.f32 %v4483_v13, %v920_v45  ;;  %v5003_v43 = vmul.f32 %v4485_v15, %v921_v47  ;;  %v5005_v44 = vmul.f32 %v4483_v13, %v922_v52  ;;  %v5007_v31 = vmul.f32 %v4485_v15, %v923_v40 }
 0x240   : > { %v977_v25 = vadd.f32 %v961_v34, %v960_v26  ;;  %v974_v19 = vadd.f32 %v959_v35, %v957_v28  ;;  %v5009_v29 = vmul.f32 %v4483_v13, %v924_v58  ;;  %v5011_v24 = vmul.f32 %v4485_v15, %v925_v59 }
 0x241   : > { %v5013_v22 = vmul.f32 %v4483_v13, %v926_v62  ;;  %v5015_v27 = vmul.f32 %v4485_v15, %v927_v2  ;;  %v980_v33 = vadd.f32 %v963_v38, %v4994_v30  ;;  %v983_v42 = vadd.f32 %v4999_v39, %v4996_v32 }
 0x242   : > { %978 = vadd.xlane.f32.xlu0 %v977_v25  ;;  %975 = vadd.xlane.f32.xlu1 %v974_v19  ;;  %v986_v45 = vadd.f32 %v5003_v43, %v5001_v41  ;;  %v989_v46 = vadd.f32 %v5007_v31, %v5005_v44  ;;  %v992_v47 = vadd.f32 %v5011_v24, %v5009_v29 }
 0x243   : > { %v995_v50 = vadd.f32 %v5015_v27, %v5013_v22 }
 0x246   : > { %981 = vadd.xlane.f32.xlu1 %v980_v33 }
 0x24a   : > { %984 = vadd.xlane.f32.xlu1 %v983_v42 }
 0x24e   : > { %987 = vadd.xlane.f32.xlu1 %v986_v45 }
 0x252   : > { %990 = vadd.xlane.f32.xlu1 %v989_v46 }
 0x256   : > { %993 = vadd.xlane.f32.xlu1 %v992_v47 }
 0x25a   : > { %996 = vadd.xlane.f32.xlu1 %v995_v50 }
 0x2cf   : > { %v5028_v51 = vpop.xlane.xlu0 %978  ;;  %v5030_v52 = vpop.xlane.xlu1 %975 }
 0x2d0   : > { %v999_v53 = vadd.f32 1e-18, %v5028_v51  ;;  %v998_v54 = vadd.f32 1e-18, %v5030_v52 }
 0x2d2   : > { %4486 = vrcp.f32 %v999_v53 }
 0x2d3   : > { %4488 = vrcp.f32 %v998_v54  ;;  %v5034_v40 = vpop.xlane.xlu1 %981 }
 0x2d4   : > { %v1000_v55 = vadd.f32 1e-18, %v5034_v40 }
 0x2d6   : > { %4490 = vrcp.f32 %v1000_v55 }
 0x2d7   : > { %v5037_v56 = vpop.xlane.xlu1 %984 }
 0x2d8   : > { %v1001_v58 = vadd.f32 1e-18, %v5037_v56 }
 0x2da   : > { %4492 = vrcp.f32 %v1001_v58 }
 0x2db   : > { %v5040_v60 = vpop.xlane.xlu1 %987 }
 0x2dc   : > { %v4487_v57 = vpop.eup %4486  ;;  %v1002_v59 = vadd.f32 1e-18, %v5040_v60 }
 0x2dd   : > { %v4489_v61 = vpop.eup %4488  ;;  %v1011_v4 = vmul.f32 %v4487_v57, %v961_v34  ;;  %v1010_v7 = vmul.f32 %v4487_v57, %v960_v26 }
 0x2de   : > { %v1008_v62 = vmul.f32 %v4489_v61, %v959_v35  ;;  %v1007_v63 = vmul.f32 %v4489_v61, %v957_v28  ;;  %4494 = vrcp.f32 %v1002_v59 }
 0x2df   : > { %v5043_v2 = vpop.xlane.xlu1 %990 }
 0x2e0   : > { %1094 = vmatprep.mubr.f32.mxu0 %v1008_v62  ;;  %v1003_v3 = vadd.f32 1e-18, %v5043_v2  ;;  %v4491_v5 = vpop.eup %4490 }
 0x2e1   : > { %1095 = vmatmul.mubr.f32.vlgmr.msra.gmra.mrb[8].mxu0 %v1007_v63  ;;  %v1014_v9 = vmul.f32 %v4491_v5, %v963_v38  ;;  %v1013_v12 = vmul.f32 %v4491_v5, %v4994_v30 }
 0x2e2   : > { %4277 = vmatpush1.bf16.xpose.msra.mxu0 %v4881_v36  ;;  %1099 = vmatprep.mubr.f32.mxu0 %v1011_v4  ;;  %4496 = vrcp.f32 %v1003_v3 }
 0x2e3   : > { %4279 = vmatprep.subr.bf16.mxu0 %v4891_v49  ;;  %v5048_v6 = vpop.xlane.xlu1 %993 }
 0x2e4   : > { %v1004_v8 = vadd.f32 1e-18, %v5048_v6  ;;  %v4493_v10 = vpop.eup %4492 }
 0x2e5   : > { %1100 = vmatmul.mubr.f32.gmra.mrb[10].mxu0 %v1010_v7  ;;  %v1017_v16 = vmul.f32 %v4493_v10, %v4999_v39  ;;  %v1016_v18 = vmul.f32 %v4493_v10, %v4996_v32 }
 0x2e6   : > { %1104 = vmatprep.mubr.f32.mxu0 %v1014_v9  ;;  %4498 = vrcp.f32 %v1004_v8 }
 0x2e7   : > { %v5051_v11 = vpop.xlane.xlu1 %996 }
 0x2e8   : > { %v1005_v14 = vadd.f32 1e-18, %v5051_v11  ;;  %v4495_v17 = vpop.eup %4494 }
 0x2e9   : > { %1105 = vmatmul.mubr.f32.gmra.mrb[12].mxu0 %v1013_v12  ;;  %v1020_v20 = vmul.f32 %v4495_v17, %v5003_v43  ;;  %v1019_v23 = vmul.f32 %v4495_v17, %v5001_v41 }
 0x2ea   : > { %4281 = vmatpush1.bf16.xpose.msra.mxu0 %v4889_v48  ;;  %1109 = vmatprep.mubr.f32.mxu0 %v1017_v16  ;;  %4500 = vrcp.f32 %v1005_v14 }
 0x2eb   : > { %4291 = vmatprep.subr.bf16.mxu0 %v4883_v37 }
 0x2ec   : > { %v4497_v21 = vpop.eup %4496 }
 0x2ed   : > { %1110 = vmatmul.mubr.f32.gmra.mrb[14].mxu0 %v1016_v18  ;;  %v1023_v13 = vmul.f32 %v4497_v21, %v5007_v31  ;;  %v1022_v26 = vmul.f32 %v4497_v21, %v5005_v44 }
 0x2ee   : > { %1114 = vmatprep.mubr.f32.mxu0 %v1020_v20 }
 0x2f0   : > { %v4499_v15 = vpop.eup %4498 }
 0x2f1   : > { %1115 = vmatmul.mubr.f32.gmra.mrb[16].mxu0 %v1019_v23  ;;  %v1026_v28 = vmul.f32 %v4499_v15, %v5011_v24  ;;  %v1025_v37 = vmul.f32 %v4499_v15, %v5009_v29 }
 0x2f2   : > { %1119 = vmatprep.mubr.f32.mxu0 %v1023_v13 }
 0x2f4   : > { %v4501_v30 = vpop.eup %4500 }
 0x2f5   : > { %1120 = vmatmul.mubr.f32.gmra.mrb[18].mxu0 %v1022_v26  ;;  %v1029_v32 = vmul.f32 %v4501_v30, %v5015_v27  ;;  %v1028_v34 = vmul.f32 %v4501_v30, %v5013_v22 }
 0x2f6   : > { %1124 = vmatprep.mubr.f32.mxu0 %v1026_v28 }
 0x2f9   : > { %1125 = vmatmul.mubr.f32.gmra.mrb[20].mxu0 %v1025_v37 }
 0x2fa   : > { %1129 = vmatprep.mubr.f32.mxu0 %v1029_v32 }
 0x2fd   : > { %1130 = vmatmul.mubr.f32.gmra.mrb[22].mxu0 %v1028_v34 }
 0x3b4   : > { %v1096_v35 = vpop.f32.mrb[8].mxu0 }
 0x3b5   : > { %v1098_v38 = vpop.f32.mrb[9].mxu0  ;;  %3928 = vmatmul.mubr.msk.f32.vlgmr.msra.gmra.mrb[16].mxu1 %vm660_vm2, %v1096_v35 }
 0x3b6   : > { %4285 = vmatpush1.bf16.msra.mxu1 %v4881_v36  ;;  %1237 = vmatprep.mubr.f32.mxu1 %v6106_v0 }
 0x3b7   : > { %4287 = vmatprep.subr.bf16.mxu1 %v4891_v49 }
 0x3b8   : > { %v1101_v39 = vpop.f32.mrb[10].mxu0 }
 0x3b9   : > { %v1103_v41 = vpop.f32.mrb[11].mxu0  ;;  %3929 = vmatmul.mubr.msk.f32.gmra.mrb[18].mxu1 %vm660_vm2, %v1101_v39 }
 0x3ba   : > { %4289 = vmatpush1.bf16.msra.mxu1 %v4889_v48  ;;  %1243 = vmatprep.mubr.f32.mxu1 %v6106_v0 }
 0x3bc   : > { %v1106_v43 = vpop.f32.mrb[12].mxu0 }
 0x3bd   : > { %v1108_v44 = vpop.f32.mrb[13].mxu0  ;;  %3930 = vmatmul.mubr.msk.f32.gmra.mrb[20].mxu1 %vm660_vm2, %v1106_v43 }
 0x3be   : > { %1249 = vmatprep.mubr.f32.mxu1 %v6106_v0 }
 0x3c0   : > { %v1111_v31 = vpop.f32.mrb[14].mxu0 }
 0x3c1   : > { %v1113_v25 = vpop.f32.mrb[15].mxu0  ;;  %3931 = vmatmul.mubr.msk.f32.gmra.mrb[22].mxu1 %vm660_vm2, %v1111_v31 }
 0x3c2   : > { %1255 = vmatprep.mubr.f32.mxu1 %v6106_v0 }
 0x3c4   : > { %v1116_v19 = vpop.f32.mrb[16].mxu0 }
 0x3c5   : > { %v1118_v29 = vpop.f32.mrb[17].mxu0  ;;  %3932 = vmatmul.mubr.msk.f32.gmra.mrb[24].mxu1 %vm660_vm2, %v1116_v19 }
 0x3c6   : > { %1261 = vmatprep.mubr.f32.mxu1 %v6106_v0 }
 0x3c8   : > { %v1121_v24 = vpop.f32.mrb[18].mxu0 }
 0x3c9   : > { %v1123_v22 = vpop.f32.mrb[19].mxu0  ;;  %3933 = vmatmul.mubr.msk.f32.gmra.mrb[26].mxu1 %vm660_vm2, %v1121_v24 }
 0x3ca   : > { %1267 = vmatprep.mubr.f32.mxu1 %v6106_v0 }
 0x3cc   : > { %v1126_v27 = vpop.f32.mrb[20].mxu0 }
 0x3cd   : > { %v1128_v33 = vpop.f32.mrb[21].mxu0  ;;  %3934 = vmatmul.mubr.msk.f32.gmra.mrb[28].mxu1 %vm660_vm2, %v1126_v27 }
 0x3ce   : > { %1273 = vmatprep.mubr.f32.mxu1 %v6106_v0 }
 0x3d0   : > { %v1131_v42 = vpop.f32.mrb[22].mxu0 }
 0x3d1   : > { %v1133_v45 = vpop.f32.mrb[23].mxu0  ;;  %3935 = vmatmul.mubr.msk.f32.gmra.mrb[30].mxu1 %vm660_vm2, %v1131_v42 }
 0x3d2   : > { %1673 = vmatprep.mubr.f32.mxu1 %v6106_v0 }
 0x488   : > { %v1233_v46 = vpop.f32.mrb[16].mxu1 }
 0x489   : > { %v1235_v47 = vpop.f32.mrb[17].mxu1 }
 0x48c   : > { %v1239_v50 = vpop.f32.mrb[18].mxu1 }
 0x48d   : > { %v1241_v53 = vpop.f32.mrb[19].mxu1 }
 0x490   : > { %v5086_v54 = vpop.f32.mrb[20].mxu1 }
 0x491   : > { %v1280_v55 = vmax.f32 %v1233_v46, %v5086_v54  ;;  %v5089_v58 = vpop.f32.mrb[21].mxu1 }
 0x492   : > { %v1293_v57 = vmax.f32 %v1235_v47, %v5089_v58 }
 0x494   : > { %v5092_v59 = vpop.f32.mrb[22].mxu1 }
 0x495   : > { %v1281_v61 = vmax.f32 %v1239_v50, %v5092_v59  ;;  %v5095_v62 = vpop.f32.mrb[23].mxu1 }
 0x496   : > { %v1294_v63 = vmax.f32 %v1241_v53, %v5095_v62 }
 0x498   : > { %v5098_v3 = vpop.f32.mrb[24].mxu1 }
 0x499   : > { %v1282_v4 = vmax.f32 %v1280_v55, %v5098_v3  ;;  %v5101_v5 = vpop.f32.mrb[25].mxu1 }
 0x49a   : > { %v1295_v7 = vmax.f32 %v1293_v57, %v5101_v5 }
 0x49c   : > { %v5104_v8 = vpop.f32.mrb[26].mxu1 }
 0x49d   : > { %v1283_v9 = vmax.f32 %v1281_v61, %v5104_v8  ;;  %v5107_v10 = vpop.f32.mrb[27].mxu1 }
 0x49e   : > { %v1296_v12 = vmax.f32 %v1294_v63, %v5107_v10 }
 0x4a0   : > { %v5110_v14 = vpop.f32.mrb[28].mxu1 }
 0x4a1   : > { %v1284_v16 = vmax.f32 %v1282_v4, %v5110_v14  ;;  %v5113_v17 = vpop.f32.mrb[29].mxu1 }
 0x4a2   : > { %v1297_v18 = vmax.f32 %v1295_v7, %v5113_v17 }
 0x4a4   : > { %v1275_v20 = vpop.f32.mrb[30].mxu1 }
 0x4a5   : > { %v1285_v21 = vmax.f32 %v1283_v9, %v1275_v20  ;;  %v1277_v23 = vpop.f32.mrb[31].mxu1 }
 0x4a6   : > { %v1298_v13 = vmax.f32 %v1296_v12, %v1277_v23 }
 0x4a7   : > { %v1286_v15 = vmax.f32 %v1284_v16, %v1285_v21 }
 0x4a8   : > { %v1299_v26 = vmax.f32 %v1297_v18, %v1298_v13 }
 0x4a9   : > { %v1287_v28 = vrot.slane %v1286_v15, 4 }
 0x4aa   : > { %v1300_v30 = vrot.slane %v1299_v26, 4 }
 0x4ab   : > { %v1288_v37 = vmax.f32 %v1286_v15, %v1287_v28  ;;  %v1136_v15 = vmul.f32 0.00390625, %v5028_v51 }
 0x4ac   : > { %v1301_v32 = vmax.f32 %v1299_v26, %v1300_v30 }
 0x4ad   : > { %v1289_v34 = vrot.slane %v1288_v37, 2 }
 0x4ae   : > { %v1302_v35 = vrot.slane %v1301_v32, 2 }
 0x4af   : > { %v1290_v38 = vmax.f32 %v1288_v37, %v1289_v34 }
 0x4b0   : > { %v1303_v39 = vmax.f32 %v1301_v32, %v1302_v35  ;;  %v1137_v32 = vmul.f32 0.00390625, %v5034_v40 }
 0x4b1   : > { %v1291_v41 = vrot.slane %v1290_v38, 1 }
 0x4b2   : > { %v1304_v43 = vrot.slane %v1303_v39, 1 }
 0x4b3   : > { %v1292_v44 = vmax.f32 %v1290_v38, %v1291_v41 }
 0x4b4   : > { %v1305_v31 = vmax.f32 %v1303_v39, %v1304_v43  ;;  %v1138_v39 = vmul.f32 0.00390625, %v5037_v56 }
 0x4b5   : > { %v1320_v25 = vsub.f32 %v1275_v20, %v1292_v44  ;;  %v1306_v19 = vsub.f32 %v1233_v46, %v1292_v44  ;;  %v1308_v29 = vsub.f32 %v1239_v50, %v1292_v44  ;;  %v1310_v24 = vsub.f32 %v5086_v54, %v1292_v44 }
 0x4b6   : > { %v1321_v22 = vsub.f32 %v1277_v23, %v1305_v31  ;;  %v1307_v27 = vsub.f32 %v1235_v47, %v1305_v31  ;;  %v1309_v33 = vsub.f32 %v1241_v53, %v1305_v31  ;;  %v1311_v42 = vsub.f32 %v5089_v58, %v1305_v31 }
 0x4b7   : > { %v1350_v45 = vmul.f32 1.442695, %v1320_v25  ;;  %v1312_v55 = vsub.f32 %v5092_v59, %v1292_v44  ;;  %v1313_v57 = vsub.f32 %v5095_v62, %v1305_v31  ;;  %v1314_v61 = vsub.f32 %v5098_v3, %v1292_v44 }
 0x4b8   : > { %v1352_v63 = vmul.f32 1.442695, %v1321_v22  ;;  %v1315_v4 = vsub.f32 %v5101_v5, %v1305_v31  ;;  %v1316_v46 = vsub.f32 %v5104_v8, %v1292_v44  ;;  %v1317_v50 = vsub.f32 %v5107_v10, %v1305_v31 }
 0x4b9   : > { %4502 = vpow2.f32 %v1350_v45  ;;  %v1318_v47 = vsub.f32 %v5110_v14, %v1292_v44  ;;  %v1319_v53 = vsub.f32 %v5113_v17, %v1305_v31  ;;  %v1322_v54 = vmul.f32 1.442695, %v1306_v19 }
 0x4ba   : > { %4504 = vpow2.f32 %v1352_v63  ;;  %v1324_v58 = vmul.f32 1.442695, %v1307_v27  ;;  %v1326_v59 = vmul.f32 1.442695, %v1308_v29  ;;  %v1328_v7 = vmul.f32 1.442695, %v1309_v33 }
 0x4bb   : > { %4506 = vpow2.f32 %v1322_v54  ;;  %v1330_v62 = vmul.f32 1.442695, %v1310_v24  ;;  %v1332_v3 = vmul.f32 1.442695, %v1311_v42  ;;  %v1334_v5 = vmul.f32 1.442695, %v1312_v55 }
 0x4bc   : > { %4508 = vpow2.f32 %v1324_v58  ;;  %v1336_v8 = vmul.f32 1.442695, %v1313_v57  ;;  %v1338_v9 = vmul.f32 1.442695, %v1314_v61  ;;  %v1340_v10 = vmul.f32 1.442695, %v1315_v4 }
 0x4bd   : > { %4510 = vpow2.f32 %v1326_v59  ;;  %v1342_v12 = vmul.f32 1.442695, %v1316_v46  ;;  %v1344_v14 = vmul.f32 1.442695, %v1317_v50  ;;  %v1346_v17 = vmul.f32 1.442695, %v1318_v47 }
 0x4be   : > { %4512 = vpow2.f32 %v1328_v7  ;;  %v1135_v20 = vmul.f32 0.00390625, %v5030_v52  ;;  %v1348_v21 = vmul.f32 1.442695, %v1319_v53  ;;  %v1139_v25 = vmul.f32 0.00390625, %v5040_v60 }
 0x4bf   : > { %4514 = vpow2.f32 %v1330_v62  ;;  %v1140_v33 = vmul.f32 0.00390625, %v5043_v2  ;;  %v1141_v4 = vmul.f32 0.00390625, %v5048_v6  ;;  %v1142_v58 = vmul.f32 0.00390625, %v5051_v11 }
 0x4c0   : > { %4516 = vpow2.f32 %v1332_v3 }
 0x4c1   : > { %4518 = vpow2.f32 %v1334_v5 }
 0x4c2   : > { %4520 = vpow2.f32 %v1336_v8 }
 0x4c3   : > { %v4503_v16 = vpop.eup %4502  ;;  %4522 = vpow2.f32 %v1338_v9 }
 0x4c4   : > { %v4505_v18 = vpop.eup %4504  ;;  %4524 = vpow2.f32 %v1340_v10  ;;  %v1368_v3 = vmul.f32 %v4503_v16, %v1142_v58 }
 0x4c5   : > { %v4507_v23 = vpop.eup %4506  ;;  %4526 = vpow2.f32 %v1342_v12  ;;  %v1369_v8 = vmul.f32 %v4505_v18, %v1142_v58 }
 0x4c6   : > { %v4509_v13 = vpop.eup %4508  ;;  %4528 = vpow2.f32 %v1344_v14  ;;  %v5128_v26 = vmul.f32 %v4507_v23, %v1135_v20 }
 0x4c7   : > { %v4511_v28 = vpop.eup %4510  ;;  %4530 = vpow2.f32 %v1346_v17  ;;  %v5130_v30 = vmul.f32 %v4509_v13, %v1135_v20 }
 0x4c8   : > { %v4513_v37 = vpop.eup %4512  ;;  %4532 = vpow2.f32 %v1348_v21  ;;  %v5133_v34 = vmul.f32 %v4511_v28, %v1136_v15 }
 0x4c9   : > { %v4515_v52 = vpop.eup %4514  ;;  %v5135_v35 = vmul.f32 %v4513_v37, %v1136_v15 }
 0x4ca   : > { %v4517_v38 = vpop.eup %4516  ;;  %v5138_v51 = vmul.f32 %v4515_v52, %v1137_v32  ;;  %v1370_v41 = vadd.f32 %v5133_v34, %v5128_v26 }
 0x4cb   : > { %v4519_v43 = vpop.eup %4518  ;;  %v5142_v44 = vmul.f32 %v4517_v38, %v1137_v32  ;;  %v1383_v40 = vadd.f32 %v5135_v35, %v5130_v30 }
 0x4cc   : > { %v4521_v31 = vpop.eup %4520  ;;  %v1360_v19 = vmul.f32 %v4519_v43, %v1138_v39  ;;  %v1371_v29 = vadd.f32 %v1370_v41, %v5138_v51 }
 0x4cd   : > { %v4523_v24 = vpop.eup %4522  ;;  %v1361_v22 = vmul.f32 %v4521_v31, %v1138_v39  ;;  %v1384_v56 = vadd.f32 %v1383_v40, %v5142_v44 }
 0x4ce   : > { %v4525_v27 = vpop.eup %4524  ;;  %v1362_v42 = vmul.f32 %v4523_v24, %v1139_v25  ;;  %v1372_v45 = vadd.f32 %v1371_v29, %v1360_v19 }
 0x4cf   : > { %v4527_v55 = vpop.eup %4526  ;;  %v1363_v57 = vmul.f32 %v4525_v27, %v1139_v25  ;;  %v1385_v61 = vadd.f32 %v1384_v56, %v1361_v22 }
 0x4d0   : > { %v4529_v63 = vpop.eup %4528  ;;  %v1364_v46 = vmul.f32 %v4527_v55, %v1140_v33  ;;  %v1373_v60 = vadd.f32 %v1372_v45, %v1362_v42 }
 0x4d1   : > { %v4531_v50 = vpop.eup %4530  ;;  %v1365_v47 = vmul.f32 %v4529_v63, %v1140_v33  ;;  %v1386_v53 = vadd.f32 %v1385_v61, %v1363_v57 }
 0x4d2   : > { %v4533_v54 = vpop.eup %4532  ;;  %v1366_v59 = vmul.f32 %v4531_v50, %v1141_v4  ;;  %v1374_v7 = vadd.f32 %v1373_v60, %v1364_v46 }
 0x4d3   : > { %v1367_v62 = vmul.f32 %v4533_v54, %v1141_v4  ;;  %v1387_v2 = vadd.f32 %v1386_v53, %v1365_v47 }
 0x4d4   : > { %v1375_v5 = vadd.f32 %v1374_v7, %v1366_v59 }
 0x4d5   : > { %v1388_v9 = vadd.f32 %v1387_v2, %v1367_v62 }
 0x4d6   : > { %v1376_v10 = vadd.f32 %v1375_v5, %v1368_v3 }
 0x4d7   : > { %v1389_v12 = vadd.f32 %v1388_v9, %v1369_v8 }
 0x4d8   : > { %v1377_v14 = vrot.slane %v1376_v10, 4 }
 0x4d9   : > { %v1390_v6 = vrot.slane %v1389_v12, 4 }
 0x4da   : > { %v1378_v17 = vadd.f32 %v1377_v14, %v1376_v10 }
 0x4db   : > { %v1391_v20 = vadd.f32 %v1390_v6, %v1389_v12 }
 0x4dc   : > { %v1379_v21 = vrot.slane %v1378_v17, 2 }
 0x4dd   : > { %v1392_v23 = vrot.slane %v1391_v20, 2 }
 0x4de   : > { %v1380_v13 = vadd.f32 %v1379_v21, %v1378_v17 }
 0x4df   : > { %v1393_v15 = vadd.f32 %v1392_v23, %v1391_v20 }
 0x4e0   : > { %v1381_v28 = vrot.slane %v1380_v13, 1 }
 0x4e1   : > { %v1394_v11 = vrot.slane %v1393_v15, 1 }
 0x4e2   : > { %v1382_v37 = vadd.f32 %v1381_v28, %v1380_v13 }
 0x4e3   : > { %v1395_v32 = vadd.f32 %v1394_v11, %v1393_v15 }
 0x4e4   : > { %v1396_v52 = vadd.f32 1e-18, %v1382_v37 }
 0x4e5   : > { %v1397_v38 = vadd.f32 1e-18, %v1395_v32 }
 0x4e6   : > { %4534 = vrcp.f32 %v1396_v52 }
 0x4e7   : > { %4536 = vrcp.f32 %v1397_v38 }
 0x4f0   : > { %v4535_v16 = vpop.eup %4534 }
 0x4f1   : > { %v4537_v18 = vpop.eup %4536  ;;  %v5152_v39 = vmul.f32 %v4535_v16, %v1360_v19  ;;  %v1399_v41 = vmul.f32 %v4535_v16, %v5128_v26  ;;  %v5155_v43 = vmul.f32 %v4535_v16, %v1364_v46  ;;  %v1402_v40 = vmul.f32 %v4535_v16, %v5133_v34 }
 0x4f2   : > { %v5158_v31 = vmul.f32 %v4537_v18, %v1361_v22  ;;  %v1401_v25 = vmul.f32 %v4537_v18, %v5130_v30  ;;  %v5161_v29 = vmul.f32 %v4537_v18, %v1365_v47  ;;  %v1403_v24 = vmul.f32 %v4537_v18, %v5135_v35 }
 0x4f3   : > { %v5164_v56 = vmul.f32 %v4535_v16, %v1368_v3  ;;  %v5166_v27 = vmul.f32 %v4537_v18, %v1369_v8  ;;  %v1404_v19 = vmul.f32 %v4535_v16, %v5138_v51  ;;  %v1405_v26 = vmul.f32 %v4537_v18, %v5142_v44 }
 0x4f4   : > { %v1425_v33 = vadd.f32 %v5158_v31, %v5152_v39  ;;  %v1416_v34 = vadd.f32 %v1401_v25, %v1399_v41  ;;  %v5172_v22 = vmul.f32 %v4535_v16, %v1362_v42  ;;  %v5174_v45 = vmul.f32 %v4537_v18, %v1363_v57 }
 0x4f5   : > { %v5176_v30 = vmul.f32 %v4535_v16, %v1366_v59  ;;  %v5178_v35 = vmul.f32 %v4537_v18, %v1367_v62  ;;  %v1431_v55 = vadd.f32 %v5161_v29, %v5155_v43  ;;  %v1419_v51 = vadd.f32 %v1403_v24, %v1402_v40 }
 0x4f6   : > { %1426 = vadd.xlane.f32.xlu0 %v1425_v33  ;;  %1417 = vadd.xlane.f32.xlu1 %v1416_v34  ;;  %v1437_v44 = vadd.f32 %v5166_v27, %v5164_v56  ;;  %v1422_v61 = vadd.f32 %v1405_v26, %v1404_v19  ;;  %v1428_v42 = vadd.f32 %v5174_v45, %v5172_v22 }
 0x4f7   : > { %v1434_v57 = vadd.f32 %v5178_v35, %v5176_v30 }
 0x4fa   : > { %1432 = vadd.xlane.f32.xlu0 %v1431_v55  ;;  %1420 = vadd.xlane.f32.xlu1 %v1419_v51 }
 0x4fe   : > { %1438 = vadd.xlane.f32.xlu0 %v1437_v44  ;;  %1423 = vadd.xlane.f32.xlu1 %v1422_v61 }
 0x502   : > { %1429 = vadd.xlane.f32.xlu1 %v1428_v42 }
 0x506   : > { %1435 = vadd.xlane.f32.xlu1 %v1434_v57 }
 0x583   : > { %v5188_v63 = vpop.xlane.xlu1 %1417  ;;  %v5191_v46 = vpop.xlane.xlu0 %1426 }
 0x584   : > { %v1440_v4 = vadd.f32 1e-18, %v5188_v63  ;;  %v1443_v47 = vadd.f32 1e-18, %v5191_v46 }
 0x586   : > { %4538 = vrcp.f32 %v1440_v4 }
 0x587   : > { %v5193_v60 = vpop.xlane.xlu1 %1420  ;;  %v5202_v59 = vpop.xlane.xlu0 %1432 }
 0x588   : > { %v1441_v50 = vadd.f32 1e-18, %v5193_v60  ;;  %v1445_v5 = vadd.f32 1e-18, %v5202_v59 }
 0x58a   : > { %4540 = vrcp.f32 %v1441_v50 }
 0x58b   : > { %v5197_v53 = vpop.xlane.xlu1 %1423  ;;  %4542 = vrcp.f32 %v1443_v47  ;;  %v5211_v17 = vpop.xlane.xlu0 %1438 }
 0x58c   : > { %v1442_v54 = vadd.f32 1e-18, %v5197_v53  ;;  %v1447_v13 = vadd.f32 1e-18, %v5211_v17 }
 0x58e   : > { %4544 = vrcp.f32 %v1442_v54 }
 0x58f   : > { %v5200_v58 = vpop.xlane.xlu1 %1429 }
 0x590   : > { %v1444_v7 = vadd.f32 1e-18, %v5200_v58  ;;  %v4539_v62 = vpop.eup %4538 }
 0x591   : > { %v1450_v2 = vmul.f32 %v4539_v62, %v1401_v25  ;;  %v1449_v3 = vmul.f32 %v4539_v62, %v1399_v41 }
 0x592   : > { %4546 = vrcp.f32 %v1444_v7 }
 0x593   : > { %1536 = vmatprep.mubr.f32.mxu0 %v1450_v2  ;;  %v5206_v8 = vpop.xlane.xlu1 %1435  ;;  %4548 = vrcp.f32 %v1445_v5 }
 0x594   : > { %v4541_v9 = vpop.eup %4540  ;;  %1537 = vmatmul.mubr.f32.vlgmr.msra.gmra.mrb[24].mxu0 %v1449_v3  ;;  %v1446_v14 = vadd.f32 1e-18, %v5206_v8 }
 0x595   : > { %4293 = vmatpush1.bf16.xpose.msra.mxu0 %v4881_v36  ;;  %v1453_v10 = vmul.f32 %v4541_v9, %v1403_v24  ;;  %v1452_v12 = vmul.f32 %v4541_v9, %v1402_v40  ;;  %v4543_v6 = vpop.eup %4542 }
 0x596   : > { %4295 = vmatprep.subr.bf16.mxu0 %v4891_v49  ;;  %4550 = vrcp.f32 %v1446_v14  ;;  %v1459_v36 = vmul.f32 %v4543_v6, %v5158_v31  ;;  %v1458_v49 = vmul.f32 %v4543_v6, %v5152_v39 }
 0x597   : > { %1541 = vmatprep.mubr.f32.mxu0 %v1453_v10  ;;  %4552 = vrcp.f32 %v1447_v13 }
 0x598   : > { %v4545_v20 = vpop.eup %4544  ;;  %1542 = vmatmul.mubr.f32.gmra.mrb[26].mxu0 %v1452_v12 }
 0x599   : > { %v1456_v21 = vmul.f32 %v4545_v20, %v1405_v26  ;;  %v1455_v23 = vmul.f32 %v4545_v20, %v1404_v19 }
 0x59b   : > { %1546 = vmatprep.mubr.f32.mxu0 %v1456_v21 }
 0x59c   : > { %v4547_v15 = vpop.eup %4546  ;;  %1547 = vmatmul.mubr.f32.gmra.mrb[28].mxu0 %v1455_v23 }
 0x59d   : > { %4297 = vmatpush1.bf16.xpose.msra.mxu0 %v4889_v48  ;;  %1551 = vmatprep.mubr.f32.mxu0 %v1459_v36  ;;  %v1462_v28 = vmul.f32 %v4547_v15, %v5174_v45  ;;  %v4549_v11 = vpop.eup %4548  ;;  %v1461_v37 = vmul.f32 %v4547_v15, %v5172_v22 }
 0x59e   : > { %v1465_v32 = vmul.f32 %v4549_v11, %v5161_v29  ;;  %v1464_v38 = vmul.f32 %v4549_v11, %v5155_v43 }
 0x5a0   : > { %1552 = vmatmul.mubr.f32.gmra.mrb[30].mxu0 %v1458_v49  ;;  %v4551_v52 = vpop.eup %4550 }
 0x5a1   : > { %1556 = vmatprep.mubr.f32.mxu0 %v1462_v28  ;;  %v1468_v48 = vmul.f32 %v4551_v52, %v5178_v35  ;;  %v4553_v16 = vpop.eup %4552  ;;  %v1467_v18 = vmul.f32 %v4551_v52, %v5176_v30 }
 0x5a2   : > { %v1471_v39 = vmul.f32 %v4553_v16, %v5166_v27  ;;  %v1470_v41 = vmul.f32 %v4553_v16, %v5164_v56 }
 0x5a4   : > { %1557 = vmatmul.mubr.f32.gmra.mrb[32].mxu0 %v1461_v37 }
 0x5a5   : > { %1561 = vmatprep.mubr.f32.mxu0 %v1465_v32 }
 0x5a8   : > { %1562 = vmatmul.mubr.f32.gmra.mrb[34].mxu0 %v1464_v38 }
 0x5a9   : > { %1566 = vmatprep.mubr.f32.mxu0 %v1468_v48 }
 0x5ac   : > { %1567 = vmatmul.mubr.f32.gmra.mrb[36].mxu0 %v1467_v18 }
 0x5ad   : > { %1571 = vmatprep.mubr.f32.mxu0 %v1471_v39 }
 0x5b0   : > { %1572 = vmatmul.mubr.f32.gmra.mrb[38].mxu0 %v1470_v41 }
 0x667   : > { %v1538_v40 = vpop.f32.mrb[24].mxu0 }
 0x668   : > { %v1540_v31 = vpop.f32.mrb[25].mxu0  ;;  %3936 = vmatmul.mubr.msk.f32.vlgmr.msra.gmra.mrb[32].mxu1 %vm660_vm2, %v1538_v40 }
 0x669   : > { %1679 = vmatprep.mubr.f32.mxu1 %v6106_v0 }
 0x66b   : > { %v1543_v43 = vpop.f32.mrb[26].mxu0 }
 0x66c   : > { %v1545_v25 = vpop.f32.mrb[27].mxu0  ;;  %3937 = vmatmul.mubr.msk.f32.gmra.mrb[34].mxu1 %vm660_vm2, %v1543_v43 }
 0x66d   : > { %1685 = vmatprep.mubr.f32.mxu1 %v6106_v0 }
 0x66f   : > { %v1548_v29 = vpop.f32.mrb[28].mxu0 }
 0x670   : > { %v1550_v24 = vpop.f32.mrb[29].mxu0  ;;  %3938 = vmatmul.mubr.msk.f32.gmra.mrb[36].mxu1 %vm660_vm2, %v1548_v29 }
 0x671   : > { %1691 = vmatprep.mubr.f32.mxu1 %v6106_v0 }
 0x673   : > { %v1553_v56 = vpop.f32.mrb[30].mxu0 }
 0x674   : > { %v1555_v27 = vpop.f32.mrb[31].mxu0  ;;  %3939 = vmatmul.mubr.msk.f32.gmra.mrb[38].mxu1 %vm660_vm2, %v1553_v56 }
 0x675   : > { %1697 = vmatprep.mubr.f32.mxu1 %v6106_v0 }
 0x677   : > { %v1558_v19 = vpop.f32.mrb[32].mxu0 }
 0x678   : > { %v1560_v26 = vpop.f32.mrb[33].mxu0  ;;  %3940 = vmatmul.mubr.msk.f32.gmra.mrb[40].mxu1 %vm660_vm2, %v1558_v19 }
 0x679   : > { %1703 = vmatprep.mubr.f32.mxu1 %v6106_v0 }
 0x67b   : > { %v1563_v33 = vpop.f32.mrb[34].mxu0 }
 0x67c   : > { %v1565_v34 = vpop.f32.mrb[35].mxu0  ;;  %3941 = vmatmul.mubr.msk.f32.gmra.mrb[42].mxu1 %vm660_vm2, %v1563_v33 }
 0x67d   : > { %1709 = vmatprep.mubr.f32.mxu1 %v6106_v0 }
 0x67f   : > { %v1568_v22 = vpop.f32.mrb[36].mxu0 }
 0x680   : > { %v1570_v45 = vpop.f32.mrb[37].mxu0  ;;  %3942 = vmatmul.mubr.msk.f32.gmra.mrb[44].mxu1 %vm660_vm2, %v1568_v22 }
 0x681   : > { %1715 = vmatprep.mubr.f32.mxu1 %v6106_v0 }
 0x683   : > { %v1573_v30 = vpop.f32.mrb[38].mxu0 }
 0x684   : > { %v1575_v35 = vpop.f32.mrb[39].mxu0  ;;  %3943 = vmatmul.mubr.msk.f32.gmra.mrb[46].mxu1 %vm660_vm2, %v1573_v30 }
 0x73b   : > { %v1675_v55 = vpop.f32.mrb[32].mxu1 }
 0x73c   : > { %v1677_v51 = vpop.f32.mrb[33].mxu1 }
 0x73f   : > { %v1681_v44 = vpop.f32.mrb[34].mxu1 }
 0x740   : > { %v1683_v61 = vpop.f32.mrb[35].mxu1 }
 0x743   : > { %v5240_v42 = vpop.f32.mrb[36].mxu1 }
 0x744   : > { %v1722_v57 = vmax.f32 %v1675_v55, %v5240_v42  ;;  %v5243_v4 = vpop.f32.mrb[37].mxu1 }
 0x745   : > { %v1735_v50 = vmax.f32 %v1677_v51, %v5243_v4 }
 0x747   : > { %v5246_v47 = vpop.f32.mrb[38].mxu1 }
 0x748   : > { %v1723_v54 = vmax.f32 %v1681_v44, %v5246_v47  ;;  %v5249_v7 = vpop.f32.mrb[39].mxu1 }
 0x749   : > { %v1736_v62 = vmax.f32 %v1683_v61, %v5249_v7 }
 0x74b   : > { %v5252_v2 = vpop.f32.mrb[40].mxu1 }
 0x74c   : > { %v1724_v3 = vmax.f32 %v1722_v57, %v5252_v2  ;;  %v5255_v5 = vpop.f32.mrb[41].mxu1 }
 0x74d   : > { %v1737_v9 = vmax.f32 %v1735_v50, %v5255_v5 }
 0x74f   : > { %v5258_v10 = vpop.f32.mrb[42].mxu1 }
 0x750   : > { %v1725_v12 = vmax.f32 %v1723_v54, %v5258_v10  ;;  %v5261_v14 = vpop.f32.mrb[43].mxu1 }
 0x751   : > { %v1738_v6 = vmax.f32 %v1736_v62, %v5261_v14 }
 0x753   : > { %v5264_v20 = vpop.f32.mrb[44].mxu1 }
 0x754   : > { %v1726_v21 = vmax.f32 %v1724_v3, %v5264_v20  ;;  %v5267_v23 = vpop.f32.mrb[45].mxu1 }
 0x755   : > { %v1739_v13 = vmax.f32 %v1737_v9, %v5267_v23 }
 0x757   : > { %v1717_v36 = vpop.f32.mrb[46].mxu1 }
 0x758   : > { %v1727_v15 = vmax.f32 %v1725_v12, %v1717_v36  ;;  %v1719_v49 = vpop.f32.mrb[47].mxu1 }
 0x759   : > { %v1740_v28 = vmax.f32 %v1738_v6, %v1719_v49 }
 0x75a   : > { %v1728_v11 = vmax.f32 %v1726_v21, %v1727_v15  ;;  %v1577_v21 = vmul.f32 0.00390625, %v5188_v63  ;;  %v1578_v15 = vmul.f32 0.00390625, %v5193_v60 }
 0x75b   : > { %v1741_v37 = vmax.f32 %v1739_v13, %v1740_v28 }
 0x75c   : > { %v1729_v32 = vrot.slane %v1728_v11, 4 }
 0x75d   : > { %v1742_v52 = vrot.slane %v1741_v37, 4 }
 0x75e   : > { %v1730_v38 = vmax.f32 %v1728_v11, %v1729_v32  ;;  %v1579_v32 = vmul.f32 0.00390625, %v5197_v53 }
 0x75f   : > { %v1743_v48 = vmax.f32 %v1741_v37, %v1742_v52 }
 0x760   : > { %v1731_v16 = vrot.slane %v1730_v38, 2 }
 0x761   : > { %v1744_v18 = vrot.slane %v1743_v48, 2 }
 0x762   : > { %v1732_v39 = vmax.f32 %v1730_v38, %v1731_v16  ;;  %v1580_v16 = vmul.f32 0.00390625, %v5191_v46 }
 0x763   : > { %v1745_v41 = vmax.f32 %v1743_v48, %v1744_v18 }
 0x764   : > { %v1733_v40 = vrot.slane %v1732_v39, 1 }
 0x765   : > { %v1746_v31 = vrot.slane %v1745_v41, 1 }
 0x766   : > { %v1734_v43 = vmax.f32 %v1732_v39, %v1733_v40 }
 0x767   : > { %v1747_v25 = vmax.f32 %v1745_v41, %v1746_v31 }
 0x768   : > { %v1762_v29 = vsub.f32 %v1717_v36, %v1734_v43  ;;  %v1748_v24 = vsub.f32 %v1675_v55, %v1734_v43  ;;  %v1750_v56 = vsub.f32 %v1681_v44, %v1734_v43  ;;  %v1752_v27 = vsub.f32 %v5240_v42, %v1734_v43 }
 0x769   : > { %v1763_v19 = vsub.f32 %v1719_v49, %v1747_v25  ;;  %v1749_v26 = vsub.f32 %v1677_v51, %v1747_v25  ;;  %v1751_v33 = vsub.f32 %v1683_v61, %v1747_v25  ;;  %v1753_v34 = vsub.f32 %v5243_v4, %v1747_v25 }
 0x76a   : > { %v1792_v22 = vmul.f32 1.442695, %v1762_v29  ;;  %v1754_v45 = vsub.f32 %v5246_v47, %v1734_v43  ;;  %v1755_v30 = vsub.f32 %v5249_v7, %v1747_v25  ;;  %v1756_v35 = vsub.f32 %v5252_v2, %v1734_v43 }
 0x76b   : > { %v1794_v57 = vmul.f32 1.442695, %v1763_v19  ;;  %v1757_v50 = vsub.f32 %v5255_v5, %v1747_v25  ;;  %v1758_v55 = vsub.f32 %v5258_v10, %v1734_v43  ;;  %v1759_v44 = vsub.f32 %v5261_v14, %v1747_v25 }
 0x76c   : > { %4554 = vpow2.f32 %v1792_v22  ;;  %v1760_v51 = vsub.f32 %v5264_v20, %v1734_v43  ;;  %v1761_v61 = vsub.f32 %v5267_v23, %v1747_v25  ;;  %v1764_v42 = vmul.f32 1.442695, %v1748_v24 }
 0x76d   : > { %4556 = vpow2.f32 %v1794_v57  ;;  %v1766_v4 = vmul.f32 1.442695, %v1749_v26  ;;  %v1768_v47 = vmul.f32 1.442695, %v1750_v56  ;;  %v1770_v54 = vmul.f32 1.442695, %v1751_v33 }
 0x76e   : > { %4558 = vpow2.f32 %v1764_v42  ;;  %v1772_v7 = vmul.f32 1.442695, %v1752_v27  ;;  %v1774_v62 = vmul.f32 1.442695, %v1753_v34  ;;  %v1776_v2 = vmul.f32 1.442695, %v1754_v45 }
 0x76f   : > { %4560 = vpow2.f32 %v1766_v4  ;;  %v1778_v3 = vmul.f32 1.442695, %v1755_v30  ;;  %v1780_v5 = vmul.f32 1.442695, %v1756_v35  ;;  %v1782_v9 = vmul.f32 1.442695, %v1757_v50 }
 0x770   : > { %4562 = vpow2.f32 %v1768_v47  ;;  %v1784_v10 = vmul.f32 1.442695, %v1758_v55  ;;  %v1786_v12 = vmul.f32 1.442695, %v1759_v44  ;;  %v1788_v6 = vmul.f32 1.442695, %v1760_v51 }
 0x771   : > { %4564 = vpow2.f32 %v1770_v54  ;;  %v1790_v23 = vmul.f32 1.442695, %v1761_v61  ;;  %v1581_v43 = vmul.f32 0.00390625, %v5200_v58  ;;  %v1582_v19 = vmul.f32 0.00390625, %v5202_v59 }
 0x772   : > { %4566 = vpow2.f32 %v1772_v7  ;;  %v1583_v30 = vmul.f32 0.00390625, %v5206_v8  ;;  %v1584_v51 = vmul.f32 0.00390625, %v5211_v17 }
 0x773   : > { %4568 = vpow2.f32 %v1774_v62 }
 0x774   : > { %4570 = vpow2.f32 %v1776_v2 }
 0x775   : > { %4572 = vpow2.f32 %v1778_v3 }
 0x776   : > { %v4555_v14 = vpop.eup %4554  ;;  %4574 = vpow2.f32 %v1780_v5 }
 0x777   : > { %v4557_v20 = vpop.eup %4556  ;;  %4576 = vpow2.f32 %v1782_v9  ;;  %v1810_v47 = vmul.f32 %v4555_v14, %v1584_v51 }
 0x778   : > { %v4559_v13 = vpop.eup %4558  ;;  %4578 = vpow2.f32 %v1784_v10  ;;  %v1811_v7 = vmul.f32 %v4557_v20, %v1584_v51 }
 0x779   : > { %v4561_v36 = vpop.eup %4560  ;;  %4580 = vpow2.f32 %v1786_v12  ;;  %v5282_v49 = vmul.f32 %v4559_v13, %v1577_v21 }
 0x77a   : > { %v4563_v28 = vpop.eup %4562  ;;  %4582 = vpow2.f32 %v1788_v6  ;;  %v5284_v11 = vmul.f32 %v4561_v36, %v1577_v21 }
 0x77b   : > { %v4565_v37 = vpop.eup %4564  ;;  %4584 = vpow2.f32 %v1790_v23  ;;  %v1798_v52 = vmul.f32 %v4563_v28, %v1578_v15 }
 0x77c   : > { %v4567_v63 = vpop.eup %4566  ;;  %v5287_v38 = vmul.f32 %v4565_v37, %v1578_v15 }
 0x77d   : > { %v4569_v48 = vpop.eup %4568  ;;  %v1800_v18 = vmul.f32 %v4567_v63, %v1579_v32  ;;  %v1812_v60 = vadd.f32 %v1798_v52, %v5282_v49 }
 0x77e   : > { %v4571_v39 = vpop.eup %4570  ;;  %v1801_v41 = vmul.f32 %v4569_v48, %v1579_v32  ;;  %v1825_v40 = vadd.f32 %v5287_v38, %v5284_v11 }
 0x77f   : > { %v4573_v31 = vpop.eup %4572  ;;  %v1802_v53 = vmul.f32 %v4571_v39, %v1580_v16  ;;  %v1813_v25 = vadd.f32 %v1812_v60, %v1800_v18 }
 0x780   : > { %v4575_v29 = vpop.eup %4574  ;;  %v1803_v24 = vmul.f32 %v4573_v31, %v1580_v16  ;;  %v1826_v56 = vadd.f32 %v1825_v40, %v1801_v41 }
 0x781   : > { %v4577_v27 = vpop.eup %4576  ;;  %v1804_v46 = vmul.f32 %v4575_v29, %v1581_v43  ;;  %v1814_v26 = vadd.f32 %v1813_v25, %v1802_v53 }
 0x782   : > { %v4579_v33 = vpop.eup %4578  ;;  %v1805_v34 = vmul.f32 %v4577_v27, %v1581_v43  ;;  %v1827_v22 = vadd.f32 %v1826_v56, %v1803_v24 }
 0x783   : > { %v4581_v45 = vpop.eup %4580  ;;  %v1806_v35 = vmul.f32 %v4579_v33, %v1582_v19  ;;  %v1815_v57 = vadd.f32 %v1814_v26, %v1804_v46 }
 0x784   : > { %v4583_v50 = vpop.eup %4582  ;;  %v1807_v58 = vmul.f32 %v4581_v45, %v1582_v19  ;;  %v1828_v55 = vadd.f32 %v1827_v22, %v1805_v34 }
 0x785   : > { %v4585_v44 = vpop.eup %4584  ;;  %v1808_v61 = vmul.f32 %v4583_v50, %v1583_v30  ;;  %v1816_v42 = vadd.f32 %v1815_v57, %v1806_v35 }
 0x786   : > { %v1809_v4 = vmul.f32 %v4585_v44, %v1583_v30  ;;  %v1829_v59 = vadd.f32 %v1828_v55, %v1807_v58 }
 0x787   : > { %v1817_v54 = vadd.f32 %v1816_v42, %v1808_v61 }
 0x788   : > { %v1830_v62 = vadd.f32 %v1829_v59, %v1809_v4 }
 0x789   : > { %v1818_v2 = vadd.f32 %v1817_v54, %v1810_v47 }
 0x78a   : > { %v1831_v3 = vadd.f32 %v1830_v62, %v1811_v7 }
 0x78b   : > { %v1819_v5 = vrot.slane %v1818_v2, 4 }
 0x78c   : > { %v1832_v8 = vrot.slane %v1831_v3, 4 }
 0x78d   : > { %v1820_v9 = vadd.f32 %v1819_v5, %v1818_v2 }
 0x78e   : > { %v1833_v10 = vadd.f32 %v1832_v8, %v1831_v3 }
 0x78f   : > { %v1821_v12 = vrot.slane %v1820_v9, 2 }
 0x790   : > { %v1834_v6 = vrot.slane %v1833_v10, 2 }
 0x791   : > { %v1822_v21 = vadd.f32 %v1821_v12, %v1820_v9 }
 0x792   : > { %v1835_v23 = vadd.f32 %v1834_v6, %v1833_v10 }
 0x793   : > { %v1823_v13 = vrot.slane %v1822_v21, 1 }
 0x794   : > { %v1836_v17 = vrot.slane %v1835_v23, 1 }
 0x795   : > { %v1824_v36 = vadd.f32 %v1823_v13, %v1822_v21 }
 0x796   : > { %v1837_v15 = vadd.f32 %v1836_v17, %v1835_v23 }
 0x797   : > { %v1838_v28 = vadd.f32 1e-18, %v1824_v36 }
 0x798   : > { %v1839_v37 = vadd.f32 1e-18, %v1837_v15 }
 0x799   : > { %4586 = vrcp.f32 %v1838_v28 }
 0x79a   : > { %4588 = vrcp.f32 %v1839_v37 }
 0x7a3   : > { %v4587_v14 = vpop.eup %4586 }
 0x7a4   : > { %v4589_v20 = vpop.eup %4588  ;;  %v5297_v32 = vmul.f32 %v4587_v14, %v1798_v52  ;;  %v5300_v63 = vmul.f32 %v4587_v14, %v5282_v49  ;;  %v5302_v48 = vmul.f32 %v4587_v14, %v1802_v53  ;;  %v5304_v16 = vmul.f32 %v4587_v14, %v1800_v18 }
 0x7a5   : > { %v5307_v60 = vmul.f32 %v4589_v20, %v5287_v38  ;;  %v5310_v39 = vmul.f32 %v4589_v20, %v5284_v11  ;;  %v5312_v40 = vmul.f32 %v4589_v20, %v1803_v24  ;;  %v5314_v31 = vmul.f32 %v4589_v20, %v1801_v41 }
 0x7a6   : > { %v5316_v43 = vmul.f32 %v4587_v14, %v1806_v35  ;;  %v5318_v52 = vmul.f32 %v4589_v20, %v1807_v58  ;;  %v5320_v49 = vmul.f32 %v4587_v14, %v1804_v46  ;;  %v5322_v53 = vmul.f32 %v4589_v20, %v1805_v34 }
 0x7a7   : > { %v1861_v18 = vadd.f32 %v5307_v60, %v5297_v32  ;;  %v1858_v38 = vadd.f32 %v5310_v39, %v5300_v63  ;;  %v5328_v11 = vmul.f32 %v4587_v14, %v1810_v47  ;;  %v5330_v25 = vmul.f32 %v4589_v20, %v1811_v7 }
 0x7a8   : > { %v5332_v41 = vmul.f32 %v4587_v14, %v1808_v61  ;;  %v5334_v29 = vmul.f32 %v4589_v20, %v1809_v4  ;;  %v1867_v24 = vadd.f32 %v5312_v40, %v5302_v48  ;;  %v1864_v56 = vadd.f32 %v5314_v31, %v5304_v16 }
 0x7a9   : > { %6110 = vst [vmem:[#allocation5_spill] sm:$0xff] %v5328_v11  ;;  %1862 = vadd.xlane.f32.xlu0 %v1861_v18  ;;  %1859 = vadd.xlane.f32.xlu1 %v1858_v38  ;;  %v1873_v27 = vadd.f32 %v5318_v52, %v5316_v43  ;;  %v1870_v19 = vadd.f32 %v5322_v53, %v5320_v49 }
 0x7aa   : > { %v1879_v46 = vadd.f32 %v5330_v25, %v5328_v11  ;;  %v1876_v26 = vadd.f32 %v5334_v29, %v5332_v41 }
 0x7ad   : > { %1868 = vadd.xlane.f32.xlu0 %v1867_v24  ;;  %1865 = vadd.xlane.f32.xlu1 %v1864_v56 }
 0x7b1   : > { %1874 = vadd.xlane.f32.xlu0 %v1873_v27  ;;  %1871 = vadd.xlane.f32.xlu1 %v1870_v19 }
 0x7b5   : > { %1880 = vadd.xlane.f32.xlu0 %v1879_v46  ;;  %1877 = vadd.xlane.f32.xlu1 %v1876_v26 }
 0x836   : > { %v1863_v33 = vpop.xlane.xlu0 %1862  ;;  %v1860_v34 = vpop.xlane.xlu1 %1859 }
 0x837   : > { %v1883_v22 = vadd.f32 1e-18, %v1863_v33  ;;  %v5348_v45 = vmul.f32 0.00390625, %v1863_v33  ;;  %v1882_v30 = vadd.f32 1e-18, %v1860_v34  ;;  %v5350_v35 = vmul.f32 0.00390625, %v1860_v34 }
 0x839   : > { %4590 = vrcp.f32 %v1883_v22 }
 0x83a   : > { %4592 = vrcp.f32 %v1882_v30  ;;  %v1869_v57 = vpop.xlane.xlu0 %1868  ;;  %v1866_v50 = vpop.xlane.xlu1 %1865 }
 0x83b   : > { %v5352_v58 = vmul.f32 0.00390625, %v1869_v57  ;;  %v1884_v55 = vadd.f32 1e-18, %v1866_v50  ;;  %v5354_v44 = vmul.f32 0.00390625, %v1866_v50  ;;  %v1885_v51 = vadd.f32 1e-18, %v1869_v57 }
 0x83d   : > { %4594 = vrcp.f32 %v1884_v55 }
 0x83e   : > { %v1875_v61 = vpop.xlane.xlu0 %1874  ;;  %v1872_v42 = vpop.xlane.xlu1 %1871  ;;  %4596 = vrcp.f32 %v1885_v51 }
 0x83f   : > { %v5356_v4 = vmul.f32 0.00390625, %v1875_v61  ;;  %v5358_v59 = vmul.f32 0.00390625, %v1872_v42  ;;  %v1886_v47 = vadd.f32 1e-18, %v1872_v42  ;;  %v1887_v10 = vadd.f32 1e-18, %v1875_v61 }
 0x841   : > { %4598 = vrcp.f32 %v1886_v47 }
 0x842   : > { %v1881_v54 = vpop.xlane.xlu0 %1880  ;;  %v1878_v7 = vpop.xlane.xlu1 %1877  ;;  %4600 = vrcp.f32 %v1887_v10 }
 0x843   : > { %v4591_v62 = vpop.eup %4590  ;;  %v5360_v2 = vmul.f32 0.00390625, %v1881_v54  ;;  %v5362_v3 = vmul.f32 0.00390625, %v1878_v7  ;;  %v1888_v21 = vadd.f32 1e-18, %v1878_v7  ;;  %v1889_v36 = vadd.f32 1e-18, %v1881_v54 }
 0x844   : > { %v4593_v5 = vpop.eup %4592  ;;  %v1895_v12 = vmul.f32 %v4591_v62, %v5307_v60  ;;  %v1894_v23 = vmul.f32 %v4591_v62, %v5297_v32 }
 0x845   : > { %v1892_v8 = vmul.f32 %v4593_v5, %v5310_v39  ;;  %v1891_v9 = vmul.f32 %v4593_v5, %v5300_v63  ;;  %4602 = vrcp.f32 %v1888_v21 }
 0x846   : > { %4604 = vrcp.f32 %v1889_v36 }
 0x847   : > { %1978 = vmatprep.mubr.f32.mxu0 %v1892_v8  ;;  %v4595_v6 = vpop.eup %4594 }
 0x848   : > { %1979 = vmatmul.mubr.f32.vlgmr.msra.gmra.mrb[40].mxu0 %v1891_v9  ;;  %v1898_v13 = vmul.f32 %v4595_v6, %v5314_v31  ;;  %v4597_v17 = vpop.eup %4596  ;;  %v1897_v15 = vmul.f32 %v4595_v6, %v5304_v16 }
 0x849   : > { %1983 = vmatprep.mubr.f32.mxu0 %v1895_v12  ;;  %v1901_v28 = vmul.f32 %v4597_v17, %v5312_v40  ;;  %v1900_v14 = vmul.f32 %v4597_v17, %v5302_v48 }
 0x84b   : > { %v4599_v37 = vpop.eup %4598 }
 0x84c   : > { %1984 = vmatmul.mubr.f32.gmra.mrb[42].mxu0 %v1894_v23  ;;  %v1904_v20 = vmul.f32 %v4599_v37, %v5322_v53  ;;  %v4601_v18 = vpop.eup %4600  ;;  %v1903_v38 = vmul.f32 %v4599_v37, %v5320_v49 }
 0x84d   : > { %1988 = vmatprep.mubr.f32.mxu0 %v1898_v13  ;;  %v1907_v24 = vmul.f32 %v4601_v18, %v5318_v52  ;;  %v1906_v27 = vmul.f32 %v4601_v18, %v5316_v43  ;;  %v4708_v13 = vmov (!%p3944_p4), 0.0  }
 0x84e   : > { %2064 = vst.msk [vmem:[%s6103_s14] sm:$0xff] (!%p3944_p4), %vm2063_vm3, %v4708_v13  ;;  %2065 = vst.msk [vmem:[%s6103_s14 + $0x8] sm:$0xff] (!%p3944_p4), %vm2063_vm3, %v4708_v13 }
 0x84f   : > { %v4603_v56 = vpop.eup %4602  ;;  %2066 = vst.msk [vmem:[%s6103_s14 + $0x10] sm:$0xff] (!%p3944_p4), %vm2063_vm3, %v4708_v13  ;;  %2067 = vst.msk [vmem:[%s6103_s14 + $0x18] sm:$0xff] (!%p3944_p4), %vm2063_vm3, %v4708_v13 }
 0x850   : > { %1989 = vmatmul.mubr.f32.gmra.mrb[44].mxu0 %v1897_v15  ;;  %v1910_v19 = vmul.f32 %v4603_v56, %v5334_v29  ;;  %v4605_v46 = vpop.eup %4604  ;;  %v1909_v26 = vmul.f32 %v4603_v56, %v5332_v41  ;;  %2069 = vst.msk [vmem:[%s6104_s15] sm:$0xff] (!%p3944_p4), %vm2068_vm4, %v4708_v13  ;;  %2070 = vst.msk [vmem:[%s6104_s15 + $0x8] sm:$0xff] (!%p3944_p4), %vm2068_vm4, %v4708_v13 }
 0x851   : > { %1993 = vmatprep.mubr.f32.mxu0 %v1901_v28  ;;  %v1913_v33 = vmul.f32 %v4605_v46, %v5330_v25  ;;  %v1912_v34 = vmul.f32 %v4605_v46, %v5328_v11  ;;  %2071 = vst.msk [vmem:[%s6104_s15 + $0x10] sm:$0xff] (!%p3944_p4), %vm2068_vm4, %v4708_v13  ;;  %2072 = vst.msk [vmem:[%s6104_s15 + $0x18] sm:$0xff] (!%p3944_p4), %vm2068_vm4, %v4708_v13 }
 0x852   : > { %2073 = vst.msk [vmem:[%s6104_s15 + $0x20] sm:$0xff] (!%p3944_p4), %vm2068_vm4, %v4708_v13  ;;  %2074 = vst.msk [vmem:[%s6104_s15 + $0x28] sm:$0xff] (!%p3944_p4), %vm2068_vm4, %v4708_v13 }
 0x853   : > { %2075 = vst.msk [vmem:[%s6104_s15 + $0x30] sm:$0xff] (!%p3944_p4), %vm2068_vm4, %v4708_v13  ;;  %2076 = vst.msk [vmem:[%s6104_s15 + $0x38] sm:$0xff] (!%p3944_p4), %vm2068_vm4, %v4708_v13 }
 0x854   : > { %1994 = vmatmul.mubr.f32.gmra.mrb[46].mxu0 %v1900_v14 }
 0x855   : > { %1998 = vmatprep.mubr.f32.mxu0 %v1904_v20 }
 0x858   : > { %1999 = vmatmul.mubr.f32.gmra.mrb[48].mxu0 %v1903_v38 }
 0x859   : > { %2003 = vmatprep.mubr.f32.mxu0 %v1907_v24 }
 0x85c   : > { %2004 = vmatmul.mubr.f32.gmra.mrb[50].mxu0 %v1906_v27 }
 0x85d   : > { %2008 = vmatprep.mubr.f32.mxu0 %v1910_v19 }
 0x860   : > { %2009 = vmatmul.mubr.f32.gmra.mrb[52].mxu0 %v1909_v26 }
 0x861   : > { %2013 = vmatprep.mubr.f32.mxu0 %v1913_v33 }
 0x864   : > { %2014 = vmatmul.mubr.f32.gmra.mrb[54].mxu0 %v1912_v34 }
 0x91b   : > { %v1980_v22 = vpop.f32.mrb[40].mxu0 }
 0x91c   : > { %2027 = vxpose.xlu1.b32.start [1/8] (short) (narrow) %v1980_v22, 32  ;;  %v1982_v30 = vpop.f32.mrb[41].mxu0 }
 0x91f   : > { %v1985_v57 = vpop.f32.mrb[42].mxu0 }
 0x920   : > { %2028 = vxpose.xlu1.b32.cont [2/8] (short) (narrow) %v1985_v57, 32  ;;  %v1987_v50 = vpop.f32.mrb[43].mxu0 }
 0x923   : > { %v1990_v55 = vpop.f32.mrb[44].mxu0 }
 0x924   : > { %2029 = vxpose.xlu1.b32.cont [3/8] (short) (narrow) %v1990_v55, 32  ;;  %v1992_v51 = vpop.f32.mrb[45].mxu0 }
 0x927   : > { %v1995_v61 = vpop.f32.mrb[46].mxu0 }
 0x928   : > { %2030 = vxpose.xlu1.b32.cont [4/8] (short) (narrow) %v1995_v61, 32  ;;  %v1997_v42 = vpop.f32.mrb[47].mxu0 }
 0x92b   : > { %v2000_v47 = vpop.f32.mrb[48].mxu0 }
 0x92c   : > { %2031 = vxpose.xlu1.b32.cont [5/8] (short) (narrow) %v2000_v47, 32  ;;  %v2002_v54 = vpop.f32.mrb[49].mxu0 }
 0x92f   : > { %v2005_v7 = vpop.f32.mrb[50].mxu0 }
 0x930   : > { %2032 = vxpose.xlu1.b32.cont [6/8] (short) (narrow) %v2005_v7, 32  ;;  %v2007_v62 = vpop.f32.mrb[51].mxu0 }
 0x933   : > { %v2010_v5 = vpop.f32.mrb[52].mxu0 }
 0x934   : > { %2033 = vxpose.xlu1.b32.cont [7/8] (short) (narrow) %v2010_v5, 32  ;;  %v2012_v8 = vpop.f32.mrb[53].mxu0 }
 0x937   : > { %v2015_v9 = vpop.f32.mrb[54].mxu0 }
 0x938   : > { %2034 = vxpose.xlu1.b32.end [8/8] (short) (narrow) %v2015_v9, 32  ;;  %v2017_v10 = vpop.f32.mrb[55].mxu0 }
 0x99c   : > { %v5380_v12 = vpop.trf.xlu1 }
 0x9a0   : > { %v5382_v6 = vpop.trf.xlu1 }
 0x9a2   : > { %2062 = sbr.rel (%p3944_p4) target bundleno = 2473 (0x9a9), region = 72 }
 0x9a4   : > { %v5384_v21 = vpop.trf.xlu1 }
 0x9a8   : > { %v5386_v23 = vpop.trf.xlu1 }
 0x9a9 PF: > { %v4298_v17 = vpack.c.bf16 %v5382_v6, %v5380_v12  ;;  %4606 = vset.pattern.permute.xlu0 %v4707_v1  ;;  %4607 = vset.pattern.permute.xlu1 %v4707_v1  ;;  %v2094_v36 = vld [vmem:[%s6104_s15] sm:$0xff]  ;;  %v2095_v15 = vld [vmem:[%s6104_s15 + $0x8] sm:$0xff]  ;;  %v2102_v28 = vmul.f32 0.5, %v5350_v35  ;;  %v2103_v37 = vmul.f32 0.5, %v5348_v45  ;;  %v4302_v14 = vpack.c.bf16 %v5386_v23, %v5384_v21  ;;  %v2096_v20 = vld [vmem:[%s6104_s15 + $0x10] sm:$0xff]  ;;  %s4021_s28 = sshll.u32 %s4803_s21, 3 }
 0x9aa   : > { %v2097_v1 = vld [vmem:[%s6104_s15 + $0x18] sm:$0xff]  ;;  %v2098_v18 = vld [vmem:[%s6104_s15 + $0x20] sm:$0xff]  ;;  %v2104_v38 = vmul.f32 0.5, %v5354_v44  ;;  %v2099_v45 = vld [vmem:[%s6104_s15 + $0x28] sm:$0xff]  ;;  %v2105_v56 = vmul.f32 0.5, %v5352_v58  ;;  %v2106_v27 = vmul.f32 0.5, %v5358_v59 }
 0x9ab   : > { %4299 = vmatprep.subr.bf16.mxu1 %v4298_v17  ;;  %v2100_v35 = vld [vmem:[%s6104_s15 + $0x30] sm:$0xff]  ;;  %v2101_v24 = vld [vmem:[%s6104_s15 + $0x38] sm:$0xff]  ;;  %v2107_v19 = vmul.f32 0.5, %v5356_v4  ;;  %v2108_v44 = vmul.f32 0.5, %v5362_v3  ;;  %v2109_v46 = vmul.f32 0.5, %v5360_v2  ;;  %v2110_v26 = vadd.f32 %v2102_v28, %v2094_v36  ;;  %v2127_v34 = vld [vmem:[%s6094_s5] sm:$0xff] }
 0x9ac   : > { %4301 = vmatpush3.bf16.msra.mxu1 %v4298_v17  ;;  %v2111_v33 = vadd.f32 %v2103_v37, %v2095_v15  ;;  %v2112_v22 = vadd.f32 %v2104_v38, %v2096_v20  ;;  %v2113_v30 = vadd.f32 %v2105_v56, %v2097_v1  ;;  %v2114_v57 = vadd.f32 %v2106_v27, %v2098_v18  ;;  %v2128_v2 = vld [vmem:[%s6094_s5 + $0x8] sm:$0xff]  ;;  %v2129_v3 = vld [vmem:[%s6094_s5 + $0x10] sm:$0xff]  ;;  %v2159_v50 = vld [vmem:[%s6095_s6] sm:$0xff]  ;;  %s6041_s30 = scalar_lea.vmem [#allocation2], %s4021_s28  ;;  %p4026_p5 = scmp.ne.s32.totalorder %s4797_s19, 1 }
 0x9ad   : > { %4303 = vmatprep.subr.bf16.mxu1 %v4302_v14  ;;  %v2115_v58 = vadd.f32 %v2107_v19, %v2099_v45  ;;  %4122 = vmatprep.mubr.msk.f32.mxu1 %vm660_vm2, %v2127_v34  ;;  %v2116_v59 = vadd.f32 %v2108_v44, %v2100_v35  ;;  %v2117_v4 = vadd.f32 %v2109_v46, %v2101_v24  ;;  %vm2118_vm5 = vcmask 7168   ;;  %v2130_v55 = vld [vmem:[%s6094_s5 + $0x18] sm:$0xff]  ;;  %v2160_v51 = vld [vmem:[%s6095_s6 + $0x8] sm:$0xff]  ;;  %v2131_v61 = vld [vmem:[%s6094_s5 + $0x20] sm:$0xff] }
 0x9ae   : > { %2119 = vst.msk [vmem:[%s6104_s15] sm:$0xff] %vm2118_vm5, %v2110_v26  ;;  %2120 = vst.msk [vmem:[%s6104_s15 + $0x8] sm:$0xff] %vm2118_vm5, %v2111_v33  ;;  %2193 = vperm.xlu0 %4606, %v2159_v50   ;;  %v2132_v42 = vld [vmem:[%s6094_s5 + $0x28] sm:$0xff]  ;;  %v2163_v47 = vld [vmem:[%s6095_s6 + $0x20] sm:$0xff]  ;;  %vm2089_vm6 = vcmask 523264  }
 0x9af   : > { %2121 = vst.msk [vmem:[%s6104_s15 + $0x10] sm:$0xff] %vm2118_vm5, %v2112_v22  ;;  %2122 = vst.msk [vmem:[%s6104_s15 + $0x18] sm:$0xff] %vm2118_vm5, %v2113_v30  ;;  %v2161_v54 = vld [vmem:[%s6095_s6 + $0x10] sm:$0xff]  ;;  %v2162_v62 = vld [vmem:[%s6095_s6 + $0x18] sm:$0xff] }
 0x9b0   : > { %2123 = vst.msk [vmem:[%s6104_s15 + $0x20] sm:$0xff] %vm2118_vm5, %v2114_v57  ;;  %2124 = vst.msk [vmem:[%s6104_s15 + $0x28] sm:$0xff] %vm2118_vm5, %v2115_v58  ;;  %4305 = vmatpush3.bf16.msra.mxu1 %v4302_v14  ;;  %v2133_v7 = vld [vmem:[%s6094_s5 + $0x30] sm:$0xff]  ;;  %2203 = vperm.xlu1 %4607, %v2161_v54   ;;  %v2134_v5 = vld [vmem:[%s6094_s5 + $0x38] sm:$0xff]  ;;  %v2082_v54 = vmul.f32 0.5, %v5382_v6 }
 0x9b1   : > { %2125 = vst.msk [vmem:[%s6104_s15 + $0x30] sm:$0xff] %vm2118_vm5, %v2116_v59  ;;  %2126 = vst.msk [vmem:[%s6104_s15 + $0x38] sm:$0xff] %vm2118_vm5, %v2117_v4  ;;  %v2165_v8 = vld [vmem:[%s6095_s6 + $0x30] sm:$0xff]  ;;  %v2135_v9 = vld [vmem:[%s6094_s5 + $0x40] sm:$0xff] }
 0x9b2   : > { %2198 = vperm.xlu0 %4606, %v2160_v51   ;;  %v2164_v10 = vld [vmem:[%s6095_s6 + $0x28] sm:$0xff]  ;;  %v2167_v17 = vld [vmem:[%s6095_s6 + $0x40] sm:$0xff]  ;;  %v2137_v36 = vld [vmem:[%s6094_s5 + $0x50] sm:$0xff] }
 0x9b3   : > { %4123 = vmatmul.mubr.msk.f32.vlgmr.msra.gmra.mrb[48].mxu1 %vm660_vm2, %v2128_v2  ;;  %v2136_v13 = vld [vmem:[%s6094_s5 + $0x48] sm:$0xff]  ;;  %v2166_v15 = vld [vmem:[%s6095_s6 + $0x38] sm:$0xff]  ;;  %v2169_v37 = vld [vmem:[%s6095_s6 + $0x50] sm:$0xff] }
 0x9b4   : > { %4125 = vmatprep.mubr.msk.f32.mxu1 %vm660_vm2, %v2129_v3  ;;  %2208 = vperm.xlu1 %4607, %v2162_v62   ;;  %v2138_v28 = vld [vmem:[%s6094_s5 + $0x58] sm:$0xff]  ;;  %v2139_v14 = vld [vmem:[%s6094_s5 + $0x60] sm:$0xff]  ;;  %v2168_v20 = vld [vmem:[%s6095_s6 + $0x48] sm:$0xff]  ;;  %v2084_v62 = vmul.f32 0.5, %v5386_v23 }
 0x9b5   : > { %v2140_v1 = vld [vmem:[%s6094_s5 + $0x68] sm:$0xff]  ;;  %v2171_v18 = vld [vmem:[%s6095_s6 + $0x60] sm:$0xff]  ;;  %v2141_v38 = vld [vmem:[%s6094_s5 + $0x70] sm:$0xff] }
 0x9b6   : > { %2213 = vperm.xlu0 %4606, %v2163_v47   ;;  %v2142_v45 = vld [vmem:[%s6094_s5 + $0x78] sm:$0xff]  ;;  %v2173_v35 = vld [vmem:[%s6095_s6 + $0x70] sm:$0xff]  ;;  %v2143_v24 = vld [vmem:[%s6094_s5 + $0x80] sm:$0xff]  ;;  %v2081_v47 = vmul.f32 0.5, %v5380_v12 }
 0x9b7   : > { %4126 = vmatmul.mubr.msk.f32.gmra.mrb[50].mxu1 %vm660_vm2, %v2130_v55  ;;  %v2144_v56 = vld [vmem:[%s6094_s5 + $0x88] sm:$0xff]  ;;  %v2175_v27 = vld [vmem:[%s6095_s6 + $0x80] sm:$0xff]  ;;  %v2145_v19 = vld [vmem:[%s6094_s5 + $0x90] sm:$0xff] }
 0x9b8   : > { %4128 = vmatprep.mubr.msk.f32.mxu1 %vm660_vm2, %v2131_v61  ;;  %2218 = vperm.xlu1 %4607, %v2164_v10   ;;  %v2146_v44 = vld [vmem:[%s6094_s5 + $0x98] sm:$0xff]  ;;  %v2177_v46 = vld [vmem:[%s6095_s6 + $0x90] sm:$0xff]  ;;  %v2147_v26 = vld [vmem:[%s6094_s5 + $0xa0] sm:$0xff] }
 0x9b9   : > { %v2148_v33 = vld [vmem:[%s6094_s5 + $0xa8] sm:$0xff]  ;;  %v2179_v34 = vld [vmem:[%s6095_s6 + $0xa0] sm:$0xff]  ;;  %v2149_v22 = vld [vmem:[%s6094_s5 + $0xb0] sm:$0xff] }
 0x9ba   : > { %2223 = vperm.xlu0 %4606, %v2165_v8   ;;  %v2150_v30 = vld [vmem:[%s6094_s5 + $0xb8] sm:$0xff]  ;;  %v2181_v57 = vld [vmem:[%s6095_s6 + $0xb0] sm:$0xff]  ;;  %v2151_v58 = vld [vmem:[%s6094_s5 + $0xc0] sm:$0xff] }
 0x9bb   : > { %4129 = vmatmul.mubr.msk.f32.gmra.mrb[52].mxu1 %vm660_vm2, %v2132_v42  ;;  %v2152_v59 = vld [vmem:[%s6094_s5 + $0xc8] sm:$0xff]  ;;  %v2183_v4 = vld [vmem:[%s6095_s6 + $0xc0] sm:$0xff]  ;;  %v2153_v2 = vld [vmem:[%s6094_s5 + $0xd0] sm:$0xff] }
 0x9bc   : > { %4131 = vmatprep.mubr.msk.f32.mxu1 %vm660_vm2, %v2133_v7  ;;  %2228 = vperm.xlu1 %4607, %v2166_v15   ;;  %v2154_v3 = vld [vmem:[%s6094_s5 + $0xd8] sm:$0xff]  ;;  %v2155_v50 = vld [vmem:[%s6094_s5 + $0xe0] sm:$0xff]  ;;  %v2156_v55 = vld [vmem:[%s6094_s5 + $0xe8] sm:$0xff]  ;;  %v2083_v7 = vmul.f32 0.5, %v5384_v21 }
 0x9bd   : > { %v2157_v51 = vld [vmem:[%s6094_s5 + $0xf0] sm:$0xff]  ;;  %v2158_v61 = vld [vmem:[%s6094_s5 + $0xf8] sm:$0xff]  ;;  %v2077_v42 = vld [vmem:[%s6103_s14] sm:$0xff] }
 0x9be   : > { %2233 = vperm.xlu0 %4606, %v2167_v17   ;;  %v2079_v8 = vld [vmem:[%s6103_s14 + $0x10] sm:$0xff]  ;;  %v2085_v10 = vadd.f32 %v2081_v47, %v2077_v42 }
 0x9bf   : > { %4132 = vmatmul.mubr.msk.f32.gmra.mrb[54].mxu1 %vm660_vm2, %v2134_v5  ;;  %v2078_v5 = vld [vmem:[%s6103_s14 + $0x8] sm:$0xff]  ;;  %v2087_v17 = vadd.f32 %v2083_v7, %v2079_v8 }
 0x9c0   : > { %4134 = vmatprep.mubr.msk.f32.mxu1 %vm660_vm2, %v2135_v9  ;;  %2238 = vperm.xlu1 %4607, %v2168_v20   ;;  %v2080_v9 = vld [vmem:[%s6103_s14 + $0x18] sm:$0xff]  ;;  %2090 = vst.msk [vmem:[%s6103_s14] sm:$0xff] %vm2089_vm6, %v2085_v10 }
 0x9c1   : > { %2092 = vst.msk [vmem:[%s6103_s14 + $0x10] sm:$0xff] %vm2089_vm6, %v2087_v17 }
 0x9c2   : > { %2243 = vperm.xlu0 %4606, %v2169_v37  }
 0x9c3   : > { %4135 = vmatmul.mubr.msk.f32.gmra.mrb[56].mxu1 %vm660_vm2, %v2136_v13  ;;  %v2086_v13 = vadd.f32 %v2082_v54, %v2078_v5 }
 0x9c4   : > { %4137 = vmatprep.mubr.msk.f32.mxu1 %vm660_vm2, %v2137_v36  ;;  %v2088_v36 = vadd.f32 %v2084_v62, %v2080_v9 }
 0x9c5   : > { %2091 = vst.msk [vmem:[%s6103_s14 + $0x8] sm:$0xff] %vm2089_vm6, %v2086_v13 }
 0x9c6   : > { %2253 = vperm.xlu0 %4606, %v2171_v18   ;;  %2093 = vst.msk [vmem:[%s6103_s14 + $0x18] sm:$0xff] %vm2089_vm6, %v2088_v36 }
 0x9c7   : > { %4138 = vmatmul.mubr.msk.f32.gmra.mrb[58].mxu1 %vm660_vm2, %v2138_v28 }
 0x9c8   : > { %4140 = vmatprep.mubr.msk.f32.mxu1 %vm660_vm2, %v2139_v14 }
 0x9ca   : > { %2263 = vperm.xlu0 %4606, %v2173_v35  }
 0x9cb   : > { %4141 = vmatmul.mubr.msk.f32.gmra.mrb[60].mxu1 %vm660_vm2, %v2140_v1 }
 0x9cc   : > { %4143 = vmatprep.mubr.msk.f32.mxu1 %vm660_vm2, %v2141_v38 }
 0x9ce   : > { %2273 = vperm.xlu0 %4606, %v2175_v27  }
 0x9cf   : > { %4144 = vmatmul.mubr.msk.f32.gmra.mrb[62].mxu1 %vm660_vm2, %v2142_v45 }
 0x9d0   : > { %4146 = vmatprep.mubr.msk.f32.mxu1 %vm660_vm2, %v2143_v24 }
 0x9d2   : > { %2283 = vperm.xlu0 %4606, %v2177_v46  }
 0x9d3   : > { %4147 = vmatmul.mubr.msk.f32.gmra.mrb[64].mxu1 %vm660_vm2, %v2144_v56 }
 0x9d4   : > { %4149 = vmatprep.mubr.msk.f32.mxu1 %vm660_vm2, %v2145_v19 }
 0x9d6   : > { %2293 = vperm.xlu0 %4606, %v2179_v34  }
 0x9d7   : > { %4150 = vmatmul.mubr.msk.f32.gmra.mrb[66].mxu1 %vm660_vm2, %v2146_v44 }
 0x9d8   : > { %4152 = vmatprep.mubr.msk.f32.mxu1 %vm660_vm2, %v2147_v26 }
 0x9da   : > { %2303 = vperm.xlu0 %4606, %v2181_v57  }
 0x9db   : > { %4153 = vmatmul.mubr.msk.f32.gmra.mrb[68].mxu1 %vm660_vm2, %v2148_v33 }
 0x9dc   : > { %4155 = vmatprep.mubr.msk.f32.mxu1 %vm660_vm2, %v2149_v22 }
 0x9de   : > { %2313 = vperm.xlu0 %4606, %v2183_v4  }
 0x9df   : > { %4156 = vmatmul.mubr.msk.f32.gmra.mrb[70].mxu1 %vm660_vm2, %v2150_v30 }
 0x9e0   : > { %4158 = vmatprep.mubr.msk.f32.mxu1 %vm660_vm2, %v2151_v58 }
 0x9e3   : > { %4159 = vmatmul.mubr.msk.f32.gmra.mrb[72].mxu1 %vm660_vm2, %v2152_v59 }
 0x9e4   : > { %4161 = vmatprep.mubr.msk.f32.mxu1 %vm660_vm2, %v2153_v2 }
 0x9e7   : > { %4162 = vmatmul.mubr.msk.f32.gmra.mrb[74].mxu1 %vm660_vm2, %v2154_v3 }
 0x9e8   : > { %4164 = vmatprep.mubr.msk.f32.mxu1 %vm660_vm2, %v2155_v50 }
 0x9eb   : > { %4165 = vmatmul.mubr.msk.f32.gmra.mrb[76].mxu1 %vm660_vm2, %v2156_v55 }
 0x9ec   : > { %4167 = vmatprep.mubr.msk.f32.mxu1 %vm660_vm2, %v2157_v51 }
 0x9ef   : > { %4168 = vmatmul.mubr.msk.f32.gmra.mrb[78].mxu1 %vm660_vm2, %v2158_v61 }
 0x9f0   : > { %3548 = vmatprep.mubr.f32.mxu1 %v6106_v0 }
 0xa2d   : > { %v2194_v28 = vpop.permute.xlu0 %2193 }
 0xa2f   : > { %v2204_v15 = vpop.permute.xlu1 %2203 }
 0xa31   : > { %v2199_v14 = vpop.permute.xlu0 %2198 }
 0xa33   : > { %v2209_v37 = vpop.permute.xlu1 %2208 }
 0xa35   : > { %v2214_v27 = vpop.permute.xlu0 %2213 }
 0xa37   : > { %v2219_v35 = vpop.permute.xlu1 %2218 }
 0xa39   : > { %v2224_v59 = vpop.permute.xlu0 %2223 }
 0xa3b   : > { %v2229_v57 = vpop.permute.xlu1 %2228 }
 0xa3d   : > { %v2234_v7 = vpop.permute.xlu0 %2233 }
 0xa3f   : > { %v2239_v42 = vpop.permute.xlu1 %2238 }
 0xa86   : > { %v4124_v20 = vpop.f32.mrb[48].mxu1 }
 0xa87   : > { %v2519_v1 = vadd.f32 %v4124_v20, %v2199_v14  ;;  %v2513_v18 = vpop.f32.mrb[49].mxu1 }
 0xa88   : > { %v2514_v38 = vadd.f32 %v2513_v18, %v2194_v28 }
 0xa89   : > { %v2675_v45 = vsel %vm2089_vm6, %v2519_v1, 0.0  ;;  %v2170_v1 = vld [vmem:[%s6095_s6 + $0x58] sm:$0xff] }
 0xa8a   : > { %v4127_v24 = vpop.f32.mrb[50].mxu1  ;;  %2676 = vadd.xlane.f32.xlu1 %v2675_v45  ;;  %v2672_v56 = vsel %vm2089_vm6, %v2514_v38, 0.0  ;;  %v2172_v45 = vld [vmem:[%s6095_s6 + $0x68] sm:$0xff] }
 0xa8b   : > { %v2529_v19 = vadd.f32 %v4127_v24, %v2209_v37  ;;  %v2523_v44 = vpop.f32.mrb[51].mxu1  ;;  %2673 = vadd.xlane.f32.xlu0 %v2672_v56  ;;  %v2185_v24 = vld [vmem:[%s6095_s6 + $0xd0] sm:$0xff] }
 0xa8c   : > { %v2524_v46 = vadd.f32 %v2523_v44, %v2204_v15  ;;  %v2187_v44 = vld [vmem:[%s6095_s6 + $0xe0] sm:$0xff] }
 0xa8d   : > { %v2681_v26 = vsel %vm2089_vm6, %v2529_v19, 0.0 }
 0xa8e   : > { %v4130_v33 = vpop.f32.mrb[52].mxu1  ;;  %2682 = vadd.xlane.f32.xlu1 %v2681_v26  ;;  %v2678_v34 = vsel %vm2089_vm6, %v2524_v46, 0.0  ;;  %v2176_v26 = vld [vmem:[%s6095_s6 + $0x88] sm:$0xff] }
 0xa8f   : > { %v2539_v22 = vadd.f32 %v4130_v33, %v2219_v35  ;;  %v2533_v30 = vpop.f32.mrb[53].mxu1  ;;  %2679 = vadd.xlane.f32.xlu0 %v2678_v34  ;;  %v2189_v34 = vld [vmem:[%s6095_s6 + $0xf0] sm:$0xff] }
 0xa90   : > { %v2534_v58 = vadd.f32 %v2533_v30, %v2214_v27  ;;  %v2174_v27 = vld [vmem:[%s6095_s6 + $0x78] sm:$0xff] }
 0xa91   : > { %v2687_v4 = vsel %vm2089_vm6, %v2539_v22, 0.0  ;;  %v2178_v30 = vld [vmem:[%s6095_s6 + $0x98] sm:$0xff] }
 0xa92   : > { %v4133_v2 = vpop.f32.mrb[54].mxu1  ;;  %2688 = vadd.xlane.f32.xlu1 %v2687_v4  ;;  %v2684_v3 = vsel %vm2089_vm6, %v2534_v58, 0.0 }
 0xa93   : > { %v2549_v50 = vadd.f32 %v4133_v2, %v2229_v57  ;;  %v2543_v55 = vpop.f32.mrb[55].mxu1  ;;  %2685 = vadd.xlane.f32.xlu0 %v2684_v3  ;;  %v2182_v3 = vld [vmem:[%s6095_s6 + $0xb8] sm:$0xff] }
 0xa94   : > { %v2544_v51 = vadd.f32 %v2543_v55, %v2224_v59  ;;  %v2180_v59 = vld [vmem:[%s6095_s6 + $0xa8] sm:$0xff] }
 0xa95   : > { %v2693_v61 = vsel %vm2089_vm6, %v2549_v50, 0.0 }
 0xa96   : > { %v4136_v47 = vpop.f32.mrb[56].mxu1  ;;  %2694 = vadd.xlane.f32.xlu1 %v2693_v61  ;;  %v2690_v54 = vsel %vm2089_vm6, %v2544_v51, 0.0  ;;  %v2184_v51 = vld [vmem:[%s6095_s6 + $0xc8] sm:$0xff]  ;;  %v2186_v61 = vld [vmem:[%s6095_s6 + $0xd8] sm:$0xff] }
 0xa97   : > { %v2559_v62 = vadd.f32 %v4136_v47, %v2239_v42  ;;  %v2553_v5 = vpop.f32.mrb[57].mxu1  ;;  %2691 = vadd.xlane.f32.xlu0 %v2690_v54  ;;  %v2188_v42 = vld [vmem:[%s6095_s6 + $0xe8] sm:$0xff]  ;;  %v2244_v47 = vpop.permute.xlu0 %2243  ;;  %v2190_v54 = vld [vmem:[%s6095_s6 + $0xf8] sm:$0xff] }
 0xa98   : > { %v2554_v8 = vadd.f32 %v2553_v5, %v2234_v7 }
 0xa99   : > { %v2699_v9 = vsel %vm2089_vm6, %v2559_v62, 0.0 }
 0xa9a   : > { %v5711_v10 = vpop.f32.mrb[58].mxu1  ;;  %2700 = vadd.xlane.f32.xlu1 %v2699_v9  ;;  %v2696_v13 = vsel %vm2089_vm6, %v2554_v8, 0.0 }
 0xa9b   : > { %v2563_v17 = vpop.f32.mrb[59].mxu1  ;;  %2697 = vadd.xlane.f32.xlu0 %v2696_v13  ;;  %v2254_v62 = vpop.permute.xlu0 %2253 }
 0xa9c   : > { %v2564_v7 = vadd.f32 %v2563_v17, %v2244_v47 }
 0xa9e   : > { %v5714_v36 = vpop.f32.mrb[60].mxu1  ;;  %v2702_v8 = vsel %vm2089_vm6, %v2564_v7, 0.0 }
 0xa9f   : > { %v2573_v15 = vpop.f32.mrb[61].mxu1  ;;  %v2264_v13 = vpop.permute.xlu0 %2263 }
 0xaa0   : > { %v2574_v5 = vadd.f32 %v2573_v15, %v2254_v62 }
 0xaa2   : > { %v5716_v28 = vpop.f32.mrb[62].mxu1  ;;  %v2708_v9 = vsel %vm2089_vm6, %v2574_v5, 0.0 }
 0xaa3   : > { %v5718_v37 = vpop.f32.mrb[63].mxu1 }
 0xaa4   : > { %v2584_v47 = vadd.f32 %v5718_v37, %v2264_v13 }
 0xaa6   : > { %v5720_v14 = vpop.f32.mrb[64].mxu1  ;;  %v2714_v5 = vsel %vm2089_vm6, %v2584_v47, 0.0 }
 0xaa7   : > { %v5722_v20 = vpop.f32.mrb[65].mxu1 }
 0xaaa   : > { %v5727_v18 = vpop.f32.mrb[66].mxu1 }
 0xaab   : > { %v5729_v38 = vpop.f32.mrb[67].mxu1  ;;  %2248 = vperm.xlu1 %4607, %v2170_v1   ;;  %v2274_v1 = vpop.permute.xlu0 %2273 }
 0xaae   : > { %v5734_v35 = vpop.f32.mrb[68].mxu1 }
 0xaaf   : > { %v5739_v56 = vpop.f32.mrb[69].mxu1  ;;  %2258 = vperm.xlu1 %4607, %v2172_v45   ;;  %v2284_v45 = vpop.permute.xlu0 %2283 }
 0xab1   : > { %2323 = vperm.xlu0 %4606, %v2185_v24  }
 0xab2   : > { %v5744_v19 = vpop.f32.mrb[70].mxu1 }
 0xab3   : > { %v5749_v46 = vpop.f32.mrb[71].mxu1  ;;  %2268 = vperm.xlu1 %4607, %v2174_v27   ;;  %v2294_v24 = vpop.permute.xlu0 %2293 }
 0xab5   : > { %2333 = vperm.xlu0 %4606, %v2187_v44  }
 0xab6   : > { %v5754_v33 = vpop.f32.mrb[72].mxu1 }
 0xab7   : > { %v5759_v22 = vpop.f32.mrb[73].mxu1  ;;  %2278 = vperm.xlu1 %4607, %v2176_v26   ;;  %v2304_v27 = vpop.permute.xlu0 %2303 }
 0xab9   : > { %2343 = vperm.xlu0 %4606, %v2189_v34  }
 0xaba   : > { %v5764_v57 = vpop.f32.mrb[74].mxu1 }
 0xabb   : > { %2288 = vperm.xlu1 %4607, %v2178_v30   ;;  %v5766_v58 = vpop.f32.mrb[75].mxu1  ;;  %v5796_v34 = vpop.permute.xlu0 %2313 }
 0xabe   : > { %v5771_v4 = vpop.f32.mrb[76].mxu1 }
 0xabf   : > { %2298 = vperm.xlu1 %4607, %v2180_v59   ;;  %v5773_v2 = vpop.f32.mrb[77].mxu1 }
 0xac2   : > { %v5778_v50 = vpop.f32.mrb[78].mxu1 }
 0xac3   : > { %2308 = vperm.xlu1 %4607, %v2182_v3   ;;  %v5780_v55 = vpop.f32.mrb[79].mxu1 }
 0xac7   : > { %2318 = vperm.xlu1 %4607, %v2184_v51  }
 0xacb   : > { %2328 = vperm.xlu1 %4607, %v2186_v61  }
 0xacf   : > { %2338 = vperm.xlu1 %4607, %v2188_v42  }
 0xad3   : > { %2348 = vperm.xlu1 %4607, %v2190_v54  }
 0xad8   : > { %2703 = vadd.xlane.f32.xlu0 %v2702_v8 }
 0xadc   : > { %2709 = vadd.xlane.f32.xlu0 %v2708_v9 }
 0xb17   : > { %v2677_v44 = vpop.xlane.xlu1 %2676 }
 0xb18   : > { %v2674_v17 = vpop.xlane.xlu0 %2673 }
 0xb19   : > { %v3977_v37 = vmul.f32 -0.015625, %v2674_v17 }
 0xb1b   : > { %v2683_v26 = vpop.xlane.xlu1 %2682 }
 0xb1c   : > { %v2680_v3 = vpop.xlane.xlu0 %2679  ;;  %v3980_v47 = vmul.f32 -0.015625, %v2683_v26 }
 0xb1e   : > { %v2759_v26 = vmul.f32 1.442695, %v3980_v47 }
 0xb1f   : > { %v2689_v30 = vpop.xlane.xlu1 %2688 }
 0xb20   : > { %v2686_v42 = vpop.xlane.xlu0 %2685 }
 0xb23   : > { %v2695_v59 = vpop.xlane.xlu1 %2694 }
 0xb24   : > { %v2692_v9 = vpop.xlane.xlu0 %2691 }
 0xb27   : > { %v2701_v15 = vpop.xlane.xlu1 %2700 }
 0xb2b   : > { %v2249_v51 = vpop.permute.xlu1 %2248 }
 0xb2c   : > { %v2569_v61 = vadd.f32 %v5711_v10, %v2249_v51  ;;  %v3978_v10 = vmul.f32 -0.015625, %v2677_v44  ;;  %v5806_v51 = vadd.f32 %v5722_v20, %v2274_v1  ;;  %v3981_v20 = vmul.f32 -0.015625, %v2686_v42 }
 0xb2d   : > { %v5820_v1 = vadd.f32 %v5739_v56, %v2294_v24  ;;  %v3982_v42 = vmul.f32 -0.015625, %v2689_v30 }
 0xb2e   : > { %v2705_v54 = vsel %vm2089_vm6, %v2569_v61, 0.0 }
 0xb2f   : > { %2706 = vadd.xlane.f32.xlu1 %v2705_v54  ;;  %v2259_v7 = vpop.permute.xlu1 %2258  ;;  %v2840_v24 = vsel %vm2089_vm6, %v5820_v1, 0.0 }
 0xb30   : > { %v2579_v62 = vadd.f32 %v5714_v36, %v2259_v7  ;;  %v5810_v36 = vadd.f32 %v5729_v38, %v2284_v45  ;;  %v2755_v7 = vmul.f32 1.442695, %v3978_v10  ;;  %v3983_v38 = vmul.f32 -0.015625, %v2692_v9 }
 0xb31   : > { %v5832_v9 = vadd.f32 %v5749_v46, %v2304_v27 }
 0xb32   : > { %v2711_v8 = vsel %vm2089_vm6, %v2579_v62, 0.0  ;;  %v3979_v62 = vmul.f32 -0.015625, %v2680_v3  ;;  %4608 = vpow2.f32 %v2755_v7  ;;  %v3986_v7 = vmul.f32 -0.015625, %v2701_v15 }
 0xb33   : > { %2715 = vadd.xlane.f32.xlu1 %v2714_v5  ;;  %v2269_v0 = vpop.permute.xlu1 %2268  ;;  %2712 = vadd.xlane.f32.xlu0 %v2711_v8  ;;  %v2698_v5 = vpop.xlane.xlu0 %2697  ;;  %v2844_v46 = vsel %vm2089_vm6, %v5832_v9, 0.0  ;;  %v5843_v15 = vadd.f32 %v5759_v22, %v5796_v34 }
 0xb34   : > { %v2589_v11 = vadd.f32 %v5716_v28, %v2269_v0  ;;  %v2833_v0 = vsel %vm2089_vm6, %v5806_v51, 0.0  ;;  %v2753_v28 = vmul.f32 1.442695, %v3977_v37  ;;  %v3985_v17 = vmul.f32 -0.015625, %v2698_v5 }
 0xb35   : > { %v2757_v8 = vmul.f32 1.442695, %v3979_v62  ;;  %v2761_v37 = vmul.f32 1.442695, %v3981_v20  ;;  %v2848_v22 = vsel %vm2089_vm6, %v5843_v15, 0.0 }
 0xb36   : > { %v2717_v13 = vsel %vm2089_vm6, %v2589_v11, 0.0  ;;  %4610 = vpow2.f32 %v2753_v28  ;;  %v2769_v62 = vmul.f32 1.442695, %v3985_v17 }
 0xb37   : > { %v2279_v61 = vpop.permute.xlu1 %2278  ;;  %2718 = vadd.xlane.f32.xlu0 %v2717_v13  ;;  %v3984_v13 = vmul.f32 -0.015625, %v2695_v59  ;;  %4612 = vpow2.f32 %v2759_v26  ;;  %v2763_v59 = vmul.f32 1.442695, %v3982_v42  ;;  %v2324_v5 = vpop.permute.xlu0 %2323 }
 0xb38   : > { %v5813_v54 = vadd.f32 %v5720_v14, %v2279_v61  ;;  %v2836_v14 = vsel %vm2089_vm6, %v5810_v36, 0.0  ;;  %v2765_v61 = vmul.f32 1.442695, %v3983_v38  ;;  %4614 = vpow2.f32 %v2757_v8 }
 0xb39   : > { %4616 = vpow2.f32 %v2761_v37  ;;  %v2767_v28 = vmul.f32 1.442695, %v3984_v13  ;;  %v5853_v34 = vadd.f32 %v5766_v58, %v2324_v5 }
 0xb3a   : > { %v2834_v11 = vsel %vm2089_vm6, %v5813_v54, 0.0  ;;  %4618 = vpow2.f32 %v2765_v61 }
 0xb3b   : > { %v2835_v45 = vadd.f32 %v2834_v11, %v2833_v0  ;;  %v2289_v44 = vpop.permute.xlu1 %2288  ;;  %4620 = vpow2.f32 %v2769_v62  ;;  %v2334_v26 = vpop.permute.xlu0 %2333  ;;  %v2852_v62 = vsel %vm2089_vm6, %v5853_v34, 0.0 }
 0xb3c   : > { %v5825_v3 = vadd.f32 %v5727_v18, %v2289_v44  ;;  %4622 = vpow2.f32 %v2763_v59  ;;  %v5863_v58 = vadd.f32 %v5773_v2, %v2334_v26 }
 0xb3d   : > { %v2837_v10 = vadd.f32 %v2836_v14, %v2835_v45  ;;  %4624 = vpow2.f32 %v2767_v28  ;;  %v4609_v14 = vpop.eup %4608 }
 0xb3e   : > { %v2838_v56 = vsel %vm2089_vm6, %v5825_v3, 0.0  ;;  %v2786_v13 = vadd.f32 1.0, %v4609_v14 }
 0xb3f   : > { %v2839_v47 = vadd.f32 %v2838_v56, %v2837_v10  ;;  %v2299_v18 = vpop.permute.xlu1 %2298 }
 0xb40   : > { %v5835_v30 = vadd.f32 %v5734_v35, %v2299_v18  ;;  %v2771_v35 = vmul.f32 1.442695, %v3986_v7  ;;  %v4611_v42 = vpop.eup %4610 }
 0xb41   : > { %v2841_v0 = vadd.f32 %v2840_v24, %v2839_v47  ;;  %v4613_v37 = vpop.eup %4612  ;;  %v2785_v61 = vadd.f32 1.0, %v4611_v42 }
 0xb42   : > { %v2842_v20 = vsel %vm2089_vm6, %v5835_v30, 0.0  ;;  %4626 = vpow2.f32 %v2771_v35  ;;  %v4615_v24 = vpop.eup %4614  ;;  %v2788_v5 = vadd.f32 1.0, %v4613_v37 }
 0xb43   : > { %v2843_v27 = vadd.f32 %v2842_v20, %v2841_v0  ;;  %v2309_v11 = vpop.permute.xlu1 %2308  ;;  %v4617_v7 = vpop.eup %4616  ;;  %4628 = vrcp.f32 %v2786_v13 }
 0xb44   : > { %v5846_v38 = vadd.f32 %v5744_v19, %v2309_v11  ;;  %v4619_v59 = vpop.eup %4618  ;;  %v2344_v0 = vpop.permute.xlu0 %2343  ;;  %4630 = vrcp.f32 %v2785_v61  ;;  %v2789_v35 = vadd.f32 1.0, %v4617_v7 }
 0xb45   : > { %v2845_v45 = vadd.f32 %v2844_v46, %v2843_v27  ;;  %v4621_v20 = vpop.eup %4620  ;;  %v2787_v46 = vadd.f32 1.0, %v4615_v24  ;;  %v2791_v14 = vadd.f32 1.0, %v4619_v59  ;;  %v5873_v26 = vadd.f32 %v5780_v55, %v2344_v0 }
 0xb46   : > { %v2846_v44 = vsel %vm2089_vm6, %v5846_v38, 0.0  ;;  %v4623_v11 = vpop.eup %4622  ;;  %4632 = vrcp.f32 %v2788_v5 }
 0xb47   : > { %v2847_v17 = vadd.f32 %v2846_v44, %v2845_v45  ;;  %v2319_v8 = vpop.permute.xlu1 %2318  ;;  %v4625_v2 = vpop.eup %4624  ;;  %4634 = vrcp.f32 %v2787_v46  ;;  %v2860_v55 = vsel %vm2089_vm6, %v5873_v26, 0.0 }
 0xb48   : > { %v5856_v19 = vadd.f32 %v5754_v33, %v2319_v8  ;;  %v2793_v8 = vadd.f32 1.0, %v4621_v20  ;;  %4636 = vrcp.f32 %v2789_v35  ;;  %v2792_v13 = vadd.f32 1.0, %v4625_v2 }
 0xb49   : > { %v2849_v10 = vadd.f32 %v2848_v22, %v2847_v17  ;;  %4638 = vrcp.f32 %v2791_v14 }
 0xb4a   : > { %v2850_v56 = vsel %vm2089_vm6, %v5856_v19, 0.0  ;;  %4640 = vrcp.f32 %v2793_v8 }
 0xb4b   : > { %v2851_v47 = vadd.f32 %v2850_v56, %v2849_v10  ;;  %v2329_v18 = vpop.permute.xlu1 %2328  ;;  %v2790_v10 = vadd.f32 1.0, %v4623_v11 }
 0xb4c   : > { %v5866_v33 = vadd.f32 %v5764_v57, %v2329_v18  ;;  %v2856_v57 = vsel %vm2089_vm6, %v5863_v58, 0.0  ;;  %v4627_v22 = vpop.eup %4626 }
 0xb4d   : > { %v2853_v28 = vadd.f32 %v2852_v62, %v2851_v47  ;;  %v2794_v61 = vadd.f32 1.0, %v4627_v22  ;;  %4642 = vrcp.f32 %v2790_v10  ;;  %v4629_v62 = vpop.eup %4628 }
 0xb4e   : > { %v2854_v27 = vsel %vm2089_vm6, %v5866_v33, 0.0  ;;  %4644 = vrcp.f32 %v2792_v13  ;;  %v4631_v59 = vpop.eup %4630  ;;  %v3994_v10 = vadd.f32 -0.5, %v4629_v62 }
 0xb4f   : > { %v2855_v45 = vadd.f32 %v2854_v27, %v2853_v28  ;;  %v2339_v44 = vpop.permute.xlu1 %2338  ;;  %4646 = vrcp.f32 %v2794_v61  ;;  %v3993_v2 = vadd.f32 -0.5, %v4631_v59 }
 0xb50   : > { %v5876_v17 = vadd.f32 %v5771_v4, %v2339_v44  ;;  %v4633_v0 = vpop.eup %4632 }
 0xb51   : > { %v2857_v42 = vadd.f32 %v2856_v57, %v2855_v45  ;;  %v4635_v20 = vpop.eup %4634  ;;  %v3996_v13 = vadd.f32 -0.5, %v4633_v0 }
 0xb52   : > { %v2858_v37 = vsel %vm2089_vm6, %v5876_v17, 0.0  ;;  %v4637_v46 = vpop.eup %4636  ;;  %v3995_v44 = vadd.f32 -0.5, %v4635_v20 }
 0xb53   : > { %v2859_v56 = vadd.f32 %v2858_v37, %v2857_v42  ;;  %v2349_v24 = vpop.permute.xlu1 %2348  ;;  %v3997_v57 = vadd.f32 -0.5, %v4637_v46 }
 0xb54   : > { %v5883_v4 = vadd.f32 %v5778_v50, %v2349_v24  ;;  %v4639_v50 = vpop.eup %4638 }
 0xb55   : > { %v2861_v47 = vadd.f32 %v2860_v55, %v2859_v56  ;;  %v4641_v11 = vpop.eup %4640  ;;  %v3999_v42 = vadd.f32 -0.5, %v4639_v50  ;;  %v2888_v55 = vmul.f32 %v3994_v10, %v5813_v54 }
 0xb56   : > { %v2862_v18 = vsel %vm2089_vm6, %v5883_v4, 0.0  ;;  %v4001_v22 = vadd.f32 -0.5, %v4641_v11 }
 0xb57   : > { %v2863_v7 = vadd.f32 %v2862_v18, %v2861_v47  ;;  %v4643_v45 = vpop.eup %4642  ;;  %v2887_v47 = vmul.f32 %v3993_v2, %v5806_v51  ;;  %v2889_v18 = vmul.f32 %v3995_v44, %v5810_v36  ;;  %v2893_v20 = vmul.f32 %v3999_v42, %v5832_v9 }
 0xb58   : > { %v4645_v14 = vpop.eup %4644  ;;  %v3998_v56 = vadd.f32 -0.5, %v4643_v45  ;;  %v2895_v46 = vmul.f32 %v4001_v22, %v5843_v15 }
 0xb59   : > { %v2864_v5 = vrot.slane %v2863_v7, 4  ;;  %v4647_v37 = vpop.eup %4646  ;;  %v4000_v61 = vadd.f32 -0.5, %v4645_v14 }
 0xb5a   : > { %v2892_v59 = vmul.f32 %v3998_v56, %v5835_v30  ;;  %v4002_v0 = vadd.f32 -0.5, %v4647_v37 }
 0xb5b   : > { %v2865_v28 = vadd.f32 %v2864_v5, %v2863_v7  ;;  %v2890_v7 = vmul.f32 %v3996_v13, %v5825_v3  ;;  %v2894_v62 = vmul.f32 %v4000_v61, %v5846_v38 }
 0xb5c   : > { %v2896_v45 = vmul.f32 %v4002_v0, %v5856_v19 }
 0xb5d   : > { %v2866_v27 = vrot.slane %v2865_v28, 2 }
 0xb5f   : > { %v2867_v35 = vadd.f32 %v2866_v27, %v2865_v28  ;;  %v2891_v28 = vmul.f32 %v3997_v57, %v5820_v1 }
 0xb61   : > { %v2868_v8 = vrot.slane %v2867_v35, 1 }
 0xb63   : > { %v2869_v24 = vadd.f32 %v2868_v8, %v2867_v35 }
 0xb65   : > { %v5892_v5 = vmul.f32 0.5, %v2869_v24 }
 0xb66   : > { %2919 = vxpose.xlu1.b32.start [1/16] (narrow) %v5806_v51, 64 }
 0xb67   : > { %v2903_v27 = vadd.f32 %v2887_v47, %v5892_v5  ;;  %v2904_v50 = vadd.f32 %v2888_v55, %v5892_v5  ;;  %v2905_v11 = vadd.f32 %v2889_v18, %v5892_v5  ;;  %v2906_v35 = vadd.f32 %v2890_v7, %v5892_v5 }
 0xb68   : > { %v2907_v44 = vadd.f32 %v2891_v28, %v5892_v5  ;;  %v2908_v2 = vadd.f32 %v2892_v59, %v5892_v5  ;;  %v2909_v51 = vadd.f32 %v2893_v20, %v5892_v5  ;;  %v2910_v8 = vadd.f32 %v2894_v62, %v5892_v5 }
 0xb69   : > { %v4306_v14 = vpack.c.bf16 %v2904_v50, %v2903_v27  ;;  %v4310_v57 = vpack.c.bf16 %v2906_v35, %v2905_v11  ;;  %v2911_v42 = vadd.f32 %v2895_v46, %v5892_v5  ;;  %v2912_v10 = vadd.f32 %v2896_v45, %v5892_v5 }
 0xb6a   : > { %2920 = vxpose.xlu1.b32.cont [2/16] (narrow) %v5813_v54, 64  ;;  %v4314_v22 = vpack.c.bf16 %v2908_v2, %v2907_v44  ;;  %v4318_v37 = vpack.c.bf16 %v2910_v8, %v2909_v51 }
 0xb6b   : > { %4307 = vmatprep.subr.bf16.mxu0 %v4306_v14  ;;  %v4322_v13 = vpack.c.bf16 %v2912_v10, %v2911_v42 }
 0xb6c   : > { %4309 = vmatpush3.bf16.msra.mxu0 %v4306_v14 }
 0xb6d   : > { %4311 = vmatprep.subr.bf16.mxu0 %v4310_v57 }
 0xb6e   : > { %2921 = vxpose.xlu1.b32.cont [3/16] (narrow) %v5810_v36, 64  ;;  %v2704_v36 = vpop.xlane.xlu0 %2703 }
 0xb6f   : > { %v3987_v54 = vmul.f32 -0.015625, %v2704_v36 }
 0xb70   : > { %4313 = vmatpush3.bf16.msra.mxu0 %v4310_v57 }
 0xb71   : > { %4315 = vmatprep.subr.bf16.mxu0 %v4314_v22 }
 0xb72   : > { %2922 = vxpose.xlu1.b32.cont [4/16] (narrow) %v5825_v3, 64  ;;  %v2773_v3 = vmul.f32 1.442695, %v3987_v54 }
 0xb74   : > { %4317 = vmatpush3.bf16.msra.mxu0 %v4314_v22  ;;  %4648 = vpow2.f32 %v2773_v3 }
 0xb75   : > { %4319 = vmatprep.subr.bf16.mxu0 %v4318_v37 }
 0xb76   : > { %2923 = vxpose.xlu1.b32.cont [5/16] (narrow) %v5820_v1, 64  ;;  %v2710_v1 = vpop.xlane.xlu0 %2709 }
 0xb78   : > { %4321 = vmatpush3.bf16.msra.mxu0 %v4318_v37 }
 0xb79   : > { %4323 = vmatprep.subr.bf16.mxu0 %v4322_v13 }
 0xb7a   : > { %2924 = vxpose.xlu1.b32.cont [6/16] (narrow) %v5835_v30, 64 }
 0xb7c   : > { %4325 = vmatpush3.bf16.msra.mxu0 %v4322_v13 }
 0xb7e   : > { %2925 = vxpose.xlu1.b32.cont [7/16] (narrow) %v5832_v9, 64  ;;  %v3989_v9 = vmul.f32 -0.015625, %v2710_v1  ;;  %v4649_v55 = vpop.eup %4648 }
 0xb7f   : > { %v2795_v59 = vadd.f32 1.0, %v4649_v55 }
 0xb80   : > { %v2777_v30 = vmul.f32 1.442695, %v3989_v9 }
 0xb82   : > { %2926 = vxpose.xlu1.b32.cont [8/16] (narrow) %v5846_v38, 64  ;;  %4650 = vpow2.f32 %v2777_v30 }
 0xb86   : > { %2927 = vxpose.xlu1.b32.cont [9/16] (narrow) %v5843_v15, 64 }
 0xb8a   : > { %2928 = vxpose.xlu1.b32.cont [10/16] (narrow) %v5856_v19, 64 }
 0xb8c   : > { %v4651_v0 = vpop.eup %4650 }
 0xb8d   : > { %v2797_v46 = vadd.f32 1.0, %v4651_v0 }
 0xb8e   : > { %2929 = vxpose.xlu1.b32.cont [11/16] (narrow) %v5853_v34, 64 }
 0xb92   : > { %2930 = vxpose.xlu1.b32.cont [12/16] (narrow) %v5866_v33, 64 }
 0xb96   : > { %2931 = vxpose.xlu1.b32.cont [13/16] (narrow) %v5863_v58, 64 }
 0xb9a   : > { %2932 = vxpose.xlu1.b32.cont [14/16] (narrow) %v5876_v17, 64 }
 0xb9e   : > { %2933 = vxpose.xlu1.b32.cont [15/16] (narrow) %v5873_v26, 64 }
 0xba2   : > { %2934 = vxpose.xlu1.b32.end [16/16] (narrow) %v5883_v4, 64 }
 0xbbc   : > { %v2707_v15 = vpop.xlane.xlu1 %2706 }
 0xbbd   : > { %v3988_v38 = vmul.f32 -0.015625, %v2707_v15 }
 0xbbf   : > { %v2775_v19 = vmul.f32 1.442695, %v3988_v38 }
 0xbc0   : > { %v2716_v56 = vpop.xlane.xlu1 %2715  ;;  %v2713_v24 = vpop.xlane.xlu0 %2712 }
 0xbc1   : > { %4652 = vpow2.f32 %v2775_v19  ;;  %v3991_v61 = vmul.f32 -0.015625, %v2716_v56  ;;  %v3990_v47 = vmul.f32 -0.015625, %v2713_v24 }
 0xbc3   : > { %v2781_v18 = vmul.f32 1.442695, %v3991_v61  ;;  %v2779_v7 = vmul.f32 1.442695, %v3990_v47 }
 0xbc4   : > { %v2719_v28 = vpop.xlane.xlu0 %2718 }
 0xbc5   : > { %4654 = vpow2.f32 %v2781_v18  ;;  %v3992_v62 = vmul.f32 -0.015625, %v2719_v28 }
 0xbc6   : > { %4656 = vpow2.f32 %v2779_v7 }
 0xbc7   : > { %v2783_v20 = vmul.f32 1.442695, %v3992_v62  ;;  %4658 = vrcp.f32 %v2795_v59 }
 0xbc9   : > { %4660 = vpow2.f32 %v2783_v20  ;;  %v3064_v20 = vlaneseq }
 0xbca   : > { %4662 = vrcp.f32 %v2797_v46 }
 0xbcb   : > { %v4653_v27 = vpop.eup %4652  ;;  %v3065_v46 = vshrl.u32 %v3064_v20, 7 }
 0xbcc   : > { %v2796_v50 = vadd.f32 1.0, %v4653_v27 }
 0xbcd   : > { %v3066_v27 = vadd.s32 8, %v3065_v46 }
 0xbce   : > { %4664 = vrcp.f32 %v2796_v50  ;;  %v3074_v50 = vand.u32 127, %v3064_v20 }
 0xbcf   : > { %v4655_v11 = vpop.eup %4654 }
 0xbd0   : > { %v4657_v35 = vpop.eup %4656  ;;  %v2799_v45 = vadd.f32 1.0, %v4655_v11  ;;  %vm3076_vm7 = vcmp.eq.s32.totalorder %v3066_v27, %v3074_v50  ;;  %vm3075_vm8 = vcmp.eq.s32.totalorder %v3065_v46, %v3074_v50  ;;  %v3068_v11 = vadd.s32 24, %v3065_v46 }
 0xbd1   : > { %v2798_v44 = vadd.f32 1.0, %v4657_v35  ;;  %v4659_v2 = vpop.eup %4658  ;;  %v3067_v35 = vadd.s32 16, %v3065_v46 }
 0xbd2   : > { %4666 = vrcp.f32 %v2799_v45  ;;  %v4003_v57 = vadd.f32 -0.5, %v4659_v2  ;;  %vm3078_vm9 = vcmp.eq.s32.totalorder %v3068_v11, %v3074_v50 }
 0xbd3   : > { %v4661_v51 = vpop.eup %4660  ;;  %4668 = vrcp.f32 %v2798_v44  ;;  %v6111_v44 = vmov 0.0   ;;  %vm3077_vm10 = vcmp.eq.s32.totalorder %v3067_v35, %v3074_v50 }
 0xbd4   : > { %v2800_v14 = vadd.f32 1.0, %v4661_v51  ;;  %v4663_v8 = vpop.eup %4662  ;;  %v2897_v10 = vmul.f32 %v4003_v57, %v5853_v34  ;;  %v3084_v2 = vsel %vm3076_vm7, 1.0, %v6111_v44  ;;  %v3083_v57 = vsel %vm3075_vm8, 1.0, %v6111_v44 }
 0xbd5   : > { %v4005_v37 = vadd.f32 -0.5, %v4663_v8 }
 0xbd6   : > { %4670 = vrcp.f32 %v2800_v14  ;;  %v2913_v3 = vadd.f32 %v2897_v10, %v5892_v5 }
 0xbd7   : > { %v2899_v15 = vmul.f32 %v4005_v37, %v5863_v58 }
 0xbd8   : > { %v4665_v42 = vpop.eup %4664 }
 0xbd9   : > { %v4004_v22 = vadd.f32 -0.5, %v4665_v42 }
 0xbdb   : > { %v2898_v13 = vmul.f32 %v4004_v22, %v5866_v33  ;;  %v2915_v33 = vadd.f32 %v2899_v15, %v5892_v5 }
 0xbdc   : > { %v4667_v36 = vpop.eup %4666 }
 0xbdd   : > { %v4669_v54 = vpop.eup %4668  ;;  %v4007_v1 = vadd.f32 -0.5, %v4667_v36  ;;  %v2914_v9 = vadd.f32 %v2898_v13, %v5892_v5  ;;  %v3086_v13 = vsel %vm3078_vm9, 1.0, %v6111_v44 }
 0xbde   : > { %v4006_v30 = vadd.f32 -0.5, %v4669_v54 }
 0xbdf   : > { %v4326_v38 = vpack.c.bf16 %v2914_v9, %v2913_v3  ;;  %v2901_v34 = vmul.f32 %v4007_v1, %v5873_v26  ;;  %v3085_v3 = vsel %vm3077_vm10, 1.0, %v6111_v44  ;;  %v3070_v9 = vadd.s32 40, %v3065_v46 }
 0xbe0   : > { %v4671_v19 = vpop.eup %4670  ;;  %v2900_v56 = vmul.f32 %v4006_v30, %v5876_v17 }
 0xbe1   : > { %v4008_v24 = vadd.f32 -0.5, %v4671_v19  ;;  %4327 = vmatprep.subr.bf16.mxu0 %v4326_v38  ;;  %v2917_v18 = vadd.f32 %v2901_v34, %v5892_v5  ;;  %vm3080_vm11 = vcmp.eq.s32.totalorder %v3070_v9, %v3074_v50 }
 0xbe2   : > { %4329 = vmatpush3.bf16.msra.mxu0 %v4326_v38  ;;  %v2916_v55 = vadd.f32 %v2900_v56, %v5892_v5  ;;  %v3069_v38 = vadd.s32 32, %v3065_v46 }
 0xbe3   : > { %v2902_v61 = vmul.f32 %v4008_v24, %v5883_v4 }
 0xbe4   : > { %v4330_v47 = vpack.c.bf16 %v2916_v55, %v2915_v33  ;;  %vm3079_vm12 = vcmp.eq.s32.totalorder %v3069_v38, %v3074_v50 }
 0xbe5   : > { %v2918_v58 = vadd.f32 %v2902_v61, %v5892_v5  ;;  %v3088_v61 = vsel %vm3080_vm11, 1.0, %v6111_v44 }
 0xbe6   : > { %4331 = vmatprep.subr.bf16.mxu0 %v4330_v47  ;;  %v2935_v7 = vpop.trf.xlu1 }
 0xbe7   : > { %4333 = vmatpush3.bf16.msra.mxu0 %v4330_v47  ;;  %4202 = vmatprep.mubr.f32.mxu0 %v2935_v7  ;;  %v4334_v17 = vpack.c.bf16 %v2918_v58, %v2917_v18  ;;  %v3087_v58 = vsel %vm3079_vm12, 1.0, %v6111_v44 }
 0xbe9   : > { %4335 = vmatprep.subr.bf16.mxu0 %v4334_v17 }
 0xbea   : > { %v2936_v59 = vpop.trf.xlu1 }
 0xbeb   : > { %4337 = vmatpush3.bf16.msra.mxu0 %v4334_v17 }
 0xbee   : > { %4203 = vmatmul.mubr.f32.vlgmr.msra.gmra.mrb[56].mxu0 %v2936_v59  ;;  %v2937_v26 = vpop.trf.xlu1  ;;  %v3071_v59 = vadd.s32 48, %v3065_v46 }
 0xbef   : > { %4205 = vmatprep.mubr.f32.mxu0 %v2937_v26  ;;  %v3072_v26 = vadd.s32 56, %v3065_v46 }
 0xbf0   : > { %vm3081_vm13 = vcmp.eq.s32.totalorder %v3071_v59, %v3074_v50 }
 0xbf1   : > { %vm3082_vm14 = vcmp.eq.s32.totalorder %v3072_v26, %v3074_v50  ;;  %v3089_v46 = vsel %vm3081_vm13, 1.0, %v6111_v44 }
 0xbf2   : > { %v2938_v28 = vpop.trf.xlu1 }
 0xbf3   : > { %4206 = vmatmul.mubr.f32.gmra.mrb[58].mxu0 %v2938_v28 }
 0xbf6   : > { %v2939_v62 = vpop.trf.xlu1 }
 0xbf7   : > { %4208 = vmatprep.mubr.f32.mxu0 %v2939_v62 }
 0xbfa   : > { %v2940_v4 = vpop.trf.xlu1 }
 0xbfb   : > { %4209 = vmatmul.mubr.f32.gmra.mrb[60].mxu0 %v2940_v4 }
 0xbfe   : > { %v2941_v0 = vpop.trf.xlu1 }
 0xbff   : > { %4211 = vmatprep.mubr.f32.mxu0 %v2941_v0 }
 0xc02   : > { %v2942_v5 = vpop.trf.xlu1 }
 0xc03   : > { %4212 = vmatmul.mubr.f32.gmra.mrb[62].mxu0 %v2942_v5 }
 0xc04   : > { %4230 = vmatprep.mubr.msk.f32.mxu0 %vm2089_vm6, %v5380_v12 }
 0xcc1   : > { %v4204_v45 = vpop.f32.mrb[56].mxu0 }
 0xcc2   : > { %v3057_v51 = vmax.f32 %v4204_v45, 0.0  ;;  %v3017_v14 = vpop.f32.mrb[57].mxu0  ;;  %v3090_v45 = vsel %vm3082_vm14, 1.0, %v6111_v44 }
 0xcc3   : > { %v3056_v8 = vmax.f32 %v3017_v14, 0.0 }
 0xcc4   : > { %v5941_v42 = vadd.f32 %v3084_v2, %v3057_v51 }
 0xcc5   : > { %v5943_v22 = vadd.f32 %v3083_v57, %v3056_v8 }
 0xcc6   : > { %v3102_v10 = vsel %vm2089_vm6, %v5941_v42, 0.0  ;;  %v4207_v37 = vpop.f32.mrb[58].mxu0 }
 0xcc7   : > { %3103 = vadd.xlane.f32.xlu0 %v3102_v10  ;;  %v3059_v36 = vmax.f32 %v4207_v37, 0.0  ;;  %v3027_v54 = vpop.f32.mrb[59].mxu0  ;;  %v3099_v1 = vsel %vm2089_vm6, %v5943_v22, 0.0 }
 0xcc8   : > { %v3058_v30 = vmax.f32 %v3027_v54, 0.0  ;;  %v3131_v15 = vadd.f32 %v3102_v10, %v3099_v1 }
 0xcc9   : > { %v5951_v19 = vadd.f32 %v3086_v13, %v3059_v36 }
 0xcca   : > { %v5953_v56 = vadd.f32 %v3085_v3, %v3058_v30 }
 0xccb   : > { %3100 = vadd.xlane.f32.xlu0 %v3099_v1  ;;  %v3108_v24 = vsel %vm2089_vm6, %v5951_v19, 0.0 }
 0xccc   : > { %v3105_v34 = vsel %vm2089_vm6, %v5953_v56, 0.0 }
 0xccd   : > { %v3132_v33 = vadd.f32 %v3131_v15, %v3105_v34 }
 0xcce   : > { %v4210_v55 = vpop.f32.mrb[60].mxu0 }
 0xccf   : > { %3109 = vadd.xlane.f32.xlu0 %v3108_v24  ;;  %v3061_v47 = vmax.f32 %v4210_v55, 0.0  ;;  %v3037_v18 = vpop.f32.mrb[61].mxu0  ;;  %v3133_v7 = vadd.f32 %v3132_v33, %v3108_v24 }
 0xcd0   : > { %v3060_v17 = vmax.f32 %v3037_v18, 0.0 }
 0xcd1   : > { %v5961_v28 = vadd.f32 %v3088_v61, %v3061_v47 }
 0xcd2   : > { %v5963_v62 = vadd.f32 %v3087_v58, %v3060_v17 }
 0xcd3   : > { %3106 = vadd.xlane.f32.xlu0 %v3105_v34  ;;  %v3114_v4 = vsel %vm2089_vm6, %v5961_v28, 0.0 }
 0xcd4   : > { %v3111_v0 = vsel %vm2089_vm6, %v5963_v62, 0.0 }
 0xcd5   : > { %v3134_v5 = vadd.f32 %v3133_v7, %v3111_v0 }
 0xcd6   : > { %v4213_v20 = vpop.f32.mrb[62].mxu0 }
 0xcd7   : > { %3115 = vadd.xlane.f32.xlu0 %v3114_v4  ;;  %v3063_v27 = vmax.f32 %v4213_v20, 0.0  ;;  %v3047_v11 = vpop.f32.mrb[63].mxu0  ;;  %v3135_v35 = vadd.f32 %v3134_v5, %v3114_v4 }
 0xcd8   : > { %v3062_v2 = vmax.f32 %v3047_v11, 0.0 }
 0xcd9   : > { %v3098_v14 = vadd.f32 %v3090_v45, %v3063_v27 }
 0xcda   : > { %v3097_v51 = vadd.f32 %v3089_v46, %v3062_v2 }
 0xcdb   : > { %3112 = vadd.xlane.f32.xlu0 %v3111_v0  ;;  %v3120_v10 = vsel %vm2089_vm6, %v3098_v14, 0.0 }
 0xcdc   : > { %v3117_v57 = vsel %vm2089_vm6, %v3097_v51, 0.0 }
 0xcdd   : > { %v3136_v8 = vadd.f32 %v3135_v35, %v3117_v57 }
 0xcdf   : > { %3118 = vadd.xlane.f32.xlu0 %v3117_v57  ;;  %v3137_v50 = vadd.f32 %v3136_v8, %v3120_v10 }
 0xce1   : > { %v3138_v37 = vrot.slane %v3137_v50, 4 }
 0xce3   : > { %3121 = vadd.xlane.f32.xlu0 %v3120_v10  ;;  %v3139_v13 = vadd.f32 %v3138_v37, %v3137_v50 }
 0xce5   : > { %v3140_v36 = vrot.slane %v3139_v13, 2 }
 0xce7   : > { %v3141_v54 = vadd.f32 %v3140_v36, %v3139_v13 }
 0xce9   : > { %v3142_v1 = vrot.slane %v3141_v54, 1 }
 0xceb   : > { %v3143_v9 = vadd.f32 %v3142_v1, %v3141_v54  ;;  %v4368_v54 = vpack.c.bf16 %v5302_v48, %v5304_v16  ;;  %v4370_v1 = vpack.c.bf16 %v5318_v52, %v5322_v53  ;;  %v3163_v53 = vld [vmem:[%s6096_s7 + $0x10] sm:$0xff] }
 0xd54   : > { %v3104_v3 = vpop.xlane.xlu0 %3103 }
 0xd55   : > { %4672 = vrsqrt.f32 %v3104_v3 }
 0xd58   : > { %v3101_v30 = vpop.xlane.xlu0 %3100 }
 0xd59   : > { %4674 = vrsqrt.f32 %v3101_v30 }
 0xd5a   : > { %4676 = vrsqrt.f32 %v3143_v9 }
 0xd5c   : > { %v3110_v15 = vpop.xlane.xlu0 %3109 }
 0xd5d   : > { %4678 = vrsqrt.f32 %v3110_v15 }
 0xd5f   : > { %v4673_v38 = vpop.eup %4672 }
 0xd60   : > { %v3107_v24 = vpop.xlane.xlu0 %3106  ;;  %v3146_v34 = vmul.f32 %v4673_v38, %v5941_v42 }
 0xd61   : > { %4680 = vrsqrt.f32 %v3107_v24 }
 0xd63   : > { %v4675_v33 = vpop.eup %4674 }
 0xd64   : > { %v3116_v55 = vpop.xlane.xlu0 %3115  ;;  %v3145_v61 = vmul.f32 %v4675_v33, %v5943_v22  ;;  %v4677_v47 = vpop.eup %4676 }
 0xd65   : > { %4682 = vrsqrt.f32 %v3116_v55  ;;  %v3154_v58 = vmul.f32 %v4677_v47, %v3146_v34 }
 0xd66   : > { %v3153_v18 = vmul.f32 %v4677_v47, %v3145_v61 }
 0xd67   : > { %v4679_v7 = vpop.eup %4678 }
 0xd68   : > { %v3113_v17 = vpop.xlane.xlu0 %3112  ;;  %v4338_v59 = vpack.c.bf16 %v3154_v58, %v3153_v18  ;;  %v3148_v26 = vmul.f32 %v4679_v7, %v5951_v19 }
 0xd69   : > { %4684 = vrsqrt.f32 %v3113_v17 }
 0xd6a   : > { %4339 = vmatprep.subr.bf16.mxu0 %v4338_v59  ;;  %v3156_v20 = vmul.f32 %v4677_v47, %v3148_v26 }
 0xd6b   : > { %v4681_v4 = vpop.eup %4680  ;;  %4341 = vmatpush3.bf16.msra.mxu0 %v4338_v59 }
 0xd6c   : > { %v3119_v0 = vpop.xlane.xlu0 %3118  ;;  %v3147_v42 = vmul.f32 %v4681_v4, %v5953_v56 }
 0xd6d   : > { %4686 = vrsqrt.f32 %v3119_v0 }
 0xd6e   : > { %v3155_v5 = vmul.f32 %v4677_v47, %v3147_v42 }
 0xd6f   : > { %v4683_v22 = vpop.eup %4682 }
 0xd70   : > { %v3122_v27 = vpop.xlane.xlu0 %3121  ;;  %v4342_v11 = vpack.c.bf16 %v3156_v20, %v3155_v5  ;;  %v3150_v46 = vmul.f32 %v4683_v22, %v5961_v28  ;;  %v3161_v28 = vld [vmem:[%s6096_s7] sm:$0xff] }
 0xd71   : > { %4688 = vrsqrt.f32 %v3122_v27 }
 0xd72   : > { %4343 = vmatprep.subr.bf16.mxu0 %v4342_v11  ;;  %v3158_v2 = vmul.f32 %v4677_v47, %v3150_v46 }
 0xd73   : > { %v4685_v35 = vpop.eup %4684  ;;  %4345 = vmatpush3.bf16.msra.mxu0 %v4342_v11 }
 0xd74   : > { %v3149_v45 = vmul.f32 %v4685_v35, %v5963_v62  ;;  %v4362_v62 = vpack.c.bf16 %v5307_v60, %v5310_v39  ;;  %v4372_v60 = vpack.c.bf16 %v5316_v43, %v5320_v49  ;;  %v3162_v49 = vld [vmem:[%s6096_s7 + $0x8] sm:$0xff] }
 0xd76   : > { %v3157_v19 = vmul.f32 %v4677_v47, %v3149_v45  ;;  %4426 = vmatprep.subr.bf16.mxu1 %v4362_v62 }
 0xd77   : > { %v4687_v57 = vpop.eup %4686 }
 0xd78   : > { %v4346_v8 = vpack.c.bf16 %v3158_v2, %v3157_v19  ;;  %v3151_v56 = vmul.f32 %v4687_v57, %v3097_v51  ;;  %v4364_v51 = vpack.c.bf16 %v5297_v32, %v5300_v63  ;;  %v4374_v32 = vpack.c.bf16 %v5330_v25, %v5334_v29  ;;  %v6112_v63 = vld [vmem:[#allocation5_spill] sm:$0xff]  ;;  %v3164_v25 = vld [vmem:[%s6096_s7 + $0x18] sm:$0xff] }
 0xd79   : > { %v4376_v39 = vpack.c.bf16 %v6112_v63, %v5332_v41  ;;  %v4709_v19 = vmov (!%p4026_p5), 0.0  }
 0xd7a   : > { %4347 = vmatprep.subr.bf16.mxu0 %v4346_v8  ;;  %v3159_v37 = vmul.f32 %v4677_v47, %v3151_v56  ;;  %4430 = vmatpush1.bf16.msra.mxu1 %v4364_v51 }
 0xd7b   : > { %v4689_v10 = vpop.eup %4688  ;;  %4349 = vmatpush3.bf16.msra.mxu0 %v4346_v8 }
 0xd7c   : > { %v3152_v50 = vmul.f32 %v4689_v10, %v3098_v14  ;;  %v4366_v14 = vpack.c.bf16 %v5312_v40, %v5314_v31 }
 0xd7e   : > { %v3160_v13 = vmul.f32 %v4677_v47, %v3152_v50  ;;  %4427 = vmatprep.subr.bf16.mxu1 %v4366_v14  ;;  %v4710_v50 = vmov (!%p4026_p5), 0  }
 0xd7f   : > { %4431 = vmatpush1.bf16.msra.mxu1 %v4368_v54  ;;  %4690 = vset.pattern.permute.xlu0 (!%p4026_p5), %v4710_v50 }
 0xd80   : > { %v4350_v36 = vpack.c.bf16 %v3160_v13, %v3159_v37  ;;  %4428 = vmatprep.subr.bf16.mxu1 %v4370_v1  ;;  %4691 = vset.pattern.permute.xlu1 (!%p4026_p5), %v4710_v50 }
 0xd82   : > { %4351 = vmatprep.subr.bf16.mxu0 %v4350_v36 }
 0xd83   : > { %4353 = vmatpush3.bf16.msra.mxu0 %v4350_v36  ;;  %4432 = vmatpush1.bf16.msra.mxu1 %v4372_v60 }
 0xd84   : > { %4429 = vmatprep.subr.bf16.mxu1 %v4374_v32 }
 0xd86   : > { %4231 = vmatmul.mubr.msk.f32.vlgmr.msra.gmra.mrb[64].mxu0 %vm2089_vm6, %v5382_v6 }
 0xd87   : > { %4233 = vmatprep.mubr.msk.f32.mxu0 %vm2089_vm6, %v5384_v21  ;;  %4433 = vmatpush1.bf16.msra.mxu1 %v4376_v39 }
 0xd8a   : > { %4234 = vmatmul.mubr.msk.f32.gmra.mrb[66].mxu0 %vm2089_vm6, %v5386_v23  ;;  %4023 = vmatmul.mubr.msk.f32.vlgmr.msra.gmra.mrb[80].mxu1 %vm2089_vm6, %v5382_v6 }
 0xd8b   : > { %4244 = vmatprep.mubr.msk.f32.mxu0 %vm660_vm2, %v3161_v28  ;;  %3554 = vmatprep.mubr.f32.mxu1 %v6111_v44 }
 0xd8e   : > { %4024 = vmatmul.mubr.msk.f32.gmra.mrb[82].mxu1 %vm2089_vm6, %v5384_v21 }
 0xd8f   : > { %3560 = vmatprep.mubr.f32.mxu1 %v6111_v44 }
 0xd92   : > { %4025 = vmatmul.mubr.msk.f32.gmra.mrb[84].mxu1 %vm2089_vm6, %v5386_v23 }
 0xd93   : > { %3756 = vmatprep.mubr.f32.mxu1 (!%p4026_p5), %v4709_v19 }
 0xe59   : > { %v4232_v48 = vpop.f32.mrb[64].mxu0 }
 0xe5a   : > { %v3243_v16 = vpop.f32.mrb[65].mxu0 }
 0xe5b   : > { %v4354_v40 = vpack.c.bf16 %v4232_v48, %v3243_v16 }
 0xe5d   : > { %v4235_v31 = vpop.f32.mrb[66].mxu0  ;;  %4355 = vmatprep.subr.bf16.mxu0 %v4354_v40 }
 0xe5e   : > { %v3253_v43 = vpop.f32.mrb[67].mxu0  ;;  %4357 = vmatpush3.bf16.msra.mxu0 %v4354_v40 }
 0xe5f   : > { %v4358_v52 = vpack.c.bf16 %v4235_v31, %v3253_v43 }
 0xe61   : > { %4359 = vmatprep.subr.bf16.mxu0 %v4358_v52 }
 0xe62   : > { %4361 = vmatpush3.bf16.msra.mxu0 %v4358_v52 }
 0xe63   : > { %4363 = vmatprep.subr.bf16.mxu0 %v4362_v62 }
 0xe65   : > { %4245 = vmatmul.mubr.msk.f32.vlgmr.msra.gmra.mrb[68].mxu0 %vm660_vm2, %v3162_v49 }
 0xe66   : > { %4247 = vmatprep.mubr.msk.f32.mxu0 %vm660_vm2, %v3163_v53  ;;  %4365 = vmatpush1.bf16.msra.mxu0 %v4364_v51 }
 0xe67   : > { %4367 = vmatprep.subr.bf16.mxu0 %v4366_v14 }
 0xe69   : > { %4248 = vmatmul.mubr.msk.f32.gmra.mrb[70].mxu0 %vm660_vm2, %v3164_v25 }
 0xe6a   : > { %4369 = vmatpush1.bf16.msra.mxu0 %v4368_v54  ;;  %3443 = vmatprep.mubr.f32.mxu0 %v6111_v44 }
 0xe6b   : > { %4371 = vmatprep.subr.bf16.mxu0 %v4370_v1 }
 0xe6e   : > { %4373 = vmatpush1.bf16.msra.mxu0 %v4372_v60 }
 0xe6f   : > { %4375 = vmatprep.subr.bf16.mxu0 %v4374_v32 }
 0xe72   : > { %4377 = vmatpush1.bf16.msra.mxu0 %v4376_v39 }
 0xe73   : > { %4379 = vmatprep.subr.bf16.mxu0 %v4362_v62 }
 0xf38   : > { %v4246_v41 = vpop.f32.mrb[68].mxu0 }
 0xf39   : > { %v3340_v29 = vpop.f32.mrb[69].mxu0  ;;  %v3360_v9 = vmax.f32 %v4246_v41, 0.0 }
 0xf3a   : > { %v3359_v3 = vmax.f32 %v3340_v29, 0.0 }
 0xf3b   : > { %v3364_v34 = vadd.f32 %v3360_v9, %v5382_v6  ;;  %v3550_v6 = vpop.f32.mrb[80].mxu1 }
 0xf3c   : > { %v3363_v30 = vadd.f32 %v3359_v3, %v5380_v12  ;;  %v4249_v15 = vpop.f32.mrb[70].mxu0  ;;  %3569 = vst [vmem:[%s6041_s30 + $0xa0] sm:$0xff] %v3550_v6  ;;  %v3612_v6 = vld [vmem:[%s6098_s9] sm:$0xff] (!%p4026_p5) }
 0xf3d   : > { %v3350_v38 = vpop.f32.mrb[71].mxu0  ;;  %v3362_v55 = vmax.f32 %v4249_v15, 0.0  ;;  %3615 = vperm.xlu0 (!%p4026_p5), %4690, %v3612_v6  }
 0xf3e   : > { %4017 = vmatmul.mubr.msk.f32.vlgmr.msra.gmra.mrb[72].mxu0 %vm2089_vm6, %v3363_v30  ;;  %v3361_v24 = vmax.f32 %v3350_v38, 0.0 }
 0xf3f   : > { %4381 = vmatpush1.bf16.msra.mxu0 %v4364_v51  ;;  %3449 = vmatprep.mubr.f32.mxu0 %v6111_v44  ;;  %v3366_v61 = vadd.f32 %v3362_v55, %v5386_v23 }
 0xf40   : > { %4383 = vmatprep.subr.bf16.mxu0 %v4366_v14  ;;  %v3365_v33 = vadd.f32 %v3361_v24, %v5384_v21  ;;  %v3552_v21 = vpop.f32.mrb[81].mxu1 }
 0xf41   : > { %3570 = vst [vmem:[%s6041_s30 + $0xa8] sm:$0xff] %v3552_v21  ;;  %v3556_v23 = vpop.f32.mrb[82].mxu1 }
 0xf42   : > { %4018 = vmatmul.mubr.msk.f32.gmra.mrb[74].mxu0 %vm2089_vm6, %v3364_v34  ;;  %3571 = vst [vmem:[%s6041_s30 + $0xc0] sm:$0xff] %v3556_v23 }
 0xf43   : > { %4385 = vmatpush1.bf16.msra.mxu0 %v4368_v54  ;;  %3455 = vmatprep.mubr.f32.mxu0 %v6111_v44 }
 0xf44   : > { %4387 = vmatprep.subr.bf16.mxu0 %v4370_v1 }
 0xf46   : > { %4019 = vmatmul.mubr.msk.f32.gmra.mrb[76].mxu0 %vm2089_vm6, %v3365_v33 }
 0xf47   : > { %4389 = vmatpush1.bf16.msra.mxu0 %v4372_v60  ;;  %3461 = vmatprep.mubr.f32.mxu0 %v6111_v44 }
 0xf48   : > { %4391 = vmatprep.subr.bf16.mxu0 %v4374_v32 }
 0xf4a   : > { %4020 = vmatmul.mubr.msk.f32.gmra.mrb[78].mxu0 %vm2089_vm6, %v3366_v61 }
 0xf4b   : > { %4393 = vmatpush1.bf16.msra.mxu0 %v4376_v39  ;;  %3542 = vmatprep.mubr.f32.mxu0 %v6111_v44 }
 0xf4e   : > { %4022 = vmatmul.mubr.msk.f32.vlgmr.msra.gmra.mrb[80].mxu0 %vm2089_vm6, %v5380_v12  ;;  %v3558_v12 = vpop.f32.mrb[83].mxu1 }
 0xf4f   : > { %3572 = vst [vmem:[%s6041_s30 + $0xc8] sm:$0xff] %v3558_v12  ;;  %v3562_v44 = vpop.f32.mrb[84].mxu1  ;;  %3685 = vmatprep.mubr.f32.mxu0 (!%p4026_p5), %v4709_v19  ;;  %v3579_v12 = vld [vmem:[%s6097_s8] sm:$0xff] (!%p4026_p5) }
 0xf50   : > { %3573 = vst [vmem:[%s6041_s30 + $0xe0] sm:$0xff] %v3562_v44  ;;  %v3564_v47 = vpop.f32.mrb[85].mxu1  ;;  %v3790_v44 = vld [vmem:[%s6099_s10] sm:$0xff] (!%p4026_p5) }
 0xf51   : > { %3574 = vst [vmem:[%s6041_s30 + $0xe8] sm:$0xff] %v3564_v47  ;;  %3793 = vperm.xlu1 (!%p4026_p5), %4691, %v3790_v44  }
 0xfbc   : > { %v3616_v47 = vpop.permute.xlu0 (!%p4026_p5), %3615 }
0x1011   : > { %v3445_v18 = vpop.f32.mrb[72].mxu0 }
0x1012   : > { %3470 = vst [vmem:[%s6041_s30] sm:$0xff] %v3445_v18  ;;  %v3447_v58 = vpop.f32.mrb[73].mxu0 }
0x1013   : > { %3471 = vst [vmem:[%s6041_s30 + $0x8] sm:$0xff] %v3447_v58 }
0x1015   : > { %v3451_v7 = vpop.f32.mrb[74].mxu0 }
0x1016   : > { %3472 = vst [vmem:[%s6041_s30 + $0x20] sm:$0xff] %v3451_v7  ;;  %v3453_v17 = vpop.f32.mrb[75].mxu0 }
0x1017   : > { %3473 = vst [vmem:[%s6041_s30 + $0x28] sm:$0xff] %v3453_v17 }
0x1019   : > { %v3457_v59 = vpop.f32.mrb[76].mxu0 }
0x101a   : > { %3474 = vst [vmem:[%s6041_s30 + $0x40] sm:$0xff] %v3457_v59  ;;  %v3459_v26 = vpop.f32.mrb[77].mxu0 }
0x101b   : > { %3475 = vst [vmem:[%s6041_s30 + $0x48] sm:$0xff] %v3459_v26 }
0x101d   : > { %v3463_v4 = vpop.f32.mrb[78].mxu0  ;;  %3578 = sbr.rel (%p4026_p5) target bundleno = 4704 (0x1260), region = 76 }
0x101e   : > { %3476 = vst [vmem:[%s6041_s30 + $0x60] sm:$0xff] %v3463_v4  ;;  %v3465_v0 = vpop.f32.mrb[79].mxu0 }
0x101f   : > { %3477 = vst [vmem:[%s6041_s30 + $0x68] sm:$0xff] %v3465_v0 }
0x1021   : > { %v3544_v42 = vpop.f32.mrb[80].mxu0 }
0x1022   : > { %3567 = vst [vmem:[%s6041_s30 + $0x80] sm:$0xff] %v3544_v42  ;;  %v3546_v5 = vpop.f32.mrb[81].mxu0 }
0x1023   : > { %3568 = vst [vmem:[%s6041_s30 + $0x88] sm:$0xff] %v3546_v5 }
0x102a   : > { %v3581_v20 = vld [vmem:[#allocation2 + $0x8] sm:$0xff]  ;;  %v3583_v27 = vld [vmem:[#allocation2 + $0x18] sm:$0xff]  ;;  %v3580_v35 = vld [vmem:[#allocation2] sm:$0xff] }
0x102b   : > { %v3585_v22 = vld [vmem:[#allocation2 + $0x28] sm:$0xff]  ;;  %v3587_v46 = vld [vmem:[#allocation2 + $0x38] sm:$0xff]  ;;  %v3584_v45 = vld [vmem:[#allocation2 + $0x20] sm:$0xff] }
0x102c   : > { %v4394_v11 = vpack.c.bf16 %v3585_v22, %v3581_v20  ;;  %v4410_v2 = vpack.c.bf16 %v3587_v46, %v3583_v27  ;;  %v4396_v57 = vpack.c.bf16 %v3584_v45, %v3580_v35  ;;  %v3582_v8 = vld [vmem:[#allocation2 + $0x10] sm:$0xff]  ;;  %v3589_v10 = vld [vmem:[#allocation2 + $0x48] sm:$0xff]  ;;  %v3591_v36 = vld [vmem:[#allocation2 + $0x58] sm:$0xff] }
0x102d   : > { %v3586_v56 = vld [vmem:[#allocation2 + $0x30] sm:$0xff]  ;;  %v3593_v13 = vld [vmem:[#allocation2 + $0x68] sm:$0xff]  ;;  %v3595_v28 = vld [vmem:[#allocation2 + $0x78] sm:$0xff] }
0x102e   : > { %4395 = vmatprep.subr.bf16.mxu0 %v4394_v11  ;;  %v4412_v37 = vpack.c.bf16 %v3586_v56, %v3582_v8  ;;  %4411 = vmatprep.subr.bf16.mxu1 %v4410_v2  ;;  %v4398_v62 = vpack.c.bf16 %v3593_v13, %v3589_v10  ;;  %v4414_v51 = vpack.c.bf16 %v3595_v28, %v3591_v36  ;;  %v3588_v14 = vld [vmem:[#allocation2 + $0x40] sm:$0xff]  ;;  %v3590_v1 = vld [vmem:[#allocation2 + $0x50] sm:$0xff]  ;;  %v3597_v63 = vld [vmem:[#allocation2 + $0x88] sm:$0xff]  ;;  %v3794_v13 = vpop.permute.xlu1 %3793 }
0x102f   : > { %4397 = vmatpush1.bf16.msra.mxu0 %v4396_v57  ;;  %v3592_v54 = vld [vmem:[#allocation2 + $0x60] sm:$0xff]  ;;  %v3594_v32 = vld [vmem:[#allocation2 + $0x70] sm:$0xff]  ;;  %v3601_v39 = vld [vmem:[#allocation2 + $0xa8] sm:$0xff] }
0x1030   : > { %4413 = vmatpush1.bf16.msra.mxu1 %v4412_v37  ;;  %v4400_v60 = vpack.c.bf16 %v3592_v54, %v3588_v14  ;;  %4399 = vmatprep.subr.bf16.mxu0 %v4398_v62  ;;  %v4416_v48 = vpack.c.bf16 %v3594_v32, %v3590_v1  ;;  %v4402_v16 = vpack.c.bf16 %v3601_v39, %v3597_v63  ;;  %v3599_v40 = vld [vmem:[#allocation2 + $0x98] sm:$0xff]  ;;  %v3596_v43 = vld [vmem:[#allocation2 + $0x80] sm:$0xff]  ;;  %v3598_v53 = vld [vmem:[#allocation2 + $0x90] sm:$0xff] }
0x1031   : > { %4415 = vmatprep.subr.bf16.mxu1 %v4414_v51  ;;  %v3603_v31 = vld [vmem:[#allocation2 + $0xb8] sm:$0xff]  ;;  %v3600_v49 = vld [vmem:[#allocation2 + $0xa0] sm:$0xff]  ;;  %v3602_v25 = vld [vmem:[#allocation2 + $0xb0] sm:$0xff] }
0x1032   : > { %v4418_v52 = vpack.c.bf16 %v3603_v31, %v3599_v40  ;;  %v4404_v41 = vpack.c.bf16 %v3600_v49, %v3596_v43  ;;  %v3605_v29 = vld [vmem:[#allocation2 + $0xc8] sm:$0xff]  ;;  %v3607_v9 = vld [vmem:[#allocation2 + $0xd8] sm:$0xff]  ;;  %v4420_v30 = vpack.c.bf16 %v3602_v25, %v3598_v53  ;;  %v3604_v24 = vld [vmem:[#allocation2 + $0xc0] sm:$0xff] }
0x1033   : > { %4401 = vmatpush1.bf16.msra.mxu0 %v4400_v60  ;;  %v3609_v3 = vld [vmem:[#allocation2 + $0xe8] sm:$0xff]  ;;  %v3611_v38 = vld [vmem:[#allocation2 + $0xf8] sm:$0xff]  ;;  %v3608_v34 = vld [vmem:[#allocation2 + $0xe0] sm:$0xff] }
0x1034   : > { %4417 = vmatpush1.bf16.msra.mxu1 %v4416_v48  ;;  %4403 = vmatprep.subr.bf16.mxu0 %v4402_v16  ;;  %v4406_v15 = vpack.c.bf16 %v3609_v3, %v3605_v29  ;;  %v4422_v33 = vpack.c.bf16 %v3611_v38, %v3607_v9  ;;  %v3606_v55 = vld [vmem:[#allocation2 + $0xd0] sm:$0xff]  ;;  %v4408_v21 = vpack.c.bf16 %v3608_v34, %v3604_v24  ;;  %v3800_v37 = vld [vmem:[%s6100_s11] sm:$0xff]  ;;  %v3815_v63 = vld [vmem:[#allocation3 + $0x8] sm:$0xff] }
0x1035   : > { %4419 = vmatprep.subr.bf16.mxu1 %v4418_v52  ;;  %v3610_v61 = vld [vmem:[#allocation2 + $0xf0] sm:$0xff]  ;;  %v3814_v32 = vld [vmem:[#allocation3] sm:$0xff]  ;;  %v3819_v43 = vcombine.high %v3815_v63, %v3815_v63  ;;  %v3827_v3 = vcombine.low %v3815_v63, %v3815_v63 }
0x1036   : > { %v4424_v23 = vpack.c.bf16 %v3610_v61, %v3606_v55  ;;  %v3818_v31 = vcombine.high %v3814_v32, %v3814_v32  ;;  %v3826_v29 = vcombine.low %v3814_v32, %v3814_v32 }
0x1037   : > { %4405 = vmatpush1.bf16.msra.mxu0 %v4404_v41 }
0x1038   : > { %4421 = vmatpush1.bf16.msra.mxu1 %v4420_v30  ;;  %4407 = vmatprep.subr.bf16.mxu0 %v4406_v15 }
0x1039   : > { %4423 = vmatprep.subr.bf16.mxu1 %v4422_v33 }
0x103b   : > { %4409 = vmatpush1.bf16.msra.mxu0 %v4408_v21 }
0x103c   : > { %4425 = vmatpush1.bf16.msra.mxu1 %v4424_v23 }
0x103e   : > { %4027 = vmatmul.mubr.msk.f32.vlgmr.msra.gmra.mrb[0].mxu0 %vm2089_vm6, %v3579_v12 }
0x103f   : > { %4028 = vmatmul.mubr.msk.f32.vlgmr.msra.gmra.mrb[0].mxu1 %vm2089_vm6, %v3579_v12 }
0x1111   : > { %v3687_v18 = vpop.f32.mrb[0].mxu0 }
0x1112   : > { %v3688_v58 = vadd.f32 %v3687_v18, %v3616_v47  ;;  %v3758_v7 = vpop.f32.mrb[0].mxu1  ;;  %v3689_v17 = vpop.f32.mrb[1].mxu0 }
0x1113   : > { %v3690_v59 = vadd.f32 %v3689_v17, %v3616_v47  ;;  %v3760_v26 = vpop.f32.mrb[1].mxu1  ;;  %v3759_v4 = vadd.f32 %v3758_v7, %v3616_v47 }
0x1114   : > { %v3761_v42 = vadd.f32 %v3760_v26, %v3616_v47 }
0x1115   : > { %v3763_v0 = vadd.f32 %v3690_v59, %v3688_v58 }
0x1117   : > { %v3764_v5 = vadd.f32 %v3763_v0, %v3759_v4 }
0x1119   : > { %v3765_v20 = vadd.f32 %v3764_v5, %v3761_v42 }
0x111b   : > { %3766 = vadd.xlane.f32.xlu0 %v3765_v20 }
0x11a8   : > { %v3767_v22 = vpop.xlane.xlu0 %3766 }
0x11a9   : > { %v3769_v27 = vmul.f32 0.001953125, %v3767_v22 }
0x11ab   : > { %v3770_v11 = vsub.f32 %v3688_v58, %v3769_v27  ;;  %v3771_v46 = vsub.f32 %v3690_v59, %v3769_v27  ;;  %v3772_v35 = vsub.f32 %v3759_v4, %v3769_v27  ;;  %v3773_v45 = vsub.f32 %v3761_v42, %v3769_v27 }
0x11ad   : > { %v3774_v19 = vmul.f32 %v3770_v11, %v3770_v11  ;;  %v3775_v2 = vmul.f32 %v3771_v46, %v3771_v46  ;;  %v3776_v57 = vmul.f32 %v3772_v35, %v3772_v35  ;;  %v3777_v56 = vmul.f32 %v3773_v45, %v3773_v45 }
0x11af   : > { %v3778_v8 = vadd.f32 %v3775_v2, %v3774_v19 }
0x11b1   : > { %v3779_v10 = vadd.f32 %v3778_v8, %v3776_v57 }
0x11b3   : > { %v3780_v50 = vadd.f32 %v3779_v10, %v3777_v56 }
0x11b5   : > { %3781 = vadd.xlane.f32.xlu1 %v3780_v50 }
0x11c6   : > { %3803 = vperm.xlu1 %4691, %v3800_v37  }
0x1242   : > { %v3782_v36 = vpop.xlane.xlu1 %3781 }
0x1243   : > { %v3783_v28 = vmul.f32 0.001953125, %v3782_v36 }
0x1245   : > { %v3784_v62 = vadd.f32 1e-05, %v3783_v28 }
0x1246   : > { %v3804_v52 = vpop.permute.xlu1 %3803 }
0x1247   : > { %4696 = vrsqrt.f32 %v3784_v62 }
0x1251   : > { %v4697_v51 = vpop.eup %4696 }
0x1252   : > { %v3786_v14 = vmul.f32 %v4697_v51, %v3770_v11  ;;  %v3787_v54 = vmul.f32 %v4697_v51, %v3771_v46  ;;  %v3788_v1 = vmul.f32 %v4697_v51, %v3772_v35  ;;  %v3789_v60 = vmul.f32 %v4697_v51, %v3773_v45 }
0x1254   : > { %v3796_v39 = vmul.f32 %v3794_v13, %v3786_v14  ;;  %v3797_v48 = vmul.f32 %v3794_v13, %v3787_v54  ;;  %v3798_v16 = vmul.f32 %v3794_v13, %v3788_v1  ;;  %v3799_v40 = vmul.f32 %v3794_v13, %v3789_v60 }
0x1256   : > { %v3806_v49 = vadd.f32 %v3804_v52, %v3796_v39  ;;  %v3807_v53 = vadd.f32 %v3804_v52, %v3797_v48  ;;  %v3808_v25 = vadd.f32 %v3804_v52, %v3798_v16  ;;  %v3809_v41 = vadd.f32 %v3804_v52, %v3799_v40 }
0x1258   : > { %v3810_v9 = vmax.f32 %v3806_v49, 0.0  ;;  %v3811_v30 = vmax.f32 %v3807_v53, 0.0  ;;  %v3812_v15 = vmax.f32 %v3808_v25, 0.0  ;;  %v3813_v38 = vmax.f32 %v3809_v41, 0.0 }
0x125a   : > { %v3822_v24 = vadd.f32 %v3814_v32, %v3810_v9  ;;  %v3823_v34 = vadd.f32 %v3818_v31, %v3811_v30  ;;  %v3824_v33 = vadd.f32 %v3815_v63, %v3812_v15  ;;  %v3825_v55 = vadd.f32 %v3819_v43, %v3813_v38 }
0x125b   : > { %v3830_v61 = vadd.f32 %v3826_v29, %v3810_v9  ;;  %v3831_v6 = vadd.f32 %v3814_v32, %v3811_v30  ;;  %v3832_v21 = vadd.f32 %v3827_v3, %v3812_v15  ;;  %v3833_v23 = vadd.f32 %v3815_v63, %v3813_v38 }
0x125c   : > { %v3836_v12 = vcombine.low %v3822_v24, %v3823_v34  ;;  %v3846_v44 = vcombine.low %v3824_v33, %v3825_v55 }
0x125d   : > { %v3841_v47 = vcombine.high %v3830_v61, %v3831_v6  ;;  %v3852_v18 = vcombine.high %v3832_v21, %v3833_v23 }
0x125e   : > { %3838 = vst [vmem:[%s6101_s12] sm:$0xff] %v3836_v12  ;;  %4029 = vst [vmem:[%s6101_s12 + $0x8] sm:$0xff] %v3846_v44 }
0x125f   : > { %3843 = vst [vmem:[%s6102_s13] sm:$0xff] %v3841_v47  ;;  %4030 = vst [vmem:[%s6102_s13 + $0x8] sm:$0xff] %v3852_v18 }
0x1260 PF: > { %s6113_s21 = sld [smem:[#allocation4_spill]] }
0x1266   : > { %s26_s18 = sadd.s32 1, %s6113_s21  }
0x1267   : > { %p23_p6 = scmp.ge.s32.totalorder %s26_s18, 4  }
0x1269   :  { %25 = sbr.rel (!%p23_p6) target bundleno = 1 (0x1), region = 130 }

</bundles_post_ra>
